<compile_context>
chip_gen: v7x
topology: tpu7x:2x2x1
jax: 0.10.0
libtpu: 0.0.40
codegen_flags: <defaults>
</compile_context>

<pallas_src>
import functools

import jax
import jax.numpy as jnp
from jax.experimental import pallas as pl
from jax.experimental.pallas import tpu as pltpu


# --------------------------------------------------------------------------
# Fused RCBAM kernel (one batch element per grid step, (C, H*W) slab in VMEM)
# --------------------------------------------------------------------------
def _rcbam_kernel(x_ref, w1_ref, w2_ref, saw_ref, o_ref, *, H, W, C):
    HW = H * W
    x = x_ref[0]                                            # (C, HW) f32

    # ---------------- channel attention ----------------
    # global average / max pool over the spatial (lane) axis -> per-channel scalars
    avg = jnp.sum(x, axis=1, keepdims=True) * (1.0 / HW)    # (C, 1)
    mx = jnp.max(x, axis=1, keepdims=True)                  # (C, 1)

    # shared 1x1-conv MLP applied to both pooled vectors at once (columns)
    v = jnp.concatenate([avg, mx], axis=1)                  # (C, 2)
    h = jnp.maximum(
        jnp.dot(w1_ref[...], v, preferred_element_type=jnp.float32), 0.0)  # (Cr, 2)
    mlp = jnp.dot(w2_ref[...], h, preferred_element_type=jnp.float32)      # (C, 2)
    ca = jax.nn.sigmoid(mlp[:, 0:1] + mlp[:, 1:2])          # (C, 1)

    out = x * ca                                            # (C, HW) lane-broadcast

    # ---------------- spatial attention ----------------
    # channel-wise mean/max, kept as lane-dense (1, HW) rows (no (H,W,1) maps)
    mean_map = jnp.mean(out, axis=0, keepdims=True)         # (1, HW)
    max_map = jnp.max(out, axis=0, keepdims=True)           # (1, HW)

    # column-validity masks for the 7 horizontal offsets (hoisted; shared by
    # both conv input channels).  Row validity is handled by the zero padding
    # of the flat row below.
    colidx = jax.lax.broadcasted_iota(jnp.int32, (1, HW), 1) % W
    col_ok = []
    for kv in range(7):
        dc = kv - 3
        col_ok.append(jnp.logical_and(colidx >= -dc, colidx < W - dc))

    # 7x7, 2-channel conv (padding=3) as 98 static slices of a zero-padded
    # flat row: out[p] += w * padded[p + 3W+3 + dr*W + dc]  (masked on columns)
    PAD = 3 * W + 3
    zero_pad = jnp.zeros((1, PAD), jnp.float32)
    acc = jnp.zeros((1, HW), jnp.float32)
    for c in range(2):
        pooled = mean_map if c == 0 else max_map
        padded = jnp.concatenate([zero_pad, pooled, zero_pad], axis=1)  # (1, HW+2*PAD)
        for ku in range(7):
            base = PAD + (ku - 3) * W
            for kv in range(7):
                wgt = saw_ref[c * 49 + ku * 7 + kv]          # SMEM scalar
                shifted = padded[:, base + (kv - 3): base + (kv - 3) + HW]  # (1, HW)
                if kv == 3:                                  # dc == 0: mask is all-true
                    acc = acc + wgt * shifted
                else:
                    acc = acc + wgt * jnp.where(col_ok[kv], shifted, 0.0)
    sa = jax.nn.sigmoid(acc + saw_ref[2 * 49])               # (1, HW)

    # ---------------- apply + residual ----------------
    o_ref[0] = (x + out * sa).astype(o_ref.dtype)            # (C, HW)


def rcbam_forward(x_nchw, params):
    """RCBAM forward. x_nchw: (N, C, H, W) float32 (PyTorch layout)."""
    N, C, H, W = x_nchw.shape
    Cr = params["mlp_w1"].shape[0]                 # C // ratio
    HW = H * W

    # free (metadata-only) reshape: (N, C, H, W) -> (N, C, H*W), still NCHW-contiguous
    x_flat = x_nchw.reshape(N, C, HW)

    w1 = params["mlp_w1"].astype(jnp.float32)      # (Cr, C)   h   = relu(w1 @ v)
    w2 = params["mlp_w2"].astype(jnp.float32)      # (C,  Cr)  out = w2 @ h
    # spatial-attention conv weights + bias packed into one small SMEM array
    saw = jnp.concatenate(
        [params["sa_w"].reshape(-1), params["sa_b"].reshape(-1)]).astype(jnp.float32)

    kernel = functools.partial(_rcbam_kernel, H=H, W=W, C=C)

    # size the scoped-VMEM budget from the actual double-buffered slab footprint
    slab_bytes = C * HW * 4
    vmem_limit = int(min(64 * 1024 * 1024,
                         max(32 * 1024 * 1024, 6 * slab_bytes + (4 << 20))))

    out_flat = pl.pallas_call(
        kernel,
        out_shape=jax.ShapeDtypeStruct((N, C, HW), x_flat.dtype),
        grid_spec=pltpu.PrefetchScalarGridSpec(
            num_scalar_prefetch=0,
            grid=(N,),
            in_specs=[
                pl.BlockSpec((1, C, HW), lambda n: (n, 0, 0)),
                pl.BlockSpec((Cr, C), lambda n: (0, 0)),
                pl.BlockSpec((C, Cr), lambda n: (0, 0)),
                pl.BlockSpec(memory_space=pltpu.MemorySpace.SMEM),
            ],
            out_specs=pl.BlockSpec((1, C, HW), lambda n: (n, 0, 0)),
        ),
        compiler_params=pltpu.CompilerParams(
            dimension_semantics=("parallel",),
            vmem_limit_bytes=vmem_limit),
    )(x_flat, w1, w2, saw)

    # free reshape back to the PyTorch NCHW interface
    return out_flat.reshape(N, C, H, W)


# --------------------------------------------------------------------------
# Pure-JAX reference (matches the PyTorch RCBAM forward, inference mode)
# --------------------------------------------------------------------------
def rcbam_reference(x, p):
    hi = jax.lax.Precision.HIGHEST
    avg = jnp.mean(x, axis=(2, 3))                              # (N, C)
    mx = jnp.max(x, axis=(2, 3))                                # (N, C)

    def mlp(v):
        h = jnp.maximum(jnp.dot(v, p["mlp_w1"].T, precision=hi), 0.0)
        return jnp.dot(h, p["mlp_w2"].T, precision=hi)

    ca = jax.nn.sigmoid(mlp(avg) + mlp(mx))[:, :, None, None]   # (N, C, 1, 1)
    out = ca * x
    mean_map = jnp.mean(out, axis=1, keepdims=True)
    max_map = jnp.max(out, axis=1, keepdims=True)
    cat = jnp.concatenate([mean_map, max_map], axis=1)          # (N, 2, H, W)
    conv = jax.lax.conv_general_dilated(
        cat, p["sa_w"], window_strides=(1, 1), padding=((3, 3), (3, 3)),
        dimension_numbers=("NCHW", "OIHW", "NCHW"), precision=hi)
    sa = jax.nn.sigmoid(conv + p["sa_b"][None, :, None, None])  # (N, 1, H, W)
    return x + sa * out


# --------------------------------------------------------------------------
if __name__ == "__main__":
    # RCBAM(channel=32) with default ratio=16  ->  channel // ratio = 2
    N, C, H, W = 2, 32, 16, 16
    ratio = 16
    assert C % ratio == 0 and C // ratio >= 1
    Cr = C // ratio

    key = jax.random.PRNGKey(0)
    k1, k2, k3, k4, kx = jax.random.split(key, 5)
    params = {
        # shared_MLP: Conv2d(C, C//r, 1, bias=False) -> weight (C//r, C) squeezed
        "mlp_w1": jax.random.normal(k1, (Cr, C), jnp.float32) * 0.2,
        #            Conv2d(C//r, C, 1, bias=False) -> weight (C, C//r) squeezed
        "mlp_w2": jax.random.normal(k2, (C, Cr), jnp.float32) * 0.2,
        # SpatialAttention Conv2d(2, 1, kernel_size=7, padding=3) weight + bias
        "sa_w": jax.random.normal(k3, (1, 2, 7, 7), jnp.float32) * 0.2,
        "sa_b": jax.random.normal(k4, (1,), jnp.float32) * 0.2,
    }
    x = jax.random.normal(kx, (N, C, H, W), jnp.float32)

    fwd = jax.jit(rcbam_forward)
    y = fwd(x, params)
    jax.block_until_ready(y)

    assert y.shape == (N, C, H, W) and y.dtype == jnp.float32

    y_ref = rcbam_reference(x, params)
    max_err = float(jnp.max(jnp.abs(y - y_ref)))
    assert max_err < 1e-3, f"mismatch vs pure-JAX reference: {max_err}"

    print("KERNEL_OK")
</pallas_src>

<mosaic_0001>
module attributes {stable_mosaic.version = 11 : i64} {
  func.func @_rcbam_kernel(%arg0: i32, %arg1: memref<1x32x256xf32, #tpu.memory_space<vmem>>, %arg2: memref<2x32xf32, #tpu.memory_space<vmem>>, %arg3: memref<32x2xf32, #tpu.memory_space<vmem>>, %arg4: memref<99xf32, #tpu.memory_space<smem>>, %arg5: memref<1x32x256xf32, #tpu.memory_space<vmem>>) attributes {dimension_semantics = [#tpu.dimension_semantics<parallel>], iteration_bounds = array<i64: 2>, scalar_prefetch = 0 : i64, scratch_operands = 0 : i64, tpu.core_type = #tpu.core_type<tc>, window_params = [{transform_indices = @transform_0, window_bounds = array<i64: 1, 32, 256>}, {pipeline_mode = #tpu.pipeline_mode<synchronous>, transform_indices = @transform_1, window_bounds = array<i64: 2, 32>}, {pipeline_mode = #tpu.pipeline_mode<synchronous>, transform_indices = @transform_2, window_bounds = array<i64: 32, 2>}, {transform_indices = @transform_3, window_bounds = array<i64: 99>}, {transform_indices = @transform_4, window_bounds = array<i64: 1, 32, 256>}]} {
    %c0 = arith.constant 0 : index
    %c0_0 = arith.constant 0 : index
    %c0_1 = arith.constant 0 : index
    %0 = vector.load %arg1[%c0, %c0_0, %c0_1] : memref<1x32x256xf32, #tpu.memory_space<vmem>>, vector<1x32x256xf32>
    %1 = vector.shape_cast %0 : vector<1x32x256xf32> to vector<32x256xf32>
    %cst = arith.constant dense<0.000000e+00> : vector<32xf32>
    %2 = vector.multi_reduction <add>, %1, %cst [1] : vector<32x256xf32> to vector<32xf32>
    %3 = vector.shape_cast %2 : vector<32xf32> to vector<32x1xf32>
    %cst_2 = arith.constant 3.906250e-03 : f32
    %4 = vector.broadcast %cst_2 : f32 to vector<32x1xf32>
    %5 = arith.mulf %3, %4 : vector<32x1xf32>
    %cst_3 = arith.constant dense<0xFF800000> : vector<32xf32>
    %6 = vector.multi_reduction <maximumf>, %1, %cst_3 [1] : vector<32x256xf32> to vector<32xf32>
    %7 = vector.shape_cast %6 : vector<32xf32> to vector<32x1xf32>
    %8 = tpu.concatenate %5, %7 in 1 : vector<32x1xf32>, vector<32x1xf32> -> vector<32x2xf32>
    %c0_4 = arith.constant 0 : index
    %c0_5 = arith.constant 0 : index
    %9 = vector.load %arg2[%c0_4, %c0_5] : memref<2x32xf32, #tpu.memory_space<vmem>>, vector<2x32xf32>
    %cst_6 = arith.constant dense<0.000000e+00> : vector<2x2xf32>
    %10 = tpu.matmul %9, %8, %cst_6 {dimension_numbers = #tpu.dot_dimension_numbers<[1], [0], [0], [1], [0, 0, 1, 1], [], []>} : vector<2x32xf32>, vector<32x2xf32>, vector<2x2xf32> -> vector<2x2xf32>
    %cst_7 = arith.constant 0.000000e+00 : f32
    %11 = vector.broadcast %cst_7 : f32 to vector<2x2xf32>
    %12 = arith.maximumf %10, %11 : vector<2x2xf32>
    %c0_8 = arith.constant 0 : index
    %c0_9 = arith.constant 0 : index
    %13 = vector.load %arg3[%c0_8, %c0_9] : memref<32x2xf32, #tpu.memory_space<vmem>>, vector<32x2xf32>
    %cst_10 = arith.constant dense<0.000000e+00> : vector<32x2xf32>
    %14 = tpu.matmul %13, %12, %cst_10 {dimension_numbers = #tpu.dot_dimension_numbers<[1], [0], [0], [1], [0, 0, 1, 1], [], []>} : vector<32x2xf32>, vector<2x2xf32>, vector<32x2xf32> -> vector<32x2xf32>
    %15 = vector.extract_strided_slice %14 {offsets = [0, 0], sizes = [32, 1], strides = [1, 1]} : vector<32x2xf32> to vector<32x1xf32>
    %16 = vector.extract_strided_slice %14 {offsets = [0, 1], sizes = [32, 1], strides = [1, 1]} : vector<32x2xf32> to vector<32x1xf32>
    %17 = arith.addf %15, %16 : vector<32x1xf32>
    %18 = arith.negf %17 : vector<32x1xf32>
    %19 = math.exp %18 : vector<32x1xf32>
    %cst_11 = arith.constant 1.000000e+00 : f32
    %20 = vector.broadcast %cst_11 : f32 to vector<32x1xf32>
    %21 = arith.addf %20, %19 : vector<32x1xf32>
    %22 = arith.divf %20, %21 : vector<32x1xf32>
    %23 = vector.broadcast %22 : vector<32x1xf32> to vector<32x256xf32>
    %24 = arith.mulf %1, %23 : vector<32x256xf32>
    %cst_12 = arith.constant dense<0.000000e+00> : vector<256xf32>
    %25 = vector.multi_reduction <add>, %24, %cst_12 [0] : vector<32x256xf32> to vector<256xf32>
    %26 = vector.shape_cast %25 : vector<256xf32> to vector<1x256xf32>
    %cst_13 = arith.constant 3.200000e+01 : f32
    %27 = vector.broadcast %cst_13 : f32 to vector<1x256xf32>
    %28 = arith.divf %26, %27 : vector<1x256xf32>
    %cst_14 = arith.constant dense<0xFF800000> : vector<256xf32>
    %29 = vector.multi_reduction <maximumf>, %24, %cst_14 [0] : vector<32x256xf32> to vector<256xf32>
    %30 = vector.shape_cast %29 : vector<256xf32> to vector<1x256xf32>
    %31 = tpu.iota {dimensions = array<i32: 1>} : vector<1x256xi32>
    %c16_i32 = arith.constant 16 : i32
    %c0_i32 = arith.constant 0 : i32
    %32 = arith.cmpi eq, %c16_i32, %c0_i32 : i32
    %c1_i32 = arith.constant 1 : i32
    %33 = arith.select %32, %c1_i32, %c16_i32 : i32
    %34 = vector.broadcast %33 : i32 to vector<1x256xi32>
    %35 = arith.remsi %31, %34 : vector<1x256xi32>
    %c0_i32_15 = arith.constant 0 : i32
    %36 = vector.broadcast %c0_i32_15 : i32 to vector<1x256xi32>
    %37 = arith.cmpi ne, %35, %36 : vector<1x256xi32>
    %c0_i32_16 = arith.constant 0 : i32
    %38 = vector.broadcast %c0_i32_16 : i32 to vector<1x256xi32>
    %39 = arith.cmpi slt, %35, %38 : vector<1x256xi32>
    %c0_i32_17 = arith.constant 0 : i32
    %40 = arith.cmpi slt, %33, %c0_i32_17 : i32
    %41 = vector.broadcast %40 : i1 to vector<1x256xi1>
    %42 = vector.broadcast %41 : vector<1x256xi1> to vector<1x256xi1>
    %43 = arith.xori %39, %42 : vector<1x256xi1>
    %44 = arith.andi %43, %37 : vector<1x256xi1>
    %45 = vector.broadcast %33 : i32 to vector<1x256xi32>
    %46 = arith.addi %35, %45 : vector<1x256xi32>
    %47 = arith.select %44, %46, %35 : vector<1x256xi1>, vector<1x256xi32>
    %c3_i32 = arith.constant 3 : i32
    %48 = vector.broadcast %c3_i32 : i32 to vector<1x256xi32>
    %49 = arith.cmpi sge, %47, %48 : vector<1x256xi32>
    %c19_i32 = arith.constant 19 : i32
    %50 = vector.broadcast %c19_i32 : i32 to vector<1x256xi32>
    %51 = arith.cmpi slt, %47, %50 : vector<1x256xi32>
    %52 = arith.andi %49, %51 : vector<1x256xi1>
    %c2_i32 = arith.constant 2 : i32
    %53 = vector.broadcast %c2_i32 : i32 to vector<1x256xi32>
    %54 = arith.cmpi sge, %47, %53 : vector<1x256xi32>
    %c18_i32 = arith.constant 18 : i32
    %55 = vector.broadcast %c18_i32 : i32 to vector<1x256xi32>
    %56 = arith.cmpi slt, %47, %55 : vector<1x256xi32>
    %57 = arith.andi %54, %56 : vector<1x256xi1>
    %c1_i32_18 = arith.constant 1 : i32
    %58 = vector.broadcast %c1_i32_18 : i32 to vector<1x256xi32>
    %59 = arith.cmpi sge, %47, %58 : vector<1x256xi32>
    %c17_i32 = arith.constant 17 : i32
    %60 = vector.broadcast %c17_i32 : i32 to vector<1x256xi32>
    %61 = arith.cmpi slt, %47, %60 : vector<1x256xi32>
    %62 = arith.andi %59, %61 : vector<1x256xi1>
    %c-1_i32 = arith.constant -1 : i32
    %63 = vector.broadcast %c-1_i32 : i32 to vector<1x256xi32>
    %64 = arith.cmpi sge, %47, %63 : vector<1x256xi32>
    %c15_i32 = arith.constant 15 : i32
    %65 = vector.broadcast %c15_i32 : i32 to vector<1x256xi32>
    %66 = arith.cmpi slt, %47, %65 : vector<1x256xi32>
    %67 = arith.andi %64, %66 : vector<1x256xi1>
    %c-2_i32 = arith.constant -2 : i32
    %68 = vector.broadcast %c-2_i32 : i32 to vector<1x256xi32>
    %69 = arith.cmpi sge, %47, %68 : vector<1x256xi32>
    %c14_i32 = arith.constant 14 : i32
    %70 = vector.broadcast %c14_i32 : i32 to vector<1x256xi32>
    %71 = arith.cmpi slt, %47, %70 : vector<1x256xi32>
    %72 = arith.andi %69, %71 : vector<1x256xi1>
    %c-3_i32 = arith.constant -3 : i32
    %73 = vector.broadcast %c-3_i32 : i32 to vector<1x256xi32>
    %74 = arith.cmpi sge, %47, %73 : vector<1x256xi32>
    %c13_i32 = arith.constant 13 : i32
    %75 = vector.broadcast %c13_i32 : i32 to vector<1x256xi32>
    %76 = arith.cmpi slt, %47, %75 : vector<1x256xi32>
    %77 = arith.andi %74, %76 : vector<1x256xi1>
    %cst_19 = arith.constant 0.000000e+00 : f32
    %78 = vector.broadcast %cst_19 : f32 to vector<1x51xf32>
    %cst_20 = arith.constant 0.000000e+00 : f32
    %79 = vector.broadcast %cst_20 : f32 to vector<1x256xf32>
    %80 = tpu.concatenate %78, %28, %78 in 1 : vector<1x51xf32>, vector<1x256xf32>, vector<1x51xf32> -> vector<1x358xf32>
    %c0_21 = arith.constant 0 : index
    %81 = memref.load %arg4[%c0_21] : memref<99xf32, #tpu.memory_space<smem>>
    %82 = vector.extract_strided_slice %80 {offsets = [0, 0], sizes = [1, 256], strides = [1, 1]} : vector<1x358xf32> to vector<1x256xf32>
    %cst_22 = arith.constant 0.000000e+00 : f32
    %83 = vector.broadcast %cst_22 : f32 to vector<1x256xf32>
    %84 = arith.select %52, %82, %83 : vector<1x256xi1>, vector<1x256xf32>
    %85 = vector.broadcast %81 : f32 to vector<1x256xf32>
    %86 = arith.mulf %85, %84 : vector<1x256xf32>
    %87 = arith.addf %79, %86 : vector<1x256xf32>
    %c1 = arith.constant 1 : index
    %88 = memref.load %arg4[%c1] : memref<99xf32, #tpu.memory_space<smem>>
    %89 = vector.extract_strided_slice %80 {offsets = [0, 1], sizes = [1, 256], strides = [1, 1]} : vector<1x358xf32> to vector<1x256xf32>
    %cst_23 = arith.constant 0.000000e+00 : f32
    %90 = vector.broadcast %cst_23 : f32 to vector<1x256xf32>
    %91 = arith.select %57, %89, %90 : vector<1x256xi1>, vector<1x256xf32>
    %92 = vector.broadcast %88 : f32 to vector<1x256xf32>
    %93 = arith.mulf %92, %91 : vector<1x256xf32>
    %94 = arith.addf %87, %93 : vector<1x256xf32>
    %c2 = arith.constant 2 : index
    %95 = memref.load %arg4[%c2] : memref<99xf32, #tpu.memory_space<smem>>
    %96 = vector.extract_strided_slice %80 {offsets = [0, 2], sizes = [1, 256], strides = [1, 1]} : vector<1x358xf32> to vector<1x256xf32>
    %cst_24 = arith.constant 0.000000e+00 : f32
    %97 = vector.broadcast %cst_24 : f32 to vector<1x256xf32>
    %98 = arith.select %62, %96, %97 : vector<1x256xi1>, vector<1x256xf32>
    %99 = vector.broadcast %95 : f32 to vector<1x256xf32>
    %100 = arith.mulf %99, %98 : vector<1x256xf32>
    %101 = arith.addf %94, %100 : vector<1x256xf32>
    %c3 = arith.constant 3 : index
    %102 = memref.load %arg4[%c3] : memref<99xf32, #tpu.memory_space<smem>>
    %103 = vector.extract_strided_slice %80 {offsets = [0, 3], sizes = [1, 256], strides = [1, 1]} : vector<1x358xf32> to vector<1x256xf32>
    %104 = vector.broadcast %102 : f32 to vector<1x256xf32>
    %105 = arith.mulf %104, %103 : vector<1x256xf32>
    %106 = arith.addf %101, %105 : vector<1x256xf32>
    %c4 = arith.constant 4 : index
    %107 = memref.load %arg4[%c4] : memref<99xf32, #tpu.memory_space<smem>>
    %108 = vector.extract_strided_slice %80 {offsets = [0, 4], sizes = [1, 256], strides = [1, 1]} : vector<1x358xf32> to vector<1x256xf32>
    %cst_25 = arith.constant 0.000000e+00 : f32
    %109 = vector.broadcast %cst_25 : f32 to vector<1x256xf32>
    %110 = arith.select %67, %108, %109 : vector<1x256xi1>, vector<1x256xf32>
    %111 = vector.broadcast %107 : f32 to vector<1x256xf32>
    %112 = arith.mulf %111, %110 : vector<1x256xf32>
    %113 = arith.addf %106, %112 : vector<1x256xf32>
    %c5 = arith.constant 5 : index
    %114 = memref.load %arg4[%c5] : memref<99xf32, #tpu.memory_space<smem>>
    %115 = vector.extract_strided_slice %80 {offsets = [0, 5], sizes = [1, 256], strides = [1, 1]} : vector<1x358xf32> to vector<1x256xf32>
    %cst_26 = arith.constant 0.000000e+00 : f32
    %116 = vector.broadcast %cst_26 : f32 to vector<1x256xf32>
    %117 = arith.select %72, %115, %116 : vector<1x256xi1>, vector<1x256xf32>
    %118 = vector.broadcast %114 : f32 to vector<1x256xf32>
    %119 = arith.mulf %118, %117 : vector<1x256xf32>
    %120 = arith.addf %113, %119 : vector<1x256xf32>
    %c6 = arith.constant 6 : index
    %121 = memref.load %arg4[%c6] : memref<99xf32, #tpu.memory_space<smem>>
    %122 = vector.extract_strided_slice %80 {offsets = [0, 6], sizes = [1, 256], strides = [1, 1]} : vector<1x358xf32> to vector<1x256xf32>
    %cst_27 = arith.constant 0.000000e+00 : f32
    %123 = vector.broadcast %cst_27 : f32 to vector<1x256xf32>
    %124 = arith.select %77, %122, %123 : vector<1x256xi1>, vector<1x256xf32>
    %125 = vector.broadcast %121 : f32 to vector<1x256xf32>
    %126 = arith.mulf %125, %124 : vector<1x256xf32>
    %127 = arith.addf %120, %126 : vector<1x256xf32>
    %c7 = arith.constant 7 : index
    %128 = memref.load %arg4[%c7] : memref<99xf32, #tpu.memory_space<smem>>
    %129 = vector.extract_strided_slice %80 {offsets = [0, 16], sizes = [1, 256], strides = [1, 1]} : vector<1x358xf32> to vector<1x256xf32>
    %cst_28 = arith.constant 0.000000e+00 : f32
    %130 = vector.broadcast %cst_28 : f32 to vector<1x256xf32>
    %131 = arith.select %52, %129, %130 : vector<1x256xi1>, vector<1x256xf32>
    %132 = vector.broadcast %128 : f32 to vector<1x256xf32>
    %133 = arith.mulf %132, %131 : vector<1x256xf32>
    %134 = arith.addf %127, %133 : vector<1x256xf32>
    %c8 = arith.constant 8 : index
    %135 = memref.load %arg4[%c8] : memref<99xf32, #tpu.memory_space<smem>>
    %136 = vector.extract_strided_slice %80 {offsets = [0, 17], sizes = [1, 256], strides = [1, 1]} : vector<1x358xf32> to vector<1x256xf32>
    %cst_29 = arith.constant 0.000000e+00 : f32
    %137 = vector.broadcast %cst_29 : f32 to vector<1x256xf32>
    %138 = arith.select %57, %136, %137 : vector<1x256xi1>, vector<1x256xf32>
    %139 = vector.broadcast %135 : f32 to vector<1x256xf32>
    %140 = arith.mulf %139, %138 : vector<1x256xf32>
    %141 = arith.addf %134, %140 : vector<1x256xf32>
    %c9 = arith.constant 9 : index
    %142 = memref.load %arg4[%c9] : memref<99xf32, #tpu.memory_space<smem>>
    %143 = vector.extract_strided_slice %80 {offsets = [0, 18], sizes = [1, 256], strides = [1, 1]} : vector<1x358xf32> to vector<1x256xf32>
    %cst_30 = arith.constant 0.000000e+00 : f32
    %144 = vector.broadcast %cst_30 : f32 to vector<1x256xf32>
    %145 = arith.select %62, %143, %144 : vector<1x256xi1>, vector<1x256xf32>
    %146 = vector.broadcast %142 : f32 to vector<1x256xf32>
    %147 = arith.mulf %146, %145 : vector<1x256xf32>
    %148 = arith.addf %141, %147 : vector<1x256xf32>
    %c10 = arith.constant 10 : index
    %149 = memref.load %arg4[%c10] : memref<99xf32, #tpu.memory_space<smem>>
    %150 = vector.extract_strided_slice %80 {offsets = [0, 19], sizes = [1, 256], strides = [1, 1]} : vector<1x358xf32> to vector<1x256xf32>
    %151 = vector.broadcast %149 : f32 to vector<1x256xf32>
    %152 = arith.mulf %151, %150 : vector<1x256xf32>
    %153 = arith.addf %148, %152 : vector<1x256xf32>
    %c11 = arith.constant 11 : index
    %154 = memref.load %arg4[%c11] : memref<99xf32, #tpu.memory_space<smem>>
    %155 = vector.extract_strided_slice %80 {offsets = [0, 20], sizes = [1, 256], strides = [1, 1]} : vector<1x358xf32> to vector<1x256xf32>
    %cst_31 = arith.constant 0.000000e+00 : f32
    %156 = vector.broadcast %cst_31 : f32 to vector<1x256xf32>
    %157 = arith.select %67, %155, %156 : vector<1x256xi1>, vector<1x256xf32>
    %158 = vector.broadcast %154 : f32 to vector<1x256xf32>
    %159 = arith.mulf %158, %157 : vector<1x256xf32>
    %160 = arith.addf %153, %159 : vector<1x256xf32>
    %c12 = arith.constant 12 : index
    %161 = memref.load %arg4[%c12] : memref<99xf32, #tpu.memory_space<smem>>
    %162 = vector.extract_strided_slice %80 {offsets = [0, 21], sizes = [1, 256], strides = [1, 1]} : vector<1x358xf32> to vector<1x256xf32>
    %cst_32 = arith.constant 0.000000e+00 : f32
    %163 = vector.broadcast %cst_32 : f32 to vector<1x256xf32>
    %164 = arith.select %72, %162, %163 : vector<1x256xi1>, vector<1x256xf32>
    %165 = vector.broadcast %161 : f32 to vector<1x256xf32>
    %166 = arith.mulf %165, %164 : vector<1x256xf32>
    %167 = arith.addf %160, %166 : vector<1x256xf32>
    %c13 = arith.constant 13 : index
    %168 = memref.load %arg4[%c13] : memref<99xf32, #tpu.memory_space<smem>>
    %169 = vector.extract_strided_slice %80 {offsets = [0, 22], sizes = [1, 256], strides = [1, 1]} : vector<1x358xf32> to vector<1x256xf32>
    %cst_33 = arith.constant 0.000000e+00 : f32
    %170 = vector.broadcast %cst_33 : f32 to vector<1x256xf32>
    %171 = arith.select %77, %169, %170 : vector<1x256xi1>, vector<1x256xf32>
    %172 = vector.broadcast %168 : f32 to vector<1x256xf32>
    %173 = arith.mulf %172, %171 : vector<1x256xf32>
    %174 = arith.addf %167, %173 : vector<1x256xf32>
    %c14 = arith.constant 14 : index
    %175 = memref.load %arg4[%c14] : memref<99xf32, #tpu.memory_space<smem>>
    %176 = vector.extract_strided_slice %80 {offsets = [0, 32], sizes = [1, 256], strides = [1, 1]} : vector<1x358xf32> to vector<1x256xf32>
    %cst_34 = arith.constant 0.000000e+00 : f32
    %177 = vector.broadcast %cst_34 : f32 to vector<1x256xf32>
    %178 = arith.select %52, %176, %177 : vector<1x256xi1>, vector<1x256xf32>
    %179 = vector.broadcast %175 : f32 to vector<1x256xf32>
    %180 = arith.mulf %179, %178 : vector<1x256xf32>
    %181 = arith.addf %174, %180 : vector<1x256xf32>
    %c15 = arith.constant 15 : index
    %182 = memref.load %arg4[%c15] : memref<99xf32, #tpu.memory_space<smem>>
    %183 = vector.extract_strided_slice %80 {offsets = [0, 33], sizes = [1, 256], strides = [1, 1]} : vector<1x358xf32> to vector<1x256xf32>
    %cst_35 = arith.constant 0.000000e+00 : f32
    %184 = vector.broadcast %cst_35 : f32 to vector<1x256xf32>
    %185 = arith.select %57, %183, %184 : vector<1x256xi1>, vector<1x256xf32>
    %186 = vector.broadcast %182 : f32 to vector<1x256xf32>
    %187 = arith.mulf %186, %185 : vector<1x256xf32>
    %188 = arith.addf %181, %187 : vector<1x256xf32>
    %c16 = arith.constant 16 : index
    %189 = memref.load %arg4[%c16] : memref<99xf32, #tpu.memory_space<smem>>
    %190 = vector.extract_strided_slice %80 {offsets = [0, 34], sizes = [1, 256], strides = [1, 1]} : vector<1x358xf32> to vector<1x256xf32>
    %cst_36 = arith.constant 0.000000e+00 : f32
    %191 = vector.broadcast %cst_36 : f32 to vector<1x256xf32>
    %192 = arith.select %62, %190, %191 : vector<1x256xi1>, vector<1x256xf32>
    %193 = vector.broadcast %189 : f32 to vector<1x256xf32>
    %194 = arith.mulf %193, %192 : vector<1x256xf32>
    %195 = arith.addf %188, %194 : vector<1x256xf32>
    %c17 = arith.constant 17 : index
    %196 = memref.load %arg4[%c17] : memref<99xf32, #tpu.memory_space<smem>>
    %197 = vector.extract_strided_slice %80 {offsets = [0, 35], sizes = [1, 256], strides = [1, 1]} : vector<1x358xf32> to vector<1x256xf32>
    %198 = vector.broadcast %196 : f32 to vector<1x256xf32>
    %199 = arith.mulf %198, %197 : vector<1x256xf32>
    %200 = arith.addf %195, %199 : vector<1x256xf32>
    %c18 = arith.constant 18 : index
    %201 = memref.load %arg4[%c18] : memref<99xf32, #tpu.memory_space<smem>>
    %202 = vector.extract_strided_slice %80 {offsets = [0, 36], sizes = [1, 256], strides = [1, 1]} : vector<1x358xf32> to vector<1x256xf32>
    %cst_37 = arith.constant 0.000000e+00 : f32
    %203 = vector.broadcast %cst_37 : f32 to vector<1x256xf32>
    %204 = arith.select %67, %202, %203 : vector<1x256xi1>, vector<1x256xf32>
    %205 = vector.broadcast %201 : f32 to vector<1x256xf32>
    %206 = arith.mulf %205, %204 : vector<1x256xf32>
    %207 = arith.addf %200, %206 : vector<1x256xf32>
    %c19 = arith.constant 19 : index
    %208 = memref.load %arg4[%c19] : memref<99xf32, #tpu.memory_space<smem>>
    %209 = vector.extract_strided_slice %80 {offsets = [0, 37], sizes = [1, 256], strides = [1, 1]} : vector<1x358xf32> to vector<1x256xf32>
    %cst_38 = arith.constant 0.000000e+00 : f32
    %210 = vector.broadcast %cst_38 : f32 to vector<1x256xf32>
    %211 = arith.select %72, %209, %210 : vector<1x256xi1>, vector<1x256xf32>
    %212 = vector.broadcast %208 : f32 to vector<1x256xf32>
    %213 = arith.mulf %212, %211 : vector<1x256xf32>
    %214 = arith.addf %207, %213 : vector<1x256xf32>
    %c20 = arith.constant 20 : index
    %215 = memref.load %arg4[%c20] : memref<99xf32, #tpu.memory_space<smem>>
    %216 = vector.extract_strided_slice %80 {offsets = [0, 38], sizes = [1, 256], strides = [1, 1]} : vector<1x358xf32> to vector<1x256xf32>
    %cst_39 = arith.constant 0.000000e+00 : f32
    %217 = vector.broadcast %cst_39 : f32 to vector<1x256xf32>
    %218 = arith.select %77, %216, %217 : vector<1x256xi1>, vector<1x256xf32>
    %219 = vector.broadcast %215 : f32 to vector<1x256xf32>
    %220 = arith.mulf %219, %218 : vector<1x256xf32>
    %221 = arith.addf %214, %220 : vector<1x256xf32>
    %c21 = arith.constant 21 : index
    %222 = memref.load %arg4[%c21] : memref<99xf32, #tpu.memory_space<smem>>
    %223 = vector.extract_strided_slice %80 {offsets = [0, 48], sizes = [1, 256], strides = [1, 1]} : vector<1x358xf32> to vector<1x256xf32>
    %cst_40 = arith.constant 0.000000e+00 : f32
    %224 = vector.broadcast %cst_40 : f32 to vector<1x256xf32>
    %225 = arith.select %52, %223, %224 : vector<1x256xi1>, vector<1x256xf32>
    %226 = vector.broadcast %222 : f32 to vector<1x256xf32>
    %227 = arith.mulf %226, %225 : vector<1x256xf32>
    %228 = arith.addf %221, %227 : vector<1x256xf32>
    %c22 = arith.constant 22 : index
    %229 = memref.load %arg4[%c22] : memref<99xf32, #tpu.memory_space<smem>>
    %230 = vector.extract_strided_slice %80 {offsets = [0, 49], sizes = [1, 256], strides = [1, 1]} : vector<1x358xf32> to vector<1x256xf32>
    %cst_41 = arith.constant 0.000000e+00 : f32
    %231 = vector.broadcast %cst_41 : f32 to vector<1x256xf32>
    %232 = arith.select %57, %230, %231 : vector<1x256xi1>, vector<1x256xf32>
    %233 = vector.broadcast %229 : f32 to vector<1x256xf32>
    %234 = arith.mulf %233, %232 : vector<1x256xf32>
    %235 = arith.addf %228, %234 : vector<1x256xf32>
    %c23 = arith.constant 23 : index
    %236 = memref.load %arg4[%c23] : memref<99xf32, #tpu.memory_space<smem>>
    %237 = vector.extract_strided_slice %80 {offsets = [0, 50], sizes = [1, 256], strides = [1, 1]} : vector<1x358xf32> to vector<1x256xf32>
    %cst_42 = arith.constant 0.000000e+00 : f32
    %238 = vector.broadcast %cst_42 : f32 to vector<1x256xf32>
    %239 = arith.select %62, %237, %238 : vector<1x256xi1>, vector<1x256xf32>
    %240 = vector.broadcast %236 : f32 to vector<1x256xf32>
    %241 = arith.mulf %240, %239 : vector<1x256xf32>
    %242 = arith.addf %235, %241 : vector<1x256xf32>
    %c24 = arith.constant 24 : index
    %243 = memref.load %arg4[%c24] : memref<99xf32, #tpu.memory_space<smem>>
    %244 = vector.extract_strided_slice %80 {offsets = [0, 51], sizes = [1, 256], strides = [1, 1]} : vector<1x358xf32> to vector<1x256xf32>
    %245 = vector.broadcast %243 : f32 to vector<1x256xf32>
    %246 = arith.mulf %245, %244 : vector<1x256xf32>
    %247 = arith.addf %242, %246 : vector<1x256xf32>
    %c25 = arith.constant 25 : index
    %248 = memref.load %arg4[%c25] : memref<99xf32, #tpu.memory_space<smem>>
    %249 = vector.extract_strided_slice %80 {offsets = [0, 52], sizes = [1, 256], strides = [1, 1]} : vector<1x358xf32> to vector<1x256xf32>
    %cst_43 = arith.constant 0.000000e+00 : f32
    %250 = vector.broadcast %cst_43 : f32 to vector<1x256xf32>
    %251 = arith.select %67, %249, %250 : vector<1x256xi1>, vector<1x256xf32>
    %252 = vector.broadcast %248 : f32 to vector<1x256xf32>
    %253 = arith.mulf %252, %251 : vector<1x256xf32>
    %254 = arith.addf %247, %253 : vector<1x256xf32>
    %c26 = arith.constant 26 : index
    %255 = memref.load %arg4[%c26] : memref<99xf32, #tpu.memory_space<smem>>
    %256 = vector.extract_strided_slice %80 {offsets = [0, 53], sizes = [1, 256], strides = [1, 1]} : vector<1x358xf32> to vector<1x256xf32>
    %cst_44 = arith.constant 0.000000e+00 : f32
    %257 = vector.broadcast %cst_44 : f32 to vector<1x256xf32>
    %258 = arith.select %72, %256, %257 : vector<1x256xi1>, vector<1x256xf32>
    %259 = vector.broadcast %255 : f32 to vector<1x256xf32>
    %260 = arith.mulf %259, %258 : vector<1x256xf32>
    %261 = arith.addf %254, %260 : vector<1x256xf32>
    %c27 = arith.constant 27 : index
    %262 = memref.load %arg4[%c27] : memref<99xf32, #tpu.memory_space<smem>>
    %263 = vector.extract_strided_slice %80 {offsets = [0, 54], sizes = [1, 256], strides = [1, 1]} : vector<1x358xf32> to vector<1x256xf32>
    %cst_45 = arith.constant 0.000000e+00 : f32
    %264 = vector.broadcast %cst_45 : f32 to vector<1x256xf32>
    %265 = arith.select %77, %263, %264 : vector<1x256xi1>, vector<1x256xf32>
    %266 = vector.broadcast %262 : f32 to vector<1x256xf32>
    %267 = arith.mulf %266, %265 : vector<1x256xf32>
    %268 = arith.addf %261, %267 : vector<1x256xf32>
    %c28 = arith.constant 28 : index
    %269 = memref.load %arg4[%c28] : memref<99xf32, #tpu.memory_space<smem>>
    %270 = vector.extract_strided_slice %80 {offsets = [0, 64], sizes = [1, 256], strides = [1, 1]} : vector<1x358xf32> to vector<1x256xf32>
    %cst_46 = arith.constant 0.000000e+00 : f32
    %271 = vector.broadcast %cst_46 : f32 to vector<1x256xf32>
    %272 = arith.select %52, %270, %271 : vector<1x256xi1>, vector<1x256xf32>
    %273 = vector.broadcast %269 : f32 to vector<1x256xf32>
    %274 = arith.mulf %273, %272 : vector<1x256xf32>
    %275 = arith.addf %268, %274 : vector<1x256xf32>
    %c29 = arith.constant 29 : index
    %276 = memref.load %arg4[%c29] : memref<99xf32, #tpu.memory_space<smem>>
    %277 = vector.extract_strided_slice %80 {offsets = [0, 65], sizes = [1, 256], strides = [1, 1]} : vector<1x358xf32> to vector<1x256xf32>
    %cst_47 = arith.constant 0.000000e+00 : f32
    %278 = vector.broadcast %cst_47 : f32 to vector<1x256xf32>
    %279 = arith.select %57, %277, %278 : vector<1x256xi1>, vector<1x256xf32>
    %280 = vector.broadcast %276 : f32 to vector<1x256xf32>
    %281 = arith.mulf %280, %279 : vector<1x256xf32>
    %282 = arith.addf %275, %281 : vector<1x256xf32>
    %c30 = arith.constant 30 : index
    %283 = memref.load %arg4[%c30] : memref<99xf32, #tpu.memory_space<smem>>
    %284 = vector.extract_strided_slice %80 {offsets = [0, 66], sizes = [1, 256], strides = [1, 1]} : vector<1x358xf32> to vector<1x256xf32>
    %cst_48 = arith.constant 0.000000e+00 : f32
    %285 = vector.broadcast %cst_48 : f32 to vector<1x256xf32>
    %286 = arith.select %62, %284, %285 : vector<1x256xi1>, vector<1x256xf32>
    %287 = vector.broadcast %283 : f32 to vector<1x256xf32>
    %288 = arith.mulf %287, %286 : vector<1x256xf32>
    %289 = arith.addf %282, %288 : vector<1x256xf32>
    %c31 = arith.constant 31 : index
    %290 = memref.load %arg4[%c31] : memref<99xf32, #tpu.memory_space<smem>>
    %291 = vector.extract_strided_slice %80 {offsets = [0, 67], sizes = [1, 256], strides = [1, 1]} : vector<1x358xf32> to vector<1x256xf32>
    %292 = vector.broadcast %290 : f32 to vector<1x256xf32>
    %293 = arith.mulf %292, %291 : vector<1x256xf32>
    %294 = arith.addf %289, %293 : vector<1x256xf32>
    %c32 = arith.constant 32 : index
    %295 = memref.load %arg4[%c32] : memref<99xf32, #tpu.memory_space<smem>>
    %296 = vector.extract_strided_slice %80 {offsets = [0, 68], sizes = [1, 256], strides = [1, 1]} : vector<1x358xf32> to vector<1x256xf32>
    %cst_49 = arith.constant 0.000000e+00 : f32
    %297 = vector.broadcast %cst_49 : f32 to vector<1x256xf32>
    %298 = arith.select %67, %296, %297 : vector<1x256xi1>, vector<1x256xf32>
    %299 = vector.broadcast %295 : f32 to vector<1x256xf32>
    %300 = arith.mulf %299, %298 : vector<1x256xf32>
    %301 = arith.addf %294, %300 : vector<1x256xf32>
    %c33 = arith.constant 33 : index
    %302 = memref.load %arg4[%c33] : memref<99xf32, #tpu.memory_space<smem>>
    %303 = vector.extract_strided_slice %80 {offsets = [0, 69], sizes = [1, 256], strides = [1, 1]} : vector<1x358xf32> to vector<1x256xf32>
    %cst_50 = arith.constant 0.000000e+00 : f32
    %304 = vector.broadcast %cst_50 : f32 to vector<1x256xf32>
    %305 = arith.select %72, %303, %304 : vector<1x256xi1>, vector<1x256xf32>
    %306 = vector.broadcast %302 : f32 to vector<1x256xf32>
    %307 = arith.mulf %306, %305 : vector<1x256xf32>
    %308 = arith.addf %301, %307 : vector<1x256xf32>
    %c34 = arith.constant 34 : index
    %309 = memref.load %arg4[%c34] : memref<99xf32, #tpu.memory_space<smem>>
    %310 = vector.extract_strided_slice %80 {offsets = [0, 70], sizes = [1, 256], strides = [1, 1]} : vector<1x358xf32> to vector<1x256xf32>
    %cst_51 = arith.constant 0.000000e+00 : f32
    %311 = vector.broadcast %cst_51 : f32 to vector<1x256xf32>
    %312 = arith.select %77, %310, %311 : vector<1x256xi1>, vector<1x256xf32>
    %313 = vector.broadcast %309 : f32 to vector<1x256xf32>
    %314 = arith.mulf %313, %312 : vector<1x256xf32>
    %315 = arith.addf %308, %314 : vector<1x256xf32>
    %c35 = arith.constant 35 : index
    %316 = memref.load %arg4[%c35] : memref<99xf32, #tpu.memory_space<smem>>
    %317 = vector.extract_strided_slice %80 {offsets = [0, 80], sizes = [1, 256], strides = [1, 1]} : vector<1x358xf32> to vector<1x256xf32>
    %cst_52 = arith.constant 0.000000e+00 : f32
    %318 = vector.broadcast %cst_52 : f32 to vector<1x256xf32>
    %319 = arith.select %52, %317, %318 : vector<1x256xi1>, vector<1x256xf32>
    %320 = vector.broadcast %316 : f32 to vector<1x256xf32>
    %321 = arith.mulf %320, %319 : vector<1x256xf32>
    %322 = arith.addf %315, %321 : vector<1x256xf32>
    %c36 = arith.constant 36 : index
    %323 = memref.load %arg4[%c36] : memref<99xf32, #tpu.memory_space<smem>>
    %324 = vector.extract_strided_slice %80 {offsets = [0, 81], sizes = [1, 256], strides = [1, 1]} : vector<1x358xf32> to vector<1x256xf32>
    %cst_53 = arith.constant 0.000000e+00 : f32
    %325 = vector.broadcast %cst_53 : f32 to vector<1x256xf32>
    %326 = arith.select %57, %324, %325 : vector<1x256xi1>, vector<1x256xf32>
    %327 = vector.broadcast %323 : f32 to vector<1x256xf32>
    %328 = arith.mulf %327, %326 : vector<1x256xf32>
    %329 = arith.addf %322, %328 : vector<1x256xf32>
    %c37 = arith.constant 37 : index
    %330 = memref.load %arg4[%c37] : memref<99xf32, #tpu.memory_space<smem>>
    %331 = vector.extract_strided_slice %80 {offsets = [0, 82], sizes = [1, 256], strides = [1, 1]} : vector<1x358xf32> to vector<1x256xf32>
    %cst_54 = arith.constant 0.000000e+00 : f32
    %332 = vector.broadcast %cst_54 : f32 to vector<1x256xf32>
    %333 = arith.select %62, %331, %332 : vector<1x256xi1>, vector<1x256xf32>
    %334 = vector.broadcast %330 : f32 to vector<1x256xf32>
    %335 = arith.mulf %334, %333 : vector<1x256xf32>
    %336 = arith.addf %329, %335 : vector<1x256xf32>
    %c38 = arith.constant 38 : index
    %337 = memref.load %arg4[%c38] : memref<99xf32, #tpu.memory_space<smem>>
    %338 = vector.extract_strided_slice %80 {offsets = [0, 83], sizes = [1, 256], strides = [1, 1]} : vector<1x358xf32> to vector<1x256xf32>
    %339 = vector.broadcast %337 : f32 to vector<1x256xf32>
    %340 = arith.mulf %339, %338 : vector<1x256xf32>
    %341 = arith.addf %336, %340 : vector<1x256xf32>
    %c39 = arith.constant 39 : index
    %342 = memref.load %arg4[%c39] : memref<99xf32, #tpu.memory_space<smem>>
    %343 = vector.extract_strided_slice %80 {offsets = [0, 84], sizes = [1, 256], strides = [1, 1]} : vector<1x358xf32> to vector<1x256xf32>
    %cst_55 = arith.constant 0.000000e+00 : f32
    %344 = vector.broadcast %cst_55 : f32 to vector<1x256xf32>
    %345 = arith.select %67, %343, %344 : vector<1x256xi1>, vector<1x256xf32>
    %346 = vector.broadcast %342 : f32 to vector<1x256xf32>
    %347 = arith.mulf %346, %345 : vector<1x256xf32>
    %348 = arith.addf %341, %347 : vector<1x256xf32>
    %c40 = arith.constant 40 : index
    %349 = memref.load %arg4[%c40] : memref<99xf32, #tpu.memory_space<smem>>
    %350 = vector.extract_strided_slice %80 {offsets = [0, 85], sizes = [1, 256], strides = [1, 1]} : vector<1x358xf32> to vector<1x256xf32>
    %cst_56 = arith.constant 0.000000e+00 : f32
    %351 = vector.broadcast %cst_56 : f32 to vector<1x256xf32>
    %352 = arith.select %72, %350, %351 : vector<1x256xi1>, vector<1x256xf32>
    %353 = vector.broadcast %349 : f32 to vector<1x256xf32>
    %354 = arith.mulf %353, %352 : vector<1x256xf32>
    %355 = arith.addf %348, %354 : vector<1x256xf32>
    %c41 = arith.constant 41 : index
    %356 = memref.load %arg4[%c41] : memref<99xf32, #tpu.memory_space<smem>>
    %357 = vector.extract_strided_slice %80 {offsets = [0, 86], sizes = [1, 256], strides = [1, 1]} : vector<1x358xf32> to vector<1x256xf32>
    %cst_57 = arith.constant 0.000000e+00 : f32
    %358 = vector.broadcast %cst_57 : f32 to vector<1x256xf32>
    %359 = arith.select %77, %357, %358 : vector<1x256xi1>, vector<1x256xf32>
    %360 = vector.broadcast %356 : f32 to vector<1x256xf32>
    %361 = arith.mulf %360, %359 : vector<1x256xf32>
    %362 = arith.addf %355, %361 : vector<1x256xf32>
    %c42 = arith.constant 42 : index
    %363 = memref.load %arg4[%c42] : memref<99xf32, #tpu.memory_space<smem>>
    %364 = vector.extract_strided_slice %80 {offsets = [0, 96], sizes = [1, 256], strides = [1, 1]} : vector<1x358xf32> to vector<1x256xf32>
    %cst_58 = arith.constant 0.000000e+00 : f32
    %365 = vector.broadcast %cst_58 : f32 to vector<1x256xf32>
    %366 = arith.select %52, %364, %365 : vector<1x256xi1>, vector<1x256xf32>
    %367 = vector.broadcast %363 : f32 to vector<1x256xf32>
    %368 = arith.mulf %367, %366 : vector<1x256xf32>
    %369 = arith.addf %362, %368 : vector<1x256xf32>
    %c43 = arith.constant 43 : index
    %370 = memref.load %arg4[%c43] : memref<99xf32, #tpu.memory_space<smem>>
    %371 = vector.extract_strided_slice %80 {offsets = [0, 97], sizes = [1, 256], strides = [1, 1]} : vector<1x358xf32> to vector<1x256xf32>
    %cst_59 = arith.constant 0.000000e+00 : f32
    %372 = vector.broadcast %cst_59 : f32 to vector<1x256xf32>
    %373 = arith.select %57, %371, %372 : vector<1x256xi1>, vector<1x256xf32>
    %374 = vector.broadcast %370 : f32 to vector<1x256xf32>
    %375 = arith.mulf %374, %373 : vector<1x256xf32>
    %376 = arith.addf %369, %375 : vector<1x256xf32>
    %c44 = arith.constant 44 : index
    %377 = memref.load %arg4[%c44] : memref<99xf32, #tpu.memory_space<smem>>
    %378 = vector.extract_strided_slice %80 {offsets = [0, 98], sizes = [1, 256], strides = [1, 1]} : vector<1x358xf32> to vector<1x256xf32>
    %cst_60 = arith.constant 0.000000e+00 : f32
    %379 = vector.broadcast %cst_60 : f32 to vector<1x256xf32>
    %380 = arith.select %62, %378, %379 : vector<1x256xi1>, vector<1x256xf32>
    %381 = vector.broadcast %377 : f32 to vector<1x256xf32>
    %382 = arith.mulf %381, %380 : vector<1x256xf32>
    %383 = arith.addf %376, %382 : vector<1x256xf32>
    %c45 = arith.constant 45 : index
    %384 = memref.load %arg4[%c45] : memref<99xf32, #tpu.memory_space<smem>>
    %385 = vector.extract_strided_slice %80 {offsets = [0, 99], sizes = [1, 256], strides = [1, 1]} : vector<1x358xf32> to vector<1x256xf32>
    %386 = vector.broadcast %384 : f32 to vector<1x256xf32>
    %387 = arith.mulf %386, %385 : vector<1x256xf32>
    %388 = arith.addf %383, %387 : vector<1x256xf32>
    %c46 = arith.constant 46 : index
    %389 = memref.load %arg4[%c46] : memref<99xf32, #tpu.memory_space<smem>>
    %390 = vector.extract_strided_slice %80 {offsets = [0, 100], sizes = [1, 256], strides = [1, 1]} : vector<1x358xf32> to vector<1x256xf32>
    %cst_61 = arith.constant 0.000000e+00 : f32
    %391 = vector.broadcast %cst_61 : f32 to vector<1x256xf32>
    %392 = arith.select %67, %390, %391 : vector<1x256xi1>, vector<1x256xf32>
    %393 = vector.broadcast %389 : f32 to vector<1x256xf32>
    %394 = arith.mulf %393, %392 : vector<1x256xf32>
    %395 = arith.addf %388, %394 : vector<1x256xf32>
    %c47 = arith.constant 47 : index
    %396 = memref.load %arg4[%c47] : memref<99xf32, #tpu.memory_space<smem>>
    %397 = vector.extract_strided_slice %80 {offsets = [0, 101], sizes = [1, 256], strides = [1, 1]} : vector<1x358xf32> to vector<1x256xf32>
    %cst_62 = arith.constant 0.000000e+00 : f32
    %398 = vector.broadcast %cst_62 : f32 to vector<1x256xf32>
    %399 = arith.select %72, %397, %398 : vector<1x256xi1>, vector<1x256xf32>
    %400 = vector.broadcast %396 : f32 to vector<1x256xf32>
    %401 = arith.mulf %400, %399 : vector<1x256xf32>
    %402 = arith.addf %395, %401 : vector<1x256xf32>
    %c48 = arith.constant 48 : index
    %403 = memref.load %arg4[%c48] : memref<99xf32, #tpu.memory_space<smem>>
    %404 = vector.extract_strided_slice %80 {offsets = [0, 102], sizes = [1, 256], strides = [1, 1]} : vector<1x358xf32> to vector<1x256xf32>
    %cst_63 = arith.constant 0.000000e+00 : f32
    %405 = vector.broadcast %cst_63 : f32 to vector<1x256xf32>
    %406 = arith.select %77, %404, %405 : vector<1x256xi1>, vector<1x256xf32>
    %407 = vector.broadcast %403 : f32 to vector<1x256xf32>
    %408 = arith.mulf %407, %406 : vector<1x256xf32>
    %409 = arith.addf %402, %408 : vector<1x256xf32>
    %410 = tpu.concatenate %78, %30, %78 in 1 : vector<1x51xf32>, vector<1x256xf32>, vector<1x51xf32> -> vector<1x358xf32>
    %c49 = arith.constant 49 : index
    %411 = memref.load %arg4[%c49] : memref<99xf32, #tpu.memory_space<smem>>
    %412 = vector.extract_strided_slice %410 {offsets = [0, 0], sizes = [1, 256], strides = [1, 1]} : vector<1x358xf32> to vector<1x256xf32>
    %cst_64 = arith.constant 0.000000e+00 : f32
    %413 = vector.broadcast %cst_64 : f32 to vector<1x256xf32>
    %414 = arith.select %52, %412, %413 : vector<1x256xi1>, vector<1x256xf32>
    %415 = vector.broadcast %411 : f32 to vector<1x256xf32>
    %416 = arith.mulf %415, %414 : vector<1x256xf32>
    %417 = arith.addf %409, %416 : vector<1x256xf32>
    %c50 = arith.constant 50 : index
    %418 = memref.load %arg4[%c50] : memref<99xf32, #tpu.memory_space<smem>>
    %419 = vector.extract_strided_slice %410 {offsets = [0, 1], sizes = [1, 256], strides = [1, 1]} : vector<1x358xf32> to vector<1x256xf32>
    %cst_65 = arith.constant 0.000000e+00 : f32
    %420 = vector.broadcast %cst_65 : f32 to vector<1x256xf32>
    %421 = arith.select %57, %419, %420 : vector<1x256xi1>, vector<1x256xf32>
    %422 = vector.broadcast %418 : f32 to vector<1x256xf32>
    %423 = arith.mulf %422, %421 : vector<1x256xf32>
    %424 = arith.addf %417, %423 : vector<1x256xf32>
    %c51 = arith.constant 51 : index
    %425 = memref.load %arg4[%c51] : memref<99xf32, #tpu.memory_space<smem>>
    %426 = vector.extract_strided_slice %410 {offsets = [0, 2], sizes = [1, 256], strides = [1, 1]} : vector<1x358xf32> to vector<1x256xf32>
    %cst_66 = arith.constant 0.000000e+00 : f32
    %427 = vector.broadcast %cst_66 : f32 to vector<1x256xf32>
    %428 = arith.select %62, %426, %427 : vector<1x256xi1>, vector<1x256xf32>
    %429 = vector.broadcast %425 : f32 to vector<1x256xf32>
    %430 = arith.mulf %429, %428 : vector<1x256xf32>
    %431 = arith.addf %424, %430 : vector<1x256xf32>
    %c52 = arith.constant 52 : index
    %432 = memref.load %arg4[%c52] : memref<99xf32, #tpu.memory_space<smem>>
    %433 = vector.extract_strided_slice %410 {offsets = [0, 3], sizes = [1, 256], strides = [1, 1]} : vector<1x358xf32> to vector<1x256xf32>
    %434 = vector.broadcast %432 : f32 to vector<1x256xf32>
    %435 = arith.mulf %434, %433 : vector<1x256xf32>
    %436 = arith.addf %431, %435 : vector<1x256xf32>
    %c53 = arith.constant 53 : index
    %437 = memref.load %arg4[%c53] : memref<99xf32, #tpu.memory_space<smem>>
    %438 = vector.extract_strided_slice %410 {offsets = [0, 4], sizes = [1, 256], strides = [1, 1]} : vector<1x358xf32> to vector<1x256xf32>
    %cst_67 = arith.constant 0.000000e+00 : f32
    %439 = vector.broadcast %cst_67 : f32 to vector<1x256xf32>
    %440 = arith.select %67, %438, %439 : vector<1x256xi1>, vector<1x256xf32>
    %441 = vector.broadcast %437 : f32 to vector<1x256xf32>
    %442 = arith.mulf %441, %440 : vector<1x256xf32>
    %443 = arith.addf %436, %442 : vector<1x256xf32>
    %c54 = arith.constant 54 : index
    %444 = memref.load %arg4[%c54] : memref<99xf32, #tpu.memory_space<smem>>
    %445 = vector.extract_strided_slice %410 {offsets = [0, 5], sizes = [1, 256], strides = [1, 1]} : vector<1x358xf32> to vector<1x256xf32>
    %cst_68 = arith.constant 0.000000e+00 : f32
    %446 = vector.broadcast %cst_68 : f32 to vector<1x256xf32>
    %447 = arith.select %72, %445, %446 : vector<1x256xi1>, vector<1x256xf32>
    %448 = vector.broadcast %444 : f32 to vector<1x256xf32>
    %449 = arith.mulf %448, %447 : vector<1x256xf32>
    %450 = arith.addf %443, %449 : vector<1x256xf32>
    %c55 = arith.constant 55 : index
    %451 = memref.load %arg4[%c55] : memref<99xf32, #tpu.memory_space<smem>>
    %452 = vector.extract_strided_slice %410 {offsets = [0, 6], sizes = [1, 256], strides = [1, 1]} : vector<1x358xf32> to vector<1x256xf32>
    %cst_69 = arith.constant 0.000000e+00 : f32
    %453 = vector.broadcast %cst_69 : f32 to vector<1x256xf32>
    %454 = arith.select %77, %452, %453 : vector<1x256xi1>, vector<1x256xf32>
    %455 = vector.broadcast %451 : f32 to vector<1x256xf32>
    %456 = arith.mulf %455, %454 : vector<1x256xf32>
    %457 = arith.addf %450, %456 : vector<1x256xf32>
    %c56 = arith.constant 56 : index
    %458 = memref.load %arg4[%c56] : memref<99xf32, #tpu.memory_space<smem>>
    %459 = vector.extract_strided_slice %410 {offsets = [0, 16], sizes = [1, 256], strides = [1, 1]} : vector<1x358xf32> to vector<1x256xf32>
    %cst_70 = arith.constant 0.000000e+00 : f32
    %460 = vector.broadcast %cst_70 : f32 to vector<1x256xf32>
    %461 = arith.select %52, %459, %460 : vector<1x256xi1>, vector<1x256xf32>
    %462 = vector.broadcast %458 : f32 to vector<1x256xf32>
    %463 = arith.mulf %462, %461 : vector<1x256xf32>
    %464 = arith.addf %457, %463 : vector<1x256xf32>
    %c57 = arith.constant 57 : index
    %465 = memref.load %arg4[%c57] : memref<99xf32, #tpu.memory_space<smem>>
    %466 = vector.extract_strided_slice %410 {offsets = [0, 17], sizes = [1, 256], strides = [1, 1]} : vector<1x358xf32> to vector<1x256xf32>
    %cst_71 = arith.constant 0.000000e+00 : f32
    %467 = vector.broadcast %cst_71 : f32 to vector<1x256xf32>
    %468 = arith.select %57, %466, %467 : vector<1x256xi1>, vector<1x256xf32>
    %469 = vector.broadcast %465 : f32 to vector<1x256xf32>
    %470 = arith.mulf %469, %468 : vector<1x256xf32>
    %471 = arith.addf %464, %470 : vector<1x256xf32>
    %c58 = arith.constant 58 : index
    %472 = memref.load %arg4[%c58] : memref<99xf32, #tpu.memory_space<smem>>
    %473 = vector.extract_strided_slice %410 {offsets = [0, 18], sizes = [1, 256], strides = [1, 1]} : vector<1x358xf32> to vector<1x256xf32>
    %cst_72 = arith.constant 0.000000e+00 : f32
    %474 = vector.broadcast %cst_72 : f32 to vector<1x256xf32>
    %475 = arith.select %62, %473, %474 : vector<1x256xi1>, vector<1x256xf32>
    %476 = vector.broadcast %472 : f32 to vector<1x256xf32>
    %477 = arith.mulf %476, %475 : vector<1x256xf32>
    %478 = arith.addf %471, %477 : vector<1x256xf32>
    %c59 = arith.constant 59 : index
    %479 = memref.load %arg4[%c59] : memref<99xf32, #tpu.memory_space<smem>>
    %480 = vector.extract_strided_slice %410 {offsets = [0, 19], sizes = [1, 256], strides = [1, 1]} : vector<1x358xf32> to vector<1x256xf32>
    %481 = vector.broadcast %479 : f32 to vector<1x256xf32>
    %482 = arith.mulf %481, %480 : vector<1x256xf32>
    %483 = arith.addf %478, %482 : vector<1x256xf32>
    %c60 = arith.constant 60 : index
    %484 = memref.load %arg4[%c60] : memref<99xf32, #tpu.memory_space<smem>>
    %485 = vector.extract_strided_slice %410 {offsets = [0, 20], sizes = [1, 256], strides = [1, 1]} : vector<1x358xf32> to vector<1x256xf32>
    %cst_73 = arith.constant 0.000000e+00 : f32
    %486 = vector.broadcast %cst_73 : f32 to vector<1x256xf32>
    %487 = arith.select %67, %485, %486 : vector<1x256xi1>, vector<1x256xf32>
    %488 = vector.broadcast %484 : f32 to vector<1x256xf32>
    %489 = arith.mulf %488, %487 : vector<1x256xf32>
    %490 = arith.addf %483, %489 : vector<1x256xf32>
    %c61 = arith.constant 61 : index
    %491 = memref.load %arg4[%c61] : memref<99xf32, #tpu.memory_space<smem>>
    %492 = vector.extract_strided_slice %410 {offsets = [0, 21], sizes = [1, 256], strides = [1, 1]} : vector<1x358xf32> to vector<1x256xf32>
    %cst_74 = arith.constant 0.000000e+00 : f32
    %493 = vector.broadcast %cst_74 : f32 to vector<1x256xf32>
    %494 = arith.select %72, %492, %493 : vector<1x256xi1>, vector<1x256xf32>
    %495 = vector.broadcast %491 : f32 to vector<1x256xf32>
    %496 = arith.mulf %495, %494 : vector<1x256xf32>
    %497 = arith.addf %490, %496 : vector<1x256xf32>
    %c62 = arith.constant 62 : index
    %498 = memref.load %arg4[%c62] : memref<99xf32, #tpu.memory_space<smem>>
    %499 = vector.extract_strided_slice %410 {offsets = [0, 22], sizes = [1, 256], strides = [1, 1]} : vector<1x358xf32> to vector<1x256xf32>
    %cst_75 = arith.constant 0.000000e+00 : f32
    %500 = vector.broadcast %cst_75 : f32 to vector<1x256xf32>
    %501 = arith.select %77, %499, %500 : vector<1x256xi1>, vector<1x256xf32>
    %502 = vector.broadcast %498 : f32 to vector<1x256xf32>
    %503 = arith.mulf %502, %501 : vector<1x256xf32>
    %504 = arith.addf %497, %503 : vector<1x256xf32>
    %c63 = arith.constant 63 : index
    %505 = memref.load %arg4[%c63] : memref<99xf32, #tpu.memory_space<smem>>
    %506 = vector.extract_strided_slice %410 {offsets = [0, 32], sizes = [1, 256], strides = [1, 1]} : vector<1x358xf32> to vector<1x256xf32>
    %cst_76 = arith.constant 0.000000e+00 : f32
    %507 = vector.broadcast %cst_76 : f32 to vector<1x256xf32>
    %508 = arith.select %52, %506, %507 : vector<1x256xi1>, vector<1x256xf32>
    %509 = vector.broadcast %505 : f32 to vector<1x256xf32>
    %510 = arith.mulf %509, %508 : vector<1x256xf32>
    %511 = arith.addf %504, %510 : vector<1x256xf32>
    %c64 = arith.constant 64 : index
    %512 = memref.load %arg4[%c64] : memref<99xf32, #tpu.memory_space<smem>>
    %513 = vector.extract_strided_slice %410 {offsets = [0, 33], sizes = [1, 256], strides = [1, 1]} : vector<1x358xf32> to vector<1x256xf32>
    %cst_77 = arith.constant 0.000000e+00 : f32
    %514 = vector.broadcast %cst_77 : f32 to vector<1x256xf32>
    %515 = arith.select %57, %513, %514 : vector<1x256xi1>, vector<1x256xf32>
    %516 = vector.broadcast %512 : f32 to vector<1x256xf32>
    %517 = arith.mulf %516, %515 : vector<1x256xf32>
    %518 = arith.addf %511, %517 : vector<1x256xf32>
    %c65 = arith.constant 65 : index
    %519 = memref.load %arg4[%c65] : memref<99xf32, #tpu.memory_space<smem>>
    %520 = vector.extract_strided_slice %410 {offsets = [0, 34], sizes = [1, 256], strides = [1, 1]} : vector<1x358xf32> to vector<1x256xf32>
    %cst_78 = arith.constant 0.000000e+00 : f32
    %521 = vector.broadcast %cst_78 : f32 to vector<1x256xf32>
    %522 = arith.select %62, %520, %521 : vector<1x256xi1>, vector<1x256xf32>
    %523 = vector.broadcast %519 : f32 to vector<1x256xf32>
    %524 = arith.mulf %523, %522 : vector<1x256xf32>
    %525 = arith.addf %518, %524 : vector<1x256xf32>
    %c66 = arith.constant 66 : index
    %526 = memref.load %arg4[%c66] : memref<99xf32, #tpu.memory_space<smem>>
    %527 = vector.extract_strided_slice %410 {offsets = [0, 35], sizes = [1, 256], strides = [1, 1]} : vector<1x358xf32> to vector<1x256xf32>
    %528 = vector.broadcast %526 : f32 to vector<1x256xf32>
    %529 = arith.mulf %528, %527 : vector<1x256xf32>
    %530 = arith.addf %525, %529 : vector<1x256xf32>
    %c67 = arith.constant 67 : index
    %531 = memref.load %arg4[%c67] : memref<99xf32, #tpu.memory_space<smem>>
    %532 = vector.extract_strided_slice %410 {offsets = [0, 36], sizes = [1, 256], strides = [1, 1]} : vector<1x358xf32> to vector<1x256xf32>
    %cst_79 = arith.constant 0.000000e+00 : f32
    %533 = vector.broadcast %cst_79 : f32 to vector<1x256xf32>
    %534 = arith.select %67, %532, %533 : vector<1x256xi1>, vector<1x256xf32>
    %535 = vector.broadcast %531 : f32 to vector<1x256xf32>
    %536 = arith.mulf %535, %534 : vector<1x256xf32>
    %537 = arith.addf %530, %536 : vector<1x256xf32>
    %c68 = arith.constant 68 : index
    %538 = memref.load %arg4[%c68] : memref<99xf32, #tpu.memory_space<smem>>
    %539 = vector.extract_strided_slice %410 {offsets = [0, 37], sizes = [1, 256], strides = [1, 1]} : vector<1x358xf32> to vector<1x256xf32>
    %cst_80 = arith.constant 0.000000e+00 : f32
    %540 = vector.broadcast %cst_80 : f32 to vector<1x256xf32>
    %541 = arith.select %72, %539, %540 : vector<1x256xi1>, vector<1x256xf32>
    %542 = vector.broadcast %538 : f32 to vector<1x256xf32>
    %543 = arith.mulf %542, %541 : vector<1x256xf32>
    %544 = arith.addf %537, %543 : vector<1x256xf32>
    %c69 = arith.constant 69 : index
    %545 = memref.load %arg4[%c69] : memref<99xf32, #tpu.memory_space<smem>>
    %546 = vector.extract_strided_slice %410 {offsets = [0, 38], sizes = [1, 256], strides = [1, 1]} : vector<1x358xf32> to vector<1x256xf32>
    %cst_81 = arith.constant 0.000000e+00 : f32
    %547 = vector.broadcast %cst_81 : f32 to vector<1x256xf32>
    %548 = arith.select %77, %546, %547 : vector<1x256xi1>, vector<1x256xf32>
    %549 = vector.broadcast %545 : f32 to vector<1x256xf32>
    %550 = arith.mulf %549, %548 : vector<1x256xf32>
    %551 = arith.addf %544, %550 : vector<1x256xf32>
    %c70 = arith.constant 70 : index
    %552 = memref.load %arg4[%c70] : memref<99xf32, #tpu.memory_space<smem>>
    %553 = vector.extract_strided_slice %410 {offsets = [0, 48], sizes = [1, 256], strides = [1, 1]} : vector<1x358xf32> to vector<1x256xf32>
    %cst_82 = arith.constant 0.000000e+00 : f32
    %554 = vector.broadcast %cst_82 : f32 to vector<1x256xf32>
    %555 = arith.select %52, %553, %554 : vector<1x256xi1>, vector<1x256xf32>
    %556 = vector.broadcast %552 : f32 to vector<1x256xf32>
    %557 = arith.mulf %556, %555 : vector<1x256xf32>
    %558 = arith.addf %551, %557 : vector<1x256xf32>
    %c71 = arith.constant 71 : index
    %559 = memref.load %arg4[%c71] : memref<99xf32, #tpu.memory_space<smem>>
    %560 = vector.extract_strided_slice %410 {offsets = [0, 49], sizes = [1, 256], strides = [1, 1]} : vector<1x358xf32> to vector<1x256xf32>
    %cst_83 = arith.constant 0.000000e+00 : f32
    %561 = vector.broadcast %cst_83 : f32 to vector<1x256xf32>
    %562 = arith.select %57, %560, %561 : vector<1x256xi1>, vector<1x256xf32>
    %563 = vector.broadcast %559 : f32 to vector<1x256xf32>
    %564 = arith.mulf %563, %562 : vector<1x256xf32>
    %565 = arith.addf %558, %564 : vector<1x256xf32>
    %c72 = arith.constant 72 : index
    %566 = memref.load %arg4[%c72] : memref<99xf32, #tpu.memory_space<smem>>
    %567 = vector.extract_strided_slice %410 {offsets = [0, 50], sizes = [1, 256], strides = [1, 1]} : vector<1x358xf32> to vector<1x256xf32>
    %cst_84 = arith.constant 0.000000e+00 : f32
    %568 = vector.broadcast %cst_84 : f32 to vector<1x256xf32>
    %569 = arith.select %62, %567, %568 : vector<1x256xi1>, vector<1x256xf32>
    %570 = vector.broadcast %566 : f32 to vector<1x256xf32>
    %571 = arith.mulf %570, %569 : vector<1x256xf32>
    %572 = arith.addf %565, %571 : vector<1x256xf32>
    %c73 = arith.constant 73 : index
    %573 = memref.load %arg4[%c73] : memref<99xf32, #tpu.memory_space<smem>>
    %574 = vector.extract_strided_slice %410 {offsets = [0, 51], sizes = [1, 256], strides = [1, 1]} : vector<1x358xf32> to vector<1x256xf32>
    %575 = vector.broadcast %573 : f32 to vector<1x256xf32>
    %576 = arith.mulf %575, %574 : vector<1x256xf32>
    %577 = arith.addf %572, %576 : vector<1x256xf32>
    %c74 = arith.constant 74 : index
    %578 = memref.load %arg4[%c74] : memref<99xf32, #tpu.memory_space<smem>>
    %579 = vector.extract_strided_slice %410 {offsets = [0, 52], sizes = [1, 256], strides = [1, 1]} : vector<1x358xf32> to vector<1x256xf32>
    %cst_85 = arith.constant 0.000000e+00 : f32
    %580 = vector.broadcast %cst_85 : f32 to vector<1x256xf32>
    %581 = arith.select %67, %579, %580 : vector<1x256xi1>, vector<1x256xf32>
    %582 = vector.broadcast %578 : f32 to vector<1x256xf32>
    %583 = arith.mulf %582, %581 : vector<1x256xf32>
    %584 = arith.addf %577, %583 : vector<1x256xf32>
    %c75 = arith.constant 75 : index
    %585 = memref.load %arg4[%c75] : memref<99xf32, #tpu.memory_space<smem>>
    %586 = vector.extract_strided_slice %410 {offsets = [0, 53], sizes = [1, 256], strides = [1, 1]} : vector<1x358xf32> to vector<1x256xf32>
    %cst_86 = arith.constant 0.000000e+00 : f32
    %587 = vector.broadcast %cst_86 : f32 to vector<1x256xf32>
    %588 = arith.select %72, %586, %587 : vector<1x256xi1>, vector<1x256xf32>
    %589 = vector.broadcast %585 : f32 to vector<1x256xf32>
    %590 = arith.mulf %589, %588 : vector<1x256xf32>
    %591 = arith.addf %584, %590 : vector<1x256xf32>
    %c76 = arith.constant 76 : index
    %592 = memref.load %arg4[%c76] : memref<99xf32, #tpu.memory_space<smem>>
    %593 = vector.extract_strided_slice %410 {offsets = [0, 54], sizes = [1, 256], strides = [1, 1]} : vector<1x358xf32> to vector<1x256xf32>
    %cst_87 = arith.constant 0.000000e+00 : f32
    %594 = vector.broadcast %cst_87 : f32 to vector<1x256xf32>
    %595 = arith.select %77, %593, %594 : vector<1x256xi1>, vector<1x256xf32>
    %596 = vector.broadcast %592 : f32 to vector<1x256xf32>
    %597 = arith.mulf %596, %595 : vector<1x256xf32>
    %598 = arith.addf %591, %597 : vector<1x256xf32>
    %c77 = arith.constant 77 : index
    %599 = memref.load %arg4[%c77] : memref<99xf32, #tpu.memory_space<smem>>
    %600 = vector.extract_strided_slice %410 {offsets = [0, 64], sizes = [1, 256], strides = [1, 1]} : vector<1x358xf32> to vector<1x256xf32>
    %cst_88 = arith.constant 0.000000e+00 : f32
    %601 = vector.broadcast %cst_88 : f32 to vector<1x256xf32>
    %602 = arith.select %52, %600, %601 : vector<1x256xi1>, vector<1x256xf32>
    %603 = vector.broadcast %599 : f32 to vector<1x256xf32>
    %604 = arith.mulf %603, %602 : vector<1x256xf32>
    %605 = arith.addf %598, %604 : vector<1x256xf32>
    %c78 = arith.constant 78 : index
    %606 = memref.load %arg4[%c78] : memref<99xf32, #tpu.memory_space<smem>>
    %607 = vector.extract_strided_slice %410 {offsets = [0, 65], sizes = [1, 256], strides = [1, 1]} : vector<1x358xf32> to vector<1x256xf32>
    %cst_89 = arith.constant 0.000000e+00 : f32
    %608 = vector.broadcast %cst_89 : f32 to vector<1x256xf32>
    %609 = arith.select %57, %607, %608 : vector<1x256xi1>, vector<1x256xf32>
    %610 = vector.broadcast %606 : f32 to vector<1x256xf32>
    %611 = arith.mulf %610, %609 : vector<1x256xf32>
    %612 = arith.addf %605, %611 : vector<1x256xf32>
    %c79 = arith.constant 79 : index
    %613 = memref.load %arg4[%c79] : memref<99xf32, #tpu.memory_space<smem>>
    %614 = vector.extract_strided_slice %410 {offsets = [0, 66], sizes = [1, 256], strides = [1, 1]} : vector<1x358xf32> to vector<1x256xf32>
    %cst_90 = arith.constant 0.000000e+00 : f32
    %615 = vector.broadcast %cst_90 : f32 to vector<1x256xf32>
    %616 = arith.select %62, %614, %615 : vector<1x256xi1>, vector<1x256xf32>
    %617 = vector.broadcast %613 : f32 to vector<1x256xf32>
    %618 = arith.mulf %617, %616 : vector<1x256xf32>
    %619 = arith.addf %612, %618 : vector<1x256xf32>
    %c80 = arith.constant 80 : index
    %620 = memref.load %arg4[%c80] : memref<99xf32, #tpu.memory_space<smem>>
    %621 = vector.extract_strided_slice %410 {offsets = [0, 67], sizes = [1, 256], strides = [1, 1]} : vector<1x358xf32> to vector<1x256xf32>
    %622 = vector.broadcast %620 : f32 to vector<1x256xf32>
    %623 = arith.mulf %622, %621 : vector<1x256xf32>
    %624 = arith.addf %619, %623 : vector<1x256xf32>
    %c81 = arith.constant 81 : index
    %625 = memref.load %arg4[%c81] : memref<99xf32, #tpu.memory_space<smem>>
    %626 = vector.extract_strided_slice %410 {offsets = [0, 68], sizes = [1, 256], strides = [1, 1]} : vector<1x358xf32> to vector<1x256xf32>
    %cst_91 = arith.constant 0.000000e+00 : f32
    %627 = vector.broadcast %cst_91 : f32 to vector<1x256xf32>
    %628 = arith.select %67, %626, %627 : vector<1x256xi1>, vector<1x256xf32>
    %629 = vector.broadcast %625 : f32 to vector<1x256xf32>
    %630 = arith.mulf %629, %628 : vector<1x256xf32>
    %631 = arith.addf %624, %630 : vector<1x256xf32>
    %c82 = arith.constant 82 : index
    %632 = memref.load %arg4[%c82] : memref<99xf32, #tpu.memory_space<smem>>
    %633 = vector.extract_strided_slice %410 {offsets = [0, 69], sizes = [1, 256], strides = [1, 1]} : vector<1x358xf32> to vector<1x256xf32>
    %cst_92 = arith.constant 0.000000e+00 : f32
    %634 = vector.broadcast %cst_92 : f32 to vector<1x256xf32>
    %635 = arith.select %72, %633, %634 : vector<1x256xi1>, vector<1x256xf32>
    %636 = vector.broadcast %632 : f32 to vector<1x256xf32>
    %637 = arith.mulf %636, %635 : vector<1x256xf32>
    %638 = arith.addf %631, %637 : vector<1x256xf32>
    %c83 = arith.constant 83 : index
    %639 = memref.load %arg4[%c83] : memref<99xf32, #tpu.memory_space<smem>>
    %640 = vector.extract_strided_slice %410 {offsets = [0, 70], sizes = [1, 256], strides = [1, 1]} : vector<1x358xf32> to vector<1x256xf32>
    %cst_93 = arith.constant 0.000000e+00 : f32
    %641 = vector.broadcast %cst_93 : f32 to vector<1x256xf32>
    %642 = arith.select %77, %640, %641 : vector<1x256xi1>, vector<1x256xf32>
    %643 = vector.broadcast %639 : f32 to vector<1x256xf32>
    %644 = arith.mulf %643, %642 : vector<1x256xf32>
    %645 = arith.addf %638, %644 : vector<1x256xf32>
    %c84 = arith.constant 84 : index
    %646 = memref.load %arg4[%c84] : memref<99xf32, #tpu.memory_space<smem>>
    %647 = vector.extract_strided_slice %410 {offsets = [0, 80], sizes = [1, 256], strides = [1, 1]} : vector<1x358xf32> to vector<1x256xf32>
    %cst_94 = arith.constant 0.000000e+00 : f32
    %648 = vector.broadcast %cst_94 : f32 to vector<1x256xf32>
    %649 = arith.select %52, %647, %648 : vector<1x256xi1>, vector<1x256xf32>
    %650 = vector.broadcast %646 : f32 to vector<1x256xf32>
    %651 = arith.mulf %650, %649 : vector<1x256xf32>
    %652 = arith.addf %645, %651 : vector<1x256xf32>
    %c85 = arith.constant 85 : index
    %653 = memref.load %arg4[%c85] : memref<99xf32, #tpu.memory_space<smem>>
    %654 = vector.extract_strided_slice %410 {offsets = [0, 81], sizes = [1, 256], strides = [1, 1]} : vector<1x358xf32> to vector<1x256xf32>
    %cst_95 = arith.constant 0.000000e+00 : f32
    %655 = vector.broadcast %cst_95 : f32 to vector<1x256xf32>
    %656 = arith.select %57, %654, %655 : vector<1x256xi1>, vector<1x256xf32>
    %657 = vector.broadcast %653 : f32 to vector<1x256xf32>
    %658 = arith.mulf %657, %656 : vector<1x256xf32>
    %659 = arith.addf %652, %658 : vector<1x256xf32>
    %c86 = arith.constant 86 : index
    %660 = memref.load %arg4[%c86] : memref<99xf32, #tpu.memory_space<smem>>
    %661 = vector.extract_strided_slice %410 {offsets = [0, 82], sizes = [1, 256], strides = [1, 1]} : vector<1x358xf32> to vector<1x256xf32>
    %cst_96 = arith.constant 0.000000e+00 : f32
    %662 = vector.broadcast %cst_96 : f32 to vector<1x256xf32>
    %663 = arith.select %62, %661, %662 : vector<1x256xi1>, vector<1x256xf32>
    %664 = vector.broadcast %660 : f32 to vector<1x256xf32>
    %665 = arith.mulf %664, %663 : vector<1x256xf32>
    %666 = arith.addf %659, %665 : vector<1x256xf32>
    %c87 = arith.constant 87 : index
    %667 = memref.load %arg4[%c87] : memref<99xf32, #tpu.memory_space<smem>>
    %668 = vector.extract_strided_slice %410 {offsets = [0, 83], sizes = [1, 256], strides = [1, 1]} : vector<1x358xf32> to vector<1x256xf32>
    %669 = vector.broadcast %667 : f32 to vector<1x256xf32>
    %670 = arith.mulf %669, %668 : vector<1x256xf32>
    %671 = arith.addf %666, %670 : vector<1x256xf32>
    %c88 = arith.constant 88 : index
    %672 = memref.load %arg4[%c88] : memref<99xf32, #tpu.memory_space<smem>>
    %673 = vector.extract_strided_slice %410 {offsets = [0, 84], sizes = [1, 256], strides = [1, 1]} : vector<1x358xf32> to vector<1x256xf32>
    %cst_97 = arith.constant 0.000000e+00 : f32
    %674 = vector.broadcast %cst_97 : f32 to vector<1x256xf32>
    %675 = arith.select %67, %673, %674 : vector<1x256xi1>, vector<1x256xf32>
    %676 = vector.broadcast %672 : f32 to vector<1x256xf32>
    %677 = arith.mulf %676, %675 : vector<1x256xf32>
    %678 = arith.addf %671, %677 : vector<1x256xf32>
    %c89 = arith.constant 89 : index
    %679 = memref.load %arg4[%c89] : memref<99xf32, #tpu.memory_space<smem>>
    %680 = vector.extract_strided_slice %410 {offsets = [0, 85], sizes = [1, 256], strides = [1, 1]} : vector<1x358xf32> to vector<1x256xf32>
    %cst_98 = arith.constant 0.000000e+00 : f32
    %681 = vector.broadcast %cst_98 : f32 to vector<1x256xf32>
    %682 = arith.select %72, %680, %681 : vector<1x256xi1>, vector<1x256xf32>
    %683 = vector.broadcast %679 : f32 to vector<1x256xf32>
    %684 = arith.mulf %683, %682 : vector<1x256xf32>
    %685 = arith.addf %678, %684 : vector<1x256xf32>
    %c90 = arith.constant 90 : index
    %686 = memref.load %arg4[%c90] : memref<99xf32, #tpu.memory_space<smem>>
    %687 = vector.extract_strided_slice %410 {offsets = [0, 86], sizes = [1, 256], strides = [1, 1]} : vector<1x358xf32> to vector<1x256xf32>
    %cst_99 = arith.constant 0.000000e+00 : f32
    %688 = vector.broadcast %cst_99 : f32 to vector<1x256xf32>
    %689 = arith.select %77, %687, %688 : vector<1x256xi1>, vector<1x256xf32>
    %690 = vector.broadcast %686 : f32 to vector<1x256xf32>
    %691 = arith.mulf %690, %689 : vector<1x256xf32>
    %692 = arith.addf %685, %691 : vector<1x256xf32>
    %c91 = arith.constant 91 : index
    %693 = memref.load %arg4[%c91] : memref<99xf32, #tpu.memory_space<smem>>
    %694 = vector.extract_strided_slice %410 {offsets = [0, 96], sizes = [1, 256], strides = [1, 1]} : vector<1x358xf32> to vector<1x256xf32>
    %cst_100 = arith.constant 0.000000e+00 : f32
    %695 = vector.broadcast %cst_100 : f32 to vector<1x256xf32>
    %696 = arith.select %52, %694, %695 : vector<1x256xi1>, vector<1x256xf32>
    %697 = vector.broadcast %693 : f32 to vector<1x256xf32>
    %698 = arith.mulf %697, %696 : vector<1x256xf32>
    %699 = arith.addf %692, %698 : vector<1x256xf32>
    %c92 = arith.constant 92 : index
    %700 = memref.load %arg4[%c92] : memref<99xf32, #tpu.memory_space<smem>>
    %701 = vector.extract_strided_slice %410 {offsets = [0, 97], sizes = [1, 256], strides = [1, 1]} : vector<1x358xf32> to vector<1x256xf32>
    %cst_101 = arith.constant 0.000000e+00 : f32
    %702 = vector.broadcast %cst_101 : f32 to vector<1x256xf32>
    %703 = arith.select %57, %701, %702 : vector<1x256xi1>, vector<1x256xf32>
    %704 = vector.broadcast %700 : f32 to vector<1x256xf32>
    %705 = arith.mulf %704, %703 : vector<1x256xf32>
    %706 = arith.addf %699, %705 : vector<1x256xf32>
    %c93 = arith.constant 93 : index
    %707 = memref.load %arg4[%c93] : memref<99xf32, #tpu.memory_space<smem>>
    %708 = vector.extract_strided_slice %410 {offsets = [0, 98], sizes = [1, 256], strides = [1, 1]} : vector<1x358xf32> to vector<1x256xf32>
    %cst_102 = arith.constant 0.000000e+00 : f32
    %709 = vector.broadcast %cst_102 : f32 to vector<1x256xf32>
    %710 = arith.select %62, %708, %709 : vector<1x256xi1>, vector<1x256xf32>
    %711 = vector.broadcast %707 : f32 to vector<1x256xf32>
    %712 = arith.mulf %711, %710 : vector<1x256xf32>
    %713 = arith.addf %706, %712 : vector<1x256xf32>
    %c94 = arith.constant 94 : index
    %714 = memref.load %arg4[%c94] : memref<99xf32, #tpu.memory_space<smem>>
    %715 = vector.extract_strided_slice %410 {offsets = [0, 99], sizes = [1, 256], strides = [1, 1]} : vector<1x358xf32> to vector<1x256xf32>
    %716 = vector.broadcast %714 : f32 to vector<1x256xf32>
    %717 = arith.mulf %716, %715 : vector<1x256xf32>
    %718 = arith.addf %713, %717 : vector<1x256xf32>
    %c95 = arith.constant 95 : index
    %719 = memref.load %arg4[%c95] : memref<99xf32, #tpu.memory_space<smem>>
    %720 = vector.extract_strided_slice %410 {offsets = [0, 100], sizes = [1, 256], strides = [1, 1]} : vector<1x358xf32> to vector<1x256xf32>
    %cst_103 = arith.constant 0.000000e+00 : f32
    %721 = vector.broadcast %cst_103 : f32 to vector<1x256xf32>
    %722 = arith.select %67, %720, %721 : vector<1x256xi1>, vector<1x256xf32>
    %723 = vector.broadcast %719 : f32 to vector<1x256xf32>
    %724 = arith.mulf %723, %722 : vector<1x256xf32>
    %725 = arith.addf %718, %724 : vector<1x256xf32>
    %c96 = arith.constant 96 : index
    %726 = memref.load %arg4[%c96] : memref<99xf32, #tpu.memory_space<smem>>
    %727 = vector.extract_strided_slice %410 {offsets = [0, 101], sizes = [1, 256], strides = [1, 1]} : vector<1x358xf32> to vector<1x256xf32>
    %cst_104 = arith.constant 0.000000e+00 : f32
    %728 = vector.broadcast %cst_104 : f32 to vector<1x256xf32>
    %729 = arith.select %72, %727, %728 : vector<1x256xi1>, vector<1x256xf32>
    %730 = vector.broadcast %726 : f32 to vector<1x256xf32>
    %731 = arith.mulf %730, %729 : vector<1x256xf32>
    %732 = arith.addf %725, %731 : vector<1x256xf32>
    %c97 = arith.constant 97 : index
    %733 = memref.load %arg4[%c97] : memref<99xf32, #tpu.memory_space<smem>>
    %734 = vector.extract_strided_slice %410 {offsets = [0, 102], sizes = [1, 256], strides = [1, 1]} : vector<1x358xf32> to vector<1x256xf32>
    %cst_105 = arith.constant 0.000000e+00 : f32
    %735 = vector.broadcast %cst_105 : f32 to vector<1x256xf32>
    %736 = arith.select %77, %734, %735 : vector<1x256xi1>, vector<1x256xf32>
    %737 = vector.broadcast %733 : f32 to vector<1x256xf32>
    %738 = arith.mulf %737, %736 : vector<1x256xf32>
    %739 = arith.addf %732, %738 : vector<1x256xf32>
    %c98 = arith.constant 98 : index
    %740 = memref.load %arg4[%c98] : memref<99xf32, #tpu.memory_space<smem>>
    %741 = vector.broadcast %740 : f32 to vector<1x256xf32>
    %742 = arith.addf %739, %741 : vector<1x256xf32>
    %743 = arith.negf %742 : vector<1x256xf32>
    %744 = math.exp %743 : vector<1x256xf32>
    %cst_106 = arith.constant 1.000000e+00 : f32
    %745 = vector.broadcast %cst_106 : f32 to vector<1x256xf32>
    %746 = arith.addf %745, %744 : vector<1x256xf32>
    %747 = arith.divf %745, %746 : vector<1x256xf32>
    %748 = vector.broadcast %747 : vector<1x256xf32> to vector<32x256xf32>
    %749 = arith.mulf %24, %748 : vector<32x256xf32>
    %750 = arith.addf %1, %749 : vector<32x256xf32>
    %c0_107 = arith.constant 0 : index
    %c0_108 = arith.constant 0 : index
    %c0_109 = arith.constant 0 : index
    %751 = vector.load %arg5[%c0_107, %c0_108, %c0_109] : memref<1x32x256xf32, #tpu.memory_space<vmem>>, vector<1x32x256xf32>
    %752 = vector.shape_cast %751 : vector<1x32x256xf32> to vector<32x256xf32>
    %753 = vector.shape_cast %750 : vector<32x256xf32> to vector<1x32x256xf32>
    tpu.vector_store %arg5[%c0_107, %c0_108, %c0_109], %753 {strides = array<i32>} : memref<1x32x256xf32, #tpu.memory_space<vmem>>, vector<1x32x256xf32>,
    return
  }
  func.func @transform_0(%arg0: i32) -> (i32, i32, i32) {
    %c0_i32 = arith.constant 0 : i32
    %c0_i32_0 = arith.constant 0 : i32
    %c0_i32_1 = arith.constant 0 : i32
    return %arg0, %c0_i32, %c0_i32_0 : i32, i32, i32
  }
  func.func @transform_1(%arg0: i32) -> (i32, i32) {
    %c0_i32 = arith.constant 0 : i32
    %c0_i32_0 = arith.constant 0 : i32
    %c0_i32_1 = arith.constant 0 : i32
    return %c0_i32, %c0_i32_0 : i32, i32
  }
  func.func @transform_2(%arg0: i32) -> (i32, i32) {
    %c0_i32 = arith.constant 0 : i32
    %c0_i32_0 = arith.constant 0 : i32
    %c0_i32_1 = arith.constant 0 : i32
    return %c0_i32, %c0_i32_0 : i32, i32
  }
  func.func @transform_3(%arg0: i32) -> i32 {
    %c0_i32 = arith.constant 0 : i32
    %c0_i32_0 = arith.constant 0 : i32
    return %c0_i32 : i32
  }
  func.func @transform_4(%arg0: i32) -> (i32, i32, i32) {
    %c0_i32 = arith.constant 0 : i32
    %c0_i32_0 = arith.constant 0 : i32
    %c0_i32_1 = arith.constant 0 : i32
    return %arg0, %c0_i32, %c0_i32_0 : i32, i32, i32
  }
}

</mosaic_0001>

<bundles_post_ra>
// kernel: rcbam_forward.1
= control target key start
LH: loop header
LB: loop body
LE: loop exit
PB: predicated region body
PF: predicated region fallthrough
CT: control target
= control target key end

     0   :  { %s5505_s0 = inlined_call_operand.vmem [shape: f32[2,32,256], index: 0, kind: input, shape index: {}]   ;;  %s5506_s1 = inlined_call_operand.vmem [shape: f32[2,32], index: 1, kind: input, shape index: {}]   ;;  %s5507_s2 = inlined_call_operand.vmem [shape: f32[32,2], index: 2, kind: input, shape index: {}]   ;;  %s5508_s3 = inlined_call_operand.vmem [shape: f32[99], index: 3, kind: input, shape index: {}]   ;;  %s5509_s4 = inlined_call_operand.vmem [shape: f32[2,32,256], index: 4, kind: output, shape index: {}]  }
   0x1   :  { %5649 = sst [smem:[#allocation165_spill]] %s5505_s0 }
   0x2   :  { %5650 = sst [smem:[#allocation166_spill]] %s5506_s1 }
   0x3   :  { %5651 = sst [smem:[#allocation167_spill]] %s5507_s2 }
   0x4   :  { %5652 = sst [smem:[#allocation168_spill]] %s5508_s3 }
   0x5   :  { %5653 = sst [smem:[#allocation169_spill]] %s5509_s4 }
   0x6   :  { %9 = vsyncpa [#allocation3], 0  ;;  %s2944_s15 = smov 0  }
   0x7 LB: > { %5654 = sst [smem:[#allocation5_spill]] %s2863_s15  ;;  %s2572_s16 = sadd.s32 4294967295, %s2863_s15   ;;  %s2863_s15 = sphi %s2944_s15, %s15_s15  }
   0x8   : > { %p2574_p0 = scmp.ge.s32.totalorder %s2863_s15, 1  ;;  %p135_p1 = scmp.lt.s32.totalorder %s2863_s15, 3 }
   0x9   : > { %s5655_s3 = sld [smem:[#allocation168_spill]]  ;;  %p2740_p3 = scmp.eq.s32.totalorder %s2572_s16, 0 }
   0xa   : > { %p2955_p2 = pnand %p2574_p0, %p135_p1 }
   0xc   : > { %p2736_p4 = pneg %p2955_p2 }
   0xe   : > { %p2737_p5 = pnand %p2740_p3, %p2736_p4 }
   0xf   : > { %s154_s19 = sshll.u32 %s5655_s3, 4  ;;  %s155_s19 = int_to_ptr.vmem [resolvable:$true] %s154_s19 }
  0x10   : > { %s2838_s21 = scalar_lea.vmem %s155_s19, 16  ;;  %p2840_p7 = pneg %p2737_p5 }
  0x11   : > { %p2839_p6 = scmp.ne.s32.totalorder %s155_s19, %s2838_s21  ;;  %p2846_p10 = scmp.lt.s32.totalorder %s155_s19, %s155_s19 }
  0x12   : > { %p2847_p11 = scmp.lt.s32.totalorder %s2838_s21, %s2838_s21 }
  0x13   : > { %p2841_p8 = pnand %p2840_p7, %p2839_p6 }
  0x14   : > { %p2848_p12 = por %p2847_p11, %p2846_p10 }
  0x15   : > { %p2842_p9 = pneg %p2841_p8 }
  0x17   : > { %p2849_p13 = pnand %p2848_p12, %p2842_p9 }
  0x19   : > { %2852 = shalt.err (!%p2849_p13)
}
  0x1a   : > { %s2865_s22 = smov [#allocation2]   ;;  %175 = sbr.rel (%p2955_p2) target bundleno = 1812 (0x714), region = 36 }
  0x1b   : > { %2739 = dma.vmem_to_smem (!%p2737_p5), %s155_s19, 16, %s2865_s22, [#allocation3]  }
  0x21   : > { %2858 = dma.done.wait (%p2740_p3), [#allocation3], 16  }
  0x22   : > { %2860 = vsyncadd (%p2740_p3), [#allocation3], 4294967280 }
  0x23   : > { %181 = sfence }
  0x24   : > { %p202_p0 = scmp.lt.s32.totalorder %s2572_s16, 1  ;;  %s5658_s0 = sld [smem:[#allocation165_spill]]  ;;  %v2866_v16 = vmov 0.0|0.0   ;;  %vm2867_vm0 = vmmov 0   ;;  %v2868_v17 = vmov 0.0   ;;  %vm248_vm1 = vcmask 7168  }
  0x25   : > { %2726 = vmatprep.subr.bf16.mxu0 %v2866_v16  ;;  %2715 = vmatprep.mubr.msk.f32.mxu0 %vm2867_vm0, %v2868_v17  ;;  %s5660_s1 = sld [smem:[#allocation166_spill]]  ;;  %vm5601_vm2 = vcmask 261120   ;;  %s5661_s2 = sld [smem:[#allocation167_spill]]  ;;  %vm333_vm3 = vcmask 15360   ;;  %vm346_vm4 = vcmask 1041408   ;;  %v2870_v48 = vmov 0  }
  0x26   : > { %s6191_s16 = smov (!%p202_p0, %s2572_s16), 1  ;;  %s2869_s11 = smov 127   ;;  %2804 = vset.pattern.permute.xlu1 %v2870_v48  ;;  %2805 = vset.pattern.permute.xlu0 %v2870_v48  ;;  %vm615_vm5 = vcmask 416768   ;;  %vm639_vm9 = vcmask 1039360   ;;  %vm5600_vm13 = vcmask 1031168   ;;  %vm5607_vm14 = vcmask 1014784  }
  0x27   : > { %5657 = sst [smem:[#allocation6_spill]] %s6191_s16  ;;  %s5539_s23 = sshll.u32 %s6191_s16, 6 }
  0x28   : > { %s2871_s12 = smov 51   ;;  %s2872_s13 = smov 126  }
  0x29   : > { %s2873_s14 = smov 124   ;;  %s2874_s17 = smov 123  }
  0x2a   : > { %s2974_s26 = scalar_lea.vmem %s5658_s0, %s5539_s23  ;;  %s2875_s18 = smov 122  }
  0x2b   : > { %5659 = sst [smem:[#allocation7_spill]] %s2974_s26  ;;  %v2977_v0 = vld [vmem:[%s2974_s26] sm:$0xff]  ;;  %v2980_v1 = vld [vmem:[%s2974_s26 + $0x8] sm:$0xff]  ;;  %v2983_v2 = vld [vmem:[%s2974_s26 + $0x10] sm:$0xff]  ;;  %s2876_s19 = smov 112  }
  0x2c   : > { %v236_v3 = vmax.f32 %v2977_v0, %v2980_v1  ;;  %v220_v4 = vadd.f32 %v2980_v1, %v2977_v0  ;;  %v2990_v5 = vld [vmem:[%s2974_s26 + $0x18] sm:$0xff]  ;;  %v2997_v8 = vld [vmem:[%s2974_s26 + $0x30] sm:$0xff]  ;;  %v3003_v10 = vld [vmem:[%s2974_s26 + $0x20] sm:$0xff]  ;;  %s2877_s20 = smov 111   ;;  %s2878_s21 = smov 110  }
  0x2d   : > { %v239_v6 = vmax.f32 %v2983_v2, %v2990_v5  ;;  %v223_v7 = vadd.f32 %v2990_v5, %v2983_v2  ;;  %v3000_v9 = vld [vmem:[%s2974_s26 + $0x38] sm:$0xff]  ;;  %v3006_v11 = vld [vmem:[%s2974_s26 + $0x28] sm:$0xff]  ;;  %v253_v36 = vld [vmem:[%s5660_s1] sm:$0x3]  ;;  %s2879_s22 = smov 108   ;;  %s2880_s24 = smov 107  }
  0x2e   : > { %237 = vmax.xlane.f32.xlu1 %v236_v3  ;;  %221 = vadd.xlane.f32.xlu0 %v220_v4  ;;  %v229_v12 = vadd.f32 %v3000_v9, %v2997_v8  ;;  %v226_v13 = vadd.f32 %v3006_v11, %v3003_v10  ;;  %v245_v14 = vmax.f32 %v2997_v8, %v3000_v9  ;;  %v329_v37 = vld [vmem:[%s5661_s2] sm:$0xff]  ;;  %v330_v41 = vld [vmem:[%s5661_s2 + $0x8] sm:$0xff]  ;;  %v331_v42 = vld [vmem:[%s5661_s2 + $0x10] sm:$0xff]  ;;  %s2881_s25 = smov 106   ;;  %s2882_s27 = smov 96  }
  0x2f   : > { %v242_v15 = vmax.f32 %v3003_v10, %v3006_v11  ;;  %2720 = vmatprep.mubr.msk.f32.mxu1 %vm333_vm3, %v329_v37  ;;  %v332_v43 = vld [vmem:[%s5661_s2 + $0x18] sm:$0xff]  ;;  %s2883_s28 = smov 95   ;;  %s2884_s29 = smov 94  }
  0x30   : > { %s2885_s30 = smov 92   ;;  %s2886_s5 = smov 91  }
  0x31   : > { %s2887_s6 = smov 90   ;;  %s2888_s7 = smov 80  }
  0x32   : > { %240 = vmax.xlane.f32.xlu1 %v239_v6  ;;  %224 = vadd.xlane.f32.xlu0 %v223_v7  ;;  %s2889_s8 = smov 79   ;;  %s2890_s9 = smov 78  }
  0x33   : > { %s2891_s10 = smov 76   ;;  %s2651_s23 = sld [smem:[#allocation2 + $0x3b]] }
  0x34   : > { %s4062_s0 = sld [smem:[#allocation2 + $0x15]]  ;;  %s4064_s1 = sld [smem:[#allocation2 + $0x16]] }
  0x35   : > { %s5818_s2 = smov 58   ;;  %s5819_s3 = smov 59  }
  0x36   : > { %230 = vadd.xlane.f32.xlu1 %v229_v12  ;;  %227 = vadd.xlane.f32.xlu0 %v226_v13  ;;  %s4093_s15 = sld [smem:[#allocation2 + $0x1a]]  ;;  %s4124_s4 = sld [smem:[#allocation2 + $0x1c]] }
  0x37   : > { %s4159_s26 = sld [smem:[#allocation2 + $0x1d]]  ;;  %s4161_s16 = sld [smem:[#allocation2 + $0x1e]] }
  0x3a   : > { %246 = vmax.xlane.f32.xlu1 %v245_v14  ;;  %243 = vmax.xlane.f32.xlu0 %v242_v15 }
  0xbb   : > { %v238_v18 = vpop.xlane.xlu1 %237  ;;  %v222_v19 = vpop.xlane.xlu0 %221 }
  0xbc   : > { %v232_v20 = vmul.f32 0.00390625, %v222_v19 }
  0xbe   : > { %v249_v24 = vsel %vm248_vm1, %v232_v20, %v238_v18 }
  0xbf   : > { %v241_v21 = vpop.xlane.xlu1 %240  ;;  %v225_v22 = vpop.xlane.xlu0 %224 }
  0xc0   : > { %v233_v23 = vmul.f32 0.00390625, %v225_v22 }
  0xc2   : > { %v250_v25 = vsel %vm248_vm1, %v233_v23, %v241_v21 }
  0xc3   : > { %v231_v26 = vpop.xlane.xlu1 %230  ;;  %v228_v27 = vpop.xlane.xlu0 %227  ;;  %v2727_v28 = vpack.c.bf16 %v250_v25, %v249_v24 }
  0xc4   : > { %v235_v29 = vmul.f32 0.00390625, %v231_v26  ;;  %v234_v30 = vmul.f32 0.00390625, %v228_v27 }
  0xc5   : > { %2728 = vmatpush3.bf16.msra.mxu0 %v2727_v28 }
  0xc6   : > { %2729 = vmatprep.subr.bf16.mxu0 %v2866_v16 }
  0xc7   : > { %v247_v31 = vpop.xlane.xlu1 %246  ;;  %v244_v32 = vpop.xlane.xlu0 %243 }
  0xc8   : > { %v252_v33 = vsel %vm248_vm1, %v235_v29, %v247_v31  ;;  %v251_v34 = vsel %vm248_vm1, %v234_v30, %v244_v32  ;;  %vm5608_vm1 = vcmask 1006592  }
  0xc9   : > { %v2730_v35 = vpack.c.bf16 %v252_v33, %v251_v34 }
  0xcb   : > { %2731 = vmatpush3.bf16.msra.mxu0 %v2730_v35 }
  0xce   : > { %2716 = vmatmul.mubr.msk.f32.vlgmr.msra.gmra.mrb[0].mxu0 %vm5601_vm2, %v253_v36 }
 0x1a1   : > { %v324_v38 = vpop.f32.mrb[0].mxu0 }
 0x1a2   : > { %v328_v39 = vmax.f32 %v324_v38, 0.0  ;;  %v2717_v40 = vpop.f32.mrb[1].mxu0 }
 0x1a4   : > { %2718 = vmatprep.subr.msk.mxu1 %vm346_vm4, %v328_v39 }
 0x1a5   : > { %2719 = vmatpush3.msk.msra.mxu1 %vm346_vm4, %v328_v39 }
 0x1a6   : > { %2721 = vmatmul.mubr.msk.f32.vlgmr.msra.gmra.mrb[0].mxu1 %vm333_vm3, %v330_v41 }
 0x1a7   : > { %2723 = vmatprep.mubr.msk.f32.mxu1 %vm333_vm3, %v331_v42 }
 0x1aa   : > { %2724 = vmatmul.mubr.msk.f32.gmra.mrb[2].mxu1 %vm333_vm3, %v332_v43  ;;  %vm5612_vm3 = vcmask 998400  }
 0x279   : > { %v2722_v44 = vpop.f32.mrb[0].mxu1 }
 0x27a   : > { %441 = vrot.lane.b32.xlu1 %v2722_v44, %s2869_s11  ;;  %v416_v45 = vpop.f32.mrb[1].mxu1 }
 0x27b   : > { %439 = vrot.lane.b32.xlu0 %v416_v45, %s2869_s11 }
 0x27d   : > { %v2725_v46 = vpop.f32.mrb[2].mxu1 }
 0x27e   : > { %445 = vrot.lane.b32.xlu1 %v2725_v46, %s2869_s11  ;;  %v426_v47 = vpop.f32.mrb[3].mxu1 }
 0x282   : > { %443 = vrot.lane.b32.xlu1 %v426_v47, %s2869_s11 }
 0x2ec   : > { %v442_v49 = vpop.permute.xlu1 %441 }
 0x2ed   : > { %v452_v50 = vadd.f32 %v2722_v44, %v442_v49  ;;  %v440_v51 = vpop.permute.xlu0 %439 }
 0x2ee   : > { %v451_v52 = vadd.f32 %v440_v51, %v416_v45 }
 0x2ef   : > { %v2590_v53 = vmul.f32 -1.442695, %v452_v50 }
 0x2f0   : > { %v2589_v54 = vmul.f32 -1.442695, %v451_v52  ;;  %v446_v55 = vpop.permute.xlu1 %445 }
 0x2f1   : > { %2806 = vpow2.f32 %v2590_v53  ;;  %v454_v56 = vadd.f32 %v2725_v46, %v446_v55 }
 0x2f2   : > { %2808 = vpow2.f32 %v2589_v54 }
 0x2f3   : > { %v2592_v57 = vmul.f32 -1.442695, %v454_v56 }
 0x2f4   : > { %v444_v58 = vpop.permute.xlu1 %443 }
 0x2f5   : > { %2810 = vpow2.f32 %v2592_v57  ;;  %v453_v59 = vadd.f32 %v444_v58, %v426_v47 }
 0x2f7   : > { %v2591_v60 = vmul.f32 -1.442695, %v453_v59 }
 0x2f9   : > { %2812 = vpow2.f32 %v2591_v60 }
 0x2fb   : > { %v2807_v61 = vpop.eup %2806 }
 0x2fc   : > { %v2809_v62 = vpop.eup %2808  ;;  %v468_v63 = vadd.f32 1.0, %v2807_v61 }
 0x2fd   : > { %v467_v3 = vadd.f32 1.0, %v2809_v62 }
 0x2fe   : > { %2814 = vrcp.f32 %v468_v63 }
 0x2ff   : > { %v2811_v4 = vpop.eup %2810  ;;  %2816 = vrcp.f32 %v467_v3 }
 0x300   : > { %v470_v6 = vadd.f32 1.0, %v2811_v4 }
 0x302   : > { %2818 = vrcp.f32 %v470_v6 }
 0x303   : > { %v2813_v7 = vpop.eup %2812 }
 0x304   : > { %v469_v12 = vadd.f32 1.0, %v2813_v7 }
 0x306   : > { %2820 = vrcp.f32 %v469_v12 }
 0x308   : > { %v2815_v13 = vpop.eup %2814 }
 0x309   : > { %v2817_v14 = vpop.eup %2816  ;;  %486 = vperm.xlu1 %2804, %v2815_v13  }
 0x30a   : > { %481 = vperm.xlu0 %2805, %v2817_v14  }
 0x30c   : > { %v2819_v15 = vpop.eup %2818 }
 0x30e   : > { %496 = vperm.xlu0 %2805, %v2819_v15  }
 0x310   : > { %v2821_v16 = vpop.eup %2820 }
 0x311   : > { %491 = vperm.xlu1 %2804, %v2821_v16  }
 0x388   : > { %v487_v18 = vpop.permute.xlu1 %486 }
 0x389   : > { %v482_v17 = vpop.permute.xlu0 %481  ;;  %v3037_v19 = vmul.f32 %v487_v18, %v2983_v2  ;;  %v3040_v20 = vmul.f32 %v487_v18, %v2990_v5 }
 0x38a   : > { %v3043_v21 = vmul.f32 %v482_v17, %v2977_v0  ;;  %v3046_v22 = vmul.f32 %v482_v17, %v2980_v1 }
 0x38b   : > { %5662 = vst [vmem:[#allocation8_spill] sm:$0xff] %v3037_v19  ;;  %5663 = vst [vmem:[#allocation9_spill] sm:$0xff] %v3040_v20 }
 0x38c   : > { %5664 = vst [vmem:[#allocation10_spill] sm:$0xff] %v3043_v21  ;;  %5665 = vst [vmem:[#allocation11_spill] sm:$0xff] %v3046_v22  ;;  %v507_v2 = vadd.f32 %v3037_v19, %v3043_v21  ;;  %v516_v5 = vadd.f32 %v3040_v20, %v3046_v22 }
 0x38d   : > { %v497_v23 = vpop.permute.xlu0 %496 }
 0x38e   : > { %v3049_v24 = vmul.f32 %v497_v23, %v2997_v8  ;;  %v3052_v25 = vmul.f32 %v497_v23, %v3000_v9 }
 0x390   : > { %5666 = vst [vmem:[#allocation12_spill] sm:$0xff] %v3049_v24  ;;  %5667 = vst [vmem:[#allocation13_spill] sm:$0xff] %v3052_v25  ;;  %v492_v26 = vpop.permute.xlu1 %491  ;;  %v529_v8 = vmax.f32 %v3037_v19, %v3049_v24  ;;  %v538_v9 = vmax.f32 %v3040_v20, %v3052_v25 }
 0x391   : > { %v3059_v0 = vmul.f32 %v492_v26, %v3003_v10  ;;  %v3062_v1 = vmul.f32 %v492_v26, %v3006_v11 }
 0x393   : > { %5668 = vst [vmem:[#allocation14_spill] sm:$0xff] %v3059_v0  ;;  %5669 = vst [vmem:[#allocation15_spill] sm:$0xff] %v3062_v1  ;;  %v508_v27 = vadd.f32 %v507_v2, %v3059_v0  ;;  %v517_v28 = vadd.f32 %v516_v5, %v3062_v1  ;;  %v528_v29 = vmax.f32 %v3043_v21, %v3059_v0 }
 0x394   : > { %v537_v10 = vmax.f32 %v3046_v22, %v3062_v1 }
 0x395   : > { %v509_v30 = vadd.f32 %v508_v27, %v3049_v24  ;;  %v518_v11 = vadd.f32 %v517_v28, %v3052_v25  ;;  %v530_v32 = vmax.f32 %v528_v29, %v529_v8 }
 0x396   : > { %v539_v31 = vmax.f32 %v537_v10, %v538_v9 }
 0x397   : > { %v531_v34 = vrot.slane %v530_v32, 4  ;;  %v519_v35 = vrot.slane %v518_v11, 4  ;;  %v510_v36 = vrot.slane %v509_v30, 4 }
 0x398   : > { %v540_v33 = vrot.slane %v539_v31, 4 }
 0x399   : > { %v532_v38 = vmax.f32 %v530_v32, %v531_v34  ;;  %v520_v39 = vadd.f32 %v519_v35, %v518_v11  ;;  %v511_v40 = vadd.f32 %v510_v36, %v509_v30 }
 0x39a   : > { %v541_v37 = vmax.f32 %v539_v31, %v540_v33 }
 0x39b   : > { %v533_v42 = vrot.slane %v532_v38, 2  ;;  %v521_v43 = vrot.slane %v520_v39, 2  ;;  %v512_v44 = vrot.slane %v511_v40, 2 }
 0x39c   : > { %v542_v41 = vrot.slane %v541_v37, 2 }
 0x39d   : > { %v534_v46 = vmax.f32 %v532_v38, %v533_v42  ;;  %v522_v47 = vadd.f32 %v521_v43, %v520_v39  ;;  %v513_v48 = vadd.f32 %v512_v44, %v511_v40 }
 0x39e   : > { %v543_v45 = vmax.f32 %v541_v37, %v542_v41 }
 0x39f   : > { %v535_v50 = vrot.slane %v534_v46, 1  ;;  %v523_v51 = vrot.slane %v522_v47, 1  ;;  %v514_v52 = vrot.slane %v513_v48, 1 }
 0x3a0   : > { %v544_v49 = vrot.slane %v543_v45, 1 }
 0x3a1   : > { %v536_v54 = vmax.f32 %v534_v46, %v535_v50  ;;  %v524_v55 = vadd.f32 %v523_v51, %v522_v47  ;;  %v515_v56 = vadd.f32 %v514_v52, %v513_v48 }
 0x3a2   : > { %v545_v53 = vmax.f32 %v543_v45, %v544_v49 }
 0x3a3   : > { %1559 = vrot.lane.b32.xlu1 %v536_v54, %s2871_s12  ;;  %v527_v57 = vmul.f32 0.03125, %v524_v55  ;;  %v526_v58 = vmul.f32 0.03125, %v515_v56 }
 0x3a4   : > { %1561 = vrot.lane.b32.xlu0 %v545_v53, %s2871_s12 }
 0x3a7   : > { %611 = vrot.lane.b32.xlu1 %v526_v58, %s2871_s12 }
 0x3a8   : > { %613 = vrot.lane.b32.xlu0 %v527_v57, %s2871_s12  ;;  %s2893_s12 = smov 74  }
 0x415   : > { %v1560_v60 = vpop.permute.xlu1 %1559 }
 0x416   : > { %v1562_v59 = vpop.permute.xlu0 %1561  ;;  %v3080_v62 = vsel %vm615_vm5, 0.0, %v1560_v60 }
 0x417   : > { %v3077_v61 = vsel %vm615_vm5, %v1560_v60, %v1562_v59  ;;  %1580 = vrot.lane.b32.xlu1 %v3080_v62, %s2869_s11  ;;  %v3087_v63 = vsel %vm615_vm5, %v1562_v59, 0.0 }
 0x418   : > { %1582 = vrot.lane.b32.xlu0 %v3077_v61, %s2869_s11 }
 0x419   : > { %v612_v4 = vpop.permute.xlu1 %611 }
 0x41a   : > { %v614_v3 = vpop.permute.xlu0 %613  ;;  %v3206_v12 = vsel %vm615_vm5, 0.0, %v612_v4 }
 0x41b   : > { %1584 = vrot.lane.b32.xlu1 %v3087_v63, %s2869_s11  ;;  %v3217_v15 = vsel %vm615_vm5, %v614_v3, 0.0  ;;  %v3220_v16 = vsel %vm615_vm5, %v612_v4, %v614_v3  ;;  %vm5616_vm5 = vcmask 916480  }
 0x41c   : > { %1598 = vrot.lane.b32.xlu0 %v3080_v62, %s2872_s13 }
 0x41f   : > { %1600 = vrot.lane.b32.xlu1 %v3077_v61, %s2872_s13 }
 0x420   : > { %1602 = vrot.lane.b32.xlu0 %v3087_v63, %s2872_s13 }
 0x423   : > { %1638 = vrot.lane.b32.xlu1 %v3077_v61, %s2873_s14 }
 0x424   : > { %1636 = vrot.lane.b32.xlu0 %v3080_v62, %s2873_s14 }
 0x427   : > { %1654 = vrot.lane.b32.xlu1 %v3080_v62, %s2874_s17 }
 0x428   : > { %1640 = vrot.lane.b32.xlu0 %v3087_v63, %s2873_s14 }
 0x42b   : > { %1658 = vrot.lane.b32.xlu1 %v3087_v63, %s2874_s17 }
 0x42c   : > { %1656 = vrot.lane.b32.xlu0 %v3077_v61, %s2874_s17 }
 0x42f   : > { %1674 = vrot.lane.b32.xlu1 %v3077_v61, %s2875_s18 }
 0x430   : > { %1672 = vrot.lane.b32.xlu0 %v3080_v62, %s2875_s18 }
 0x433   : > { %1690 = vrot.lane.b32.xlu1 %v3080_v62, %s2876_s19 }
 0x434   : > { %1676 = vrot.lane.b32.xlu0 %v3087_v63, %s2875_s18 }
 0x437   : > { %1694 = vrot.lane.b32.xlu1 %v3087_v63, %s2876_s19 }
 0x438   : > { %1692 = vrot.lane.b32.xlu0 %v3077_v61, %s2876_s19 }
 0x43b   : > { %1710 = vrot.lane.b32.xlu1 %v3077_v61, %s2877_s20 }
 0x43c   : > { %1708 = vrot.lane.b32.xlu0 %v3080_v62, %s2877_s20 }
 0x43f   : > { %1726 = vrot.lane.b32.xlu1 %v3080_v62, %s2878_s21 }
 0x440   : > { %1712 = vrot.lane.b32.xlu0 %v3087_v63, %s2877_s20 }
 0x443   : > { %1730 = vrot.lane.b32.xlu1 %v3087_v63, %s2878_s21 }
 0x444   : > { %1728 = vrot.lane.b32.xlu0 %v3077_v61, %s2878_s21 }
 0x447   : > { %1764 = vrot.lane.b32.xlu1 %v3080_v62, %s2879_s22 }
 0x448   : > { %1766 = vrot.lane.b32.xlu0 %v3077_v61, %s2879_s22 }
 0x44b   : > { %1768 = vrot.lane.b32.xlu1 %v3087_v63, %s2879_s22 }
 0x44c   : > { %1782 = vrot.lane.b32.xlu0 %v3080_v62, %s2880_s24 }
 0x44f   : > { %1784 = vrot.lane.b32.xlu1 %v3077_v61, %s2880_s24 }
 0x450   : > { %1786 = vrot.lane.b32.xlu0 %v3087_v63, %s2880_s24 }
 0x453   : > { %1800 = vrot.lane.b32.xlu1 %v3080_v62, %s2881_s25 }
 0x454   : > { %1802 = vrot.lane.b32.xlu0 %v3077_v61, %s2881_s25 }
 0x457   : > { %1804 = vrot.lane.b32.xlu1 %v3087_v63, %s2881_s25 }
 0x458   : > { %1818 = vrot.lane.b32.xlu0 %v3080_v62, %s2882_s27 }
 0x45b   : > { %1820 = vrot.lane.b32.xlu1 %v3077_v61, %s2882_s27 }
 0x45c   : > { %1822 = vrot.lane.b32.xlu0 %v3087_v63, %s2882_s27 }
 0x45f   : > { %1836 = vrot.lane.b32.xlu1 %v3080_v62, %s2883_s28 }
 0x460   : > { %1838 = vrot.lane.b32.xlu0 %v3077_v61, %s2883_s28 }
 0x463   : > { %1840 = vrot.lane.b32.xlu1 %v3087_v63, %s2883_s28 }
 0x464   : > { %1854 = vrot.lane.b32.xlu0 %v3080_v62, %s2884_s29 }
 0x467   : > { %1856 = vrot.lane.b32.xlu1 %v3077_v61, %s2884_s29 }
 0x468   : > { %1858 = vrot.lane.b32.xlu0 %v3087_v63, %s2884_s29 }
 0x46b   : > { %1894 = vrot.lane.b32.xlu1 %v3077_v61, %s2885_s30 }
 0x46c   : > { %1892 = vrot.lane.b32.xlu0 %v3080_v62, %s2885_s30 }
 0x46f   : > { %1910 = vrot.lane.b32.xlu1 %v3080_v62, %s2886_s5 }
 0x470   : > { %1896 = vrot.lane.b32.xlu0 %v3087_v63, %s2885_s30 }
 0x473   : > { %1914 = vrot.lane.b32.xlu1 %v3087_v63, %s2886_s5 }
 0x474   : > { %1912 = vrot.lane.b32.xlu0 %v3077_v61, %s2886_s5 }
 0x477   : > { %1930 = vrot.lane.b32.xlu1 %v3077_v61, %s2887_s6 }
 0x478   : > { %1928 = vrot.lane.b32.xlu0 %v3080_v62, %s2887_s6 }
 0x47b   : > { %1946 = vrot.lane.b32.xlu1 %v3080_v62, %s2888_s7 }
 0x47c   : > { %1932 = vrot.lane.b32.xlu0 %v3087_v63, %s2887_s6 }
 0x47f   : > { %1950 = vrot.lane.b32.xlu1 %v3087_v63, %s2888_s7 }
 0x480   : > { %1948 = vrot.lane.b32.xlu0 %v3077_v61, %s2888_s7 }
 0x483   : > { %1966 = vrot.lane.b32.xlu1 %v3077_v61, %s2889_s8 }
 0x484   : > { %1964 = vrot.lane.b32.xlu0 %v3080_v62, %s2889_s8 }
 0x487   : > { %1982 = vrot.lane.b32.xlu1 %v3080_v62, %s2890_s9 }
 0x488   : > { %1968 = vrot.lane.b32.xlu0 %v3087_v63, %s2889_s8 }
 0x489   : > { %v3203_v7 = vpop.permute.xlu1 %1580 }
 0x48a   : > { %v3201_v6 = vpop.permute.xlu0 %1582 }
 0x48b   : > { %633 = vrot.lane.b32.xlu1 %v3206_v12, %s2869_s11 }
 0x48c   : > { %1984 = vrot.lane.b32.xlu0 %v3077_v61, %s2890_s9 }
 0x48d   : > { %v3214_v14 = vpop.permute.xlu1 %1584 }
 0x48e   : > { %v3212_v13 = vpop.permute.xlu0 %1598 }
 0x48f   : > { %5670 = vst [vmem:[#allocation16_spill] sm:$0xff] %v3212_v13  ;;  %637 = vrot.lane.b32.xlu1 %v3217_v15, %s2869_s11 }
 0x490   : > { %635 = vrot.lane.b32.xlu0 %v3220_v16, %s2869_s11  ;;  %s2892_s11 = smov 75  }
 0x491   : > { %v3228_v18 = vpop.permute.xlu1 %1600 }
 0x492   : > { %v3226_v17 = vpop.permute.xlu0 %1602  ;;  %5672 = vst [vmem:[#allocation18_spill] sm:$0xff] %v3228_v18 }
 0x493   : > { %5671 = vst [vmem:[#allocation17_spill] sm:$0xff] %v3226_v17  ;;  %654 = vrot.lane.b32.xlu1 %v3220_v16, %s2872_s13 }
 0x494   : > { %652 = vrot.lane.b32.xlu0 %v3206_v12, %s2872_s13 }
 0x495   : > { %v3236_v26 = vpop.permute.xlu1 %1638 }
 0x496   : > { %v3234_v23 = vpop.permute.xlu0 %1636  ;;  %5674 = vst [vmem:[#allocation20_spill] sm:$0xff] %v3236_v26 }
 0x497   : > { %5673 = vst [vmem:[#allocation19_spill] sm:$0xff] %v3234_v23  ;;  %694 = vrot.lane.b32.xlu1 %v3220_v16, %s2873_s14 }
 0x498   : > { %656 = vrot.lane.b32.xlu0 %v3217_v15, %s2872_s13  ;;  %s2894_s13 = smov 64  }
 0x499   : > { %v3244_v5 = vpop.permute.xlu1 %1654 }
 0x49a   : > { %v3242_v2 = vpop.permute.xlu0 %1640  ;;  %5676 = vst [vmem:[#allocation22_spill] sm:$0xff] %v3244_v5 }
 0x49b   : > { %5675 = vst [vmem:[#allocation21_spill] sm:$0xff] %v3242_v2  ;;  %711 = vrot.lane.b32.xlu1 %v3206_v12, %s2874_s17 }
 0x49c   : > { %692 = vrot.lane.b32.xlu0 %v3206_v12, %s2873_s14 }
 0x49d   : > { %v3252_v9 = vpop.permute.xlu1 %1658 }
 0x49e   : > { %v3250_v8 = vpop.permute.xlu0 %1656  ;;  %5678 = vst [vmem:[#allocation24_spill] sm:$0xff] %v3252_v9 }
 0x49f   : > { %5677 = vst [vmem:[#allocation23_spill] sm:$0xff] %v3250_v8  ;;  %715 = vrot.lane.b32.xlu1 %v3217_v15, %s2874_s17 }
 0x4a0   : > { %696 = vrot.lane.b32.xlu0 %v3217_v15, %s2873_s14  ;;  %s2895_s14 = smov 63  }
 0x4a1   : > { %v3260_v28 = vpop.permute.xlu1 %1674 }
 0x4a2   : > { %v3258_v27 = vpop.permute.xlu0 %1672  ;;  %5680 = vst [vmem:[#allocation26_spill] sm:$0xff] %v3260_v28 }
 0x4a3   : > { %5679 = vst [vmem:[#allocation25_spill] sm:$0xff] %v3258_v27  ;;  %732 = vrot.lane.b32.xlu1 %v3220_v16, %s2875_s18 }
 0x4a4   : > { %713 = vrot.lane.b32.xlu0 %v3220_v16, %s2874_s17  ;;  %s2896_s17 = smov 62  }
 0x4a5   : > { %v3268_v10 = vpop.permute.xlu1 %1690 }
 0x4a6   : > { %v3266_v29 = vpop.permute.xlu0 %1676  ;;  %5682 = vst [vmem:[#allocation28_spill] sm:$0xff] %v3268_v10 }
 0x4a7   : > { %5681 = vst [vmem:[#allocation27_spill] sm:$0xff] %v3266_v29  ;;  %749 = vrot.lane.b32.xlu1 %v3206_v12, %s2876_s19 }
 0x4a8   : > { %730 = vrot.lane.b32.xlu0 %v3206_v12, %s2875_s18 }
 0x4a9   : > { %v3276_v11 = vpop.permute.xlu1 %1694 }
 0x4aa   : > { %v3274_v30 = vpop.permute.xlu0 %1692  ;;  %5684 = vst [vmem:[#allocation30_spill] sm:$0xff] %v3276_v11 }
 0x4ab   : > { %5683 = vst [vmem:[#allocation29_spill] sm:$0xff] %v3274_v30  ;;  %753 = vrot.lane.b32.xlu1 %v3217_v15, %s2876_s19 }
 0x4ac   : > { %734 = vrot.lane.b32.xlu0 %v3217_v15, %s2875_s18  ;;  %s2897_s18 = smov 60  }
 0x4ad   : > { %v3284_v32 = vpop.permute.xlu1 %1710 }
 0x4ae   : > { %v3282_v31 = vpop.permute.xlu0 %1708  ;;  %5686 = vst [vmem:[#allocation32_spill] sm:$0xff] %v3284_v32 }
 0x4af   : > { %5685 = vst [vmem:[#allocation31_spill] sm:$0xff] %v3282_v31  ;;  %770 = vrot.lane.b32.xlu1 %v3220_v16, %s2877_s20 }
 0x4b0   : > { %751 = vrot.lane.b32.xlu0 %v3220_v16, %s2876_s19  ;;  %s5595_s19 = smov 59  }
 0x4b1   : > { %v3292_v34 = vpop.permute.xlu1 %1726 }
 0x4b2   : > { %v3290_v33 = vpop.permute.xlu0 %1712  ;;  %5688 = vst [vmem:[#allocation34_spill] sm:$0xff] %v3292_v34 }
 0x4b3   : > { %5687 = vst [vmem:[#allocation33_spill] sm:$0xff] %v3290_v33  ;;  %787 = vrot.lane.b32.xlu1 %v3206_v12, %s2878_s21 }
 0x4b4   : > { %768 = vrot.lane.b32.xlu0 %v3206_v12, %s2877_s20 }
 0x4b5   : > { %v3300_v36 = vpop.permute.xlu1 %1730 }
 0x4b6   : > { %v3298_v35 = vpop.permute.xlu0 %1728  ;;  %5690 = vst [vmem:[#allocation36_spill] sm:$0xff] %v3300_v36 }
 0x4b7   : > { %5689 = vst [vmem:[#allocation35_spill] sm:$0xff] %v3298_v35  ;;  %791 = vrot.lane.b32.xlu1 %v3217_v15, %s2878_s21 }
 0x4b8   : > { %772 = vrot.lane.b32.xlu0 %v3217_v15, %s2877_s20  ;;  %s5593_s20 = smov 58  }
 0x4b9   : > { %v3308_v38 = vpop.permute.xlu1 %1764 }
 0x4ba   : > { %v3306_v37 = vpop.permute.xlu0 %1766  ;;  %5692 = vst [vmem:[#allocation38_spill] sm:$0xff] %v3308_v38 }
 0x4bb   : > { %5691 = vst [vmem:[#allocation37_spill] sm:$0xff] %v3306_v37  ;;  %827 = vrot.lane.b32.xlu1 %v3206_v12, %s2879_s22 }
 0x4bc   : > { %789 = vrot.lane.b32.xlu0 %v3220_v16, %s2878_s21  ;;  %s5591_s21 = smov 48  }
 0x4bd   : > { %v3316_v40 = vpop.permute.xlu1 %1768 }
 0x4be   : > { %v3314_v39 = vpop.permute.xlu0 %1782  ;;  %5694 = vst [vmem:[#allocation40_spill] sm:$0xff] %v3316_v40 }
 0x4bf   : > { %5693 = vst [vmem:[#allocation39_spill] sm:$0xff] %v3314_v39  ;;  %831 = vrot.lane.b32.xlu1 %v3217_v15, %s2879_s22 }
 0x4c0   : > { %829 = vrot.lane.b32.xlu0 %v3220_v16, %s2879_s22  ;;  %s5589_s22 = smov 47  }
 0x4c1   : > { %v3324_v42 = vpop.permute.xlu1 %1784 }
 0x4c2   : > { %v3322_v41 = vpop.permute.xlu0 %1786  ;;  %5696 = vst [vmem:[#allocation42_spill] sm:$0xff] %v3324_v42 }
 0x4c3   : > { %5695 = vst [vmem:[#allocation41_spill] sm:$0xff] %v3322_v41  ;;  %848 = vrot.lane.b32.xlu1 %v3220_v16, %s2880_s24 }
 0x4c4   : > { %846 = vrot.lane.b32.xlu0 %v3206_v12, %s2880_s24 }
 0x4c5   : > { %v3332_v44 = vpop.permute.xlu1 %1800 }
 0x4c6   : > { %v3330_v43 = vpop.permute.xlu0 %1802  ;;  %5698 = vst [vmem:[#allocation44_spill] sm:$0xff] %v3332_v44 }
 0x4c7   : > { %5697 = vst [vmem:[#allocation43_spill] sm:$0xff] %v3330_v43  ;;  %865 = vrot.lane.b32.xlu1 %v3206_v12, %s2881_s25 }
 0x4c8   : > { %850 = vrot.lane.b32.xlu0 %v3217_v15, %s2880_s24  ;;  %s5585_s24 = smov 46  }
 0x4c9   : > { %v3340_v46 = vpop.permute.xlu1 %1804 }
 0x4ca   : > { %v3338_v45 = vpop.permute.xlu0 %1818  ;;  %5700 = vst [vmem:[#allocation46_spill] sm:$0xff] %v3340_v46 }
 0x4cb   : > { %5699 = vst [vmem:[#allocation45_spill] sm:$0xff] %v3338_v45  ;;  %869 = vrot.lane.b32.xlu1 %v3217_v15, %s2881_s25 }
 0x4cc   : > { %867 = vrot.lane.b32.xlu0 %v3220_v16, %s2881_s25  ;;  %s5583_s25 = smov 44  }
 0x4cd   : > { %v3348_v48 = vpop.permute.xlu1 %1820 }
 0x4ce   : > { %v3346_v47 = vpop.permute.xlu0 %1822  ;;  %5702 = vst [vmem:[#allocation48_spill] sm:$0xff] %v3348_v48 }
 0x4cf   : > { %5701 = vst [vmem:[#allocation47_spill] sm:$0xff] %v3346_v47  ;;  %886 = vrot.lane.b32.xlu1 %v3220_v16, %s2882_s27 }
 0x4d0   : > { %884 = vrot.lane.b32.xlu0 %v3206_v12, %s2882_s27 }
 0x4d1   : > { %v3356_v50 = vpop.permute.xlu1 %1836 }
 0x4d2   : > { %v3354_v49 = vpop.permute.xlu0 %1838  ;;  %5704 = vst [vmem:[#allocation50_spill] sm:$0xff] %v3356_v50 }
 0x4d3   : > { %5703 = vst [vmem:[#allocation49_spill] sm:$0xff] %v3354_v49  ;;  %903 = vrot.lane.b32.xlu1 %v3206_v12, %s2883_s28 }
 0x4d4   : > { %888 = vrot.lane.b32.xlu0 %v3217_v15, %s2882_s27  ;;  %s5579_s27 = smov 43  }
 0x4d5   : > { %v3364_v52 = vpop.permute.xlu1 %1840 }
 0x4d6   : > { %v3362_v51 = vpop.permute.xlu0 %1854  ;;  %5706 = vst [vmem:[#allocation52_spill] sm:$0xff] %v3364_v52 }
 0x4d7   : > { %5705 = vst [vmem:[#allocation51_spill] sm:$0xff] %v3362_v51  ;;  %907 = vrot.lane.b32.xlu1 %v3217_v15, %s2883_s28 }
 0x4d8   : > { %905 = vrot.lane.b32.xlu0 %v3220_v16, %s2883_s28  ;;  %s5577_s28 = smov 42  }
 0x4d9   : > { %v3372_v54 = vpop.permute.xlu1 %1856 }
 0x4da   : > { %v3370_v53 = vpop.permute.xlu0 %1858  ;;  %5708 = vst [vmem:[#allocation54_spill] sm:$0xff] %v3372_v54 }
 0x4db   : > { %5707 = vst [vmem:[#allocation53_spill] sm:$0xff] %v3370_v53  ;;  %924 = vrot.lane.b32.xlu1 %v3220_v16, %s2884_s29 }
 0x4dc   : > { %922 = vrot.lane.b32.xlu0 %v3206_v12, %s2884_s29 }
 0x4dd   : > { %v3380_v56 = vpop.permute.xlu1 %1894 }
 0x4de   : > { %v3378_v55 = vpop.permute.xlu0 %1892  ;;  %5710 = vst [vmem:[#allocation56_spill] sm:$0xff] %v3380_v56 }
 0x4df   : > { %5709 = vst [vmem:[#allocation55_spill] sm:$0xff] %v3378_v55  ;;  %964 = vrot.lane.b32.xlu1 %v3220_v16, %s2885_s30 }
 0x4e0   : > { %926 = vrot.lane.b32.xlu0 %v3217_v15, %s2884_s29  ;;  %s5575_s29 = smov 32  }
 0x4e1   : > { %v3388_v58 = vpop.permute.xlu1 %1910 }
 0x4e2   : > { %v3386_v57 = vpop.permute.xlu0 %1896  ;;  %5712 = vst [vmem:[#allocation58_spill] sm:$0xff] %v3388_v58 }
 0x4e3   : > { %5711 = vst [vmem:[#allocation57_spill] sm:$0xff] %v3386_v57  ;;  %981 = vrot.lane.b32.xlu1 %v3206_v12, %s2886_s5 }
 0x4e4   : > { %962 = vrot.lane.b32.xlu0 %v3206_v12, %s2885_s30 }
 0x4e5   : > { %v3396_v60 = vpop.permute.xlu1 %1914 }
 0x4e6   : > { %v3394_v59 = vpop.permute.xlu0 %1912  ;;  %5714 = vst [vmem:[#allocation60_spill] sm:$0xff] %v3396_v60 }
 0x4e7   : > { %5713 = vst [vmem:[#allocation59_spill] sm:$0xff] %v3394_v59  ;;  %985 = vrot.lane.b32.xlu1 %v3217_v15, %s2886_s5 }
 0x4e8   : > { %966 = vrot.lane.b32.xlu0 %v3217_v15, %s2885_s30  ;;  %s5545_s30 = smov 31  }
 0x4e9   : > { %v3404_v4 = vpop.permute.xlu1 %1930 }
 0x4ea   : > { %v3402_v3 = vpop.permute.xlu0 %1928  ;;  %5716 = vst [vmem:[#allocation62_spill] sm:$0xff] %v3404_v4 }
 0x4eb   : > { %5715 = vst [vmem:[#allocation61_spill] sm:$0xff] %v3402_v3  ;;  %1002 = vrot.lane.b32.xlu1 %v3220_v16, %s2887_s6 }
 0x4ec   : > { %983 = vrot.lane.b32.xlu0 %v3220_v16, %s2886_s5  ;;  %s5540_s5 = smov 30  }
 0x4ed   : > { %v3412_v1 = vpop.permute.xlu1 %1946 }
 0x4ee   : > { %v3410_v25 = vpop.permute.xlu0 %1932  ;;  %5718 = vst [vmem:[#allocation64_spill] sm:$0xff] %v3412_v1 }
 0x4ef   : > { %5717 = vst [vmem:[#allocation63_spill] sm:$0xff] %v3410_v25  ;;  %1019 = vrot.lane.b32.xlu1 %v3206_v12, %s2888_s7 }
 0x4f0   : > { %1000 = vrot.lane.b32.xlu0 %v3206_v12, %s2887_s6 }
 0x4f1   : > { %v3420_v22 = vpop.permute.xlu1 %1950 }
 0x4f2   : > { %v3418_v20 = vpop.permute.xlu0 %1948  ;;  %5720 = vst [vmem:[#allocation66_spill] sm:$0xff] %v3420_v22 }
 0x4f3   : > { %5719 = vst [vmem:[#allocation65_spill] sm:$0xff] %v3418_v20  ;;  %1023 = vrot.lane.b32.xlu1 %v3217_v15, %s2888_s7 }
 0x4f4   : > { %1004 = vrot.lane.b32.xlu0 %v3217_v15, %s2887_s6  ;;  %s5543_s6 = smov 28  }
 0x4f5   : > { %v3428_v0 = vpop.permute.xlu1 %1966 }
 0x4f6   : > { %v3426_v24 = vpop.permute.xlu0 %1964  ;;  %5722 = vst [vmem:[#allocation68_spill] sm:$0xff] %v3428_v0 }
 0x4f7   : > { %5721 = vst [vmem:[#allocation67_spill] sm:$0xff] %v3426_v24  ;;  %1040 = vrot.lane.b32.xlu1 %v3220_v16, %s2889_s8 }
 0x4f8   : > { %1021 = vrot.lane.b32.xlu0 %v3220_v16, %s2888_s7  ;;  %s2644_s7 = sld [smem:[#allocation2 + $0x34]] }
 0x4f9   : > { %v3436_v21 = vpop.permute.xlu1 %1982 }
 0x4fa   : > { %v3434_v19 = vpop.permute.xlu0 %1968  ;;  %5724 = vst [vmem:[#allocation70_spill] sm:$0xff] %v3436_v21 }
 0x4fb   : > { %5723 = vst [vmem:[#allocation69_spill] sm:$0xff] %v3434_v19  ;;  %1057 = vrot.lane.b32.xlu1 %v3206_v12, %s2890_s9 }
 0x4fc   : > { %1038 = vrot.lane.b32.xlu0 %v3206_v12, %s2889_s8 }
 0x4fd   : > { %v3444_v24 = vpop.permute.xlu1 %633 }
 0x4fe   : > { %v3442_v22 = vpop.permute.xlu0 %1984 }
 0x4ff   : > { %5725 = vst [vmem:[#allocation71_spill] sm:$0xff] %v3442_v22  ;;  %1061 = vrot.lane.b32.xlu1 %v3217_v15, %s2890_s9 }
 0x500   : > { %1042 = vrot.lane.b32.xlu0 %v3217_v15, %s2889_s8  ;;  %s5551_s8 = smov 27  }
 0x501   : > { %v3452_v19 = vpop.permute.xlu1 %637 }
 0x502   : > { %v3450_v0 = vpop.permute.xlu0 %635 }
 0x503   : > { %1097 = vrot.lane.b32.xlu1 %v3206_v12, %s2891_s10 }
 0x504   : > { %1059 = vrot.lane.b32.xlu0 %v3220_v16, %s2890_s9 }
 0x505   : > { %v3460_v22 = vpop.permute.xlu1 %654 }
 0x506   : > { %v3458_v21 = vpop.permute.xlu0 %652 }
 0x507   : > { %1101 = vrot.lane.b32.xlu1 %v3217_v15, %s2891_s10 }
 0x508   : > { %1099 = vrot.lane.b32.xlu0 %v3220_v16, %s2891_s10 }
 0x509   : > { %v3468_v20 = vpop.permute.xlu1 %694 }
 0x50a   : > { %v3466_v1 = vpop.permute.xlu0 %656 }
 0x50b   : > { %1118 = vrot.lane.b32.xlu1 %v3220_v16, %s2892_s11 }
 0x50c   : > { %1116 = vrot.lane.b32.xlu0 %v3206_v12, %s2892_s11 }
 0x50d   : > { %v3476_v3 = vpop.permute.xlu1 %711 }
 0x50e   : > { %v3474_v25 = vpop.permute.xlu0 %692 }
 0x50f   : > { %1135 = vrot.lane.b32.xlu1 %v3206_v12, %s2893_s12 }
 0x510   : > { %1120 = vrot.lane.b32.xlu0 %v3217_v15, %s2892_s11 }
 0x511   : > { %v3484_v60 = vpop.permute.xlu1 %715 }
 0x512   : > { %v3482_v4 = vpop.permute.xlu0 %696 }
 0x513   : > { %1139 = vrot.lane.b32.xlu1 %v3217_v15, %s2893_s12 }
 0x514   : > { %1137 = vrot.lane.b32.xlu0 %v3220_v16, %s2893_s12 }
 0x515   : > { %v3492_v59 = vpop.permute.xlu1 %732 }
 0x516   : > { %v3490_v58 = vpop.permute.xlu0 %713 }
 0x517   : > { %1156 = vrot.lane.b32.xlu1 %v3220_v16, %s2894_s13 }
 0x518   : > { %1154 = vrot.lane.b32.xlu0 %v3206_v12, %s2894_s13 }
 0x519   : > { %v3500_v55 = vpop.permute.xlu1 %749 }
 0x51a   : > { %v3498_v57 = vpop.permute.xlu0 %730 }
 0x51b   : > { %1173 = vrot.lane.b32.xlu1 %v3206_v12, %s2895_s14 }
 0x51c   : > { %1158 = vrot.lane.b32.xlu0 %v3217_v15, %s2894_s13 }
 0x51d   : > { %v3508_v53 = vpop.permute.xlu1 %753 }
 0x51e   : > { %v3506_v56 = vpop.permute.xlu0 %734 }
 0x51f   : > { %1177 = vrot.lane.b32.xlu1 %v3217_v15, %s2895_s14 }
 0x520   : > { %1175 = vrot.lane.b32.xlu0 %v3220_v16, %s2895_s14 }
 0x521   : > { %v3516_v54 = vpop.permute.xlu1 %770 }
 0x522   : > { %v3514_v51 = vpop.permute.xlu0 %751 }
 0x523   : > { %1194 = vrot.lane.b32.xlu1 %v3220_v16, %s2896_s17 }
 0x524   : > { %1192 = vrot.lane.b32.xlu0 %v3206_v12, %s2896_s17 }
 0x525   : > { %v3524_v50 = vpop.permute.xlu1 %787 }
 0x526   : > { %v3522_v52 = vpop.permute.xlu0 %768 }
 0x527   : > { %1234 = vrot.lane.b32.xlu1 %v3220_v16, %s2897_s18 }
 0x528   : > { %1196 = vrot.lane.b32.xlu0 %v3217_v15, %s2896_s17 }
 0x529   : > { %v3532_v47 = vpop.permute.xlu1 %791 }
 0x52a   : > { %v3530_v49 = vpop.permute.xlu0 %772 }
 0x52b   : > { %1251 = vrot.lane.b32.xlu1 %v3206_v12, %s5595_s19 }
 0x52c   : > { %1232 = vrot.lane.b32.xlu0 %v3206_v12, %s2897_s18 }
 0x52d   : > { %v3540_v48 = vpop.permute.xlu1 %827 }
 0x52e   : > { %v3538_v45 = vpop.permute.xlu0 %789 }
 0x52f   : > { %1255 = vrot.lane.b32.xlu1 %v3217_v15, %s5595_s19 }
 0x530   : > { %1236 = vrot.lane.b32.xlu0 %v3217_v15, %s2897_s18 }
 0x531   : > { %v3548_v44 = vpop.permute.xlu1 %831 }
 0x532   : > { %v3546_v46 = vpop.permute.xlu0 %829 }
 0x533   : > { %1272 = vrot.lane.b32.xlu1 %v3220_v16, %s5593_s20 }
 0x534   : > { %1253 = vrot.lane.b32.xlu0 %v3220_v16, %s5595_s19 }
 0x535   : > { %v3556_v41 = vpop.permute.xlu1 %848 }
 0x536   : > { %v3554_v43 = vpop.permute.xlu0 %846 }
 0x537   : > { %1289 = vrot.lane.b32.xlu1 %v3206_v12, %s5591_s21 }
 0x538   : > { %1270 = vrot.lane.b32.xlu0 %v3206_v12, %s5593_s20 }
 0x539   : > { %v3564_v42 = vpop.permute.xlu1 %865 }
 0x53a   : > { %v3562_v39 = vpop.permute.xlu0 %850 }
 0x53b   : > { %1293 = vrot.lane.b32.xlu1 %v3217_v15, %s5591_s21 }
 0x53c   : > { %1274 = vrot.lane.b32.xlu0 %v3217_v15, %s5593_s20  ;;  %s4033_s20 = sld [smem:[#allocation2 + $0x13]] }
 0x53d   : > { %v3572_v38 = vpop.permute.xlu1 %869 }
 0x53e   : > { %v3570_v40 = vpop.permute.xlu0 %867 }
 0x53f   : > { %1310 = vrot.lane.b32.xlu1 %v3220_v16, %s5589_s22 }
 0x540   : > { %1291 = vrot.lane.b32.xlu0 %v3220_v16, %s5591_s21  ;;  %s4020_s21 = sld [smem:[#allocation2 + $0x12]] }
 0x541   : > { %v3580_v36 = vpop.permute.xlu1 %886 }
 0x542   : > { %v3578_v37 = vpop.permute.xlu0 %884 }
 0x543   : > { %1327 = vrot.lane.b32.xlu1 %v3206_v12, %s5585_s24 }
 0x544   : > { %1308 = vrot.lane.b32.xlu0 %v3206_v12, %s5589_s22 }
 0x545   : > { %v3588_v35 = vpop.permute.xlu1 %903 }
 0x546   : > { %v3586_v34 = vpop.permute.xlu0 %888 }
 0x547   : > { %1331 = vrot.lane.b32.xlu1 %v3217_v15, %s5585_s24 }
 0x548   : > { %1312 = vrot.lane.b32.xlu0 %v3217_v15, %s5589_s22  ;;  %s4018_s22 = sld [smem:[#allocation2 + $0x10]] }
 0x549   : > { %v3596_v31 = vpop.permute.xlu1 %907 }
 0x54a   : > { %v3594_v33 = vpop.permute.xlu0 %905 }
 0x54b   : > { %1367 = vrot.lane.b32.xlu1 %v3206_v12, %s5583_s25 }
 0x54c   : > { %1329 = vrot.lane.b32.xlu0 %v3220_v16, %s5585_s24  ;;  %s3985_s24 = sld [smem:[#allocation2 + $0xb]] }
 0x54d   : > { %v3604_v11 = vpop.permute.xlu1 %924 }
 0x54e   : > { %v3602_v32 = vpop.permute.xlu0 %922 }
 0x54f   : > { %1371 = vrot.lane.b32.xlu1 %v3217_v15, %s5583_s25 }
 0x550   : > { %1369 = vrot.lane.b32.xlu0 %v3220_v16, %s5583_s25  ;;  %s3983_s25 = sld [smem:[#allocation2 + $0x9]] }
 0x551   : > { %v3612_v30 = vpop.permute.xlu1 %964 }
 0x552   : > { %v3610_v10 = vpop.permute.xlu0 %926  ;;  %5726 = vst [vmem:[#allocation72_spill] sm:$0xff] %v3612_v30 }
 0x553   : > { %1388 = vrot.lane.b32.xlu1 %v3220_v16, %s5579_s27 }
 0x554   : > { %1386 = vrot.lane.b32.xlu0 %v3206_v12, %s5579_s27 }
 0x555   : > { %v3620_v27 = vpop.permute.xlu1 %981 }
 0x556   : > { %v3618_v29 = vpop.permute.xlu0 %962  ;;  %5728 = vst [vmem:[#allocation74_spill] sm:$0xff] %v3620_v27 }
 0x557   : > { %5727 = vst [vmem:[#allocation73_spill] sm:$0xff] %v3618_v29  ;;  %1405 = vrot.lane.b32.xlu1 %v3206_v12, %s5577_s28 }
 0x558   : > { %1390 = vrot.lane.b32.xlu0 %v3217_v15, %s5579_s27  ;;  %s3978_s27 = sld [smem:[#allocation2 + $0x7]] }
 0x559   : > { %v3628_v9 = vpop.permute.xlu1 %985 }
 0x55a   : > { %v3626_v28 = vpop.permute.xlu0 %966  ;;  %5730 = vst [vmem:[#allocation76_spill] sm:$0xff] %v3628_v9  ;;  %v1744_v9 = vstv %s2651_s23  ;;  %s2914_s23 = smov 93  }
 0x55b   : > { %5729 = vst [vmem:[#allocation75_spill] sm:$0xff] %v3626_v28  ;;  %1409 = vrot.lane.b32.xlu1 %v3217_v15, %s5577_s28 }
 0x55c   : > { %1407 = vrot.lane.b32.xlu0 %v3220_v16, %s5577_s28  ;;  %s3969_s28 = sld [smem:[#allocation2 + $0x6]] }
 0x55d   : > { %v3636_v8 = vpop.permute.xlu1 %1002 }
 0x55e   : > { %v3634_v5 = vpop.permute.xlu0 %983  ;;  %5732 = vst [vmem:[#allocation78_spill] sm:$0xff] %v3636_v8 }
 0x55f   : > { %5731 = vst [vmem:[#allocation77_spill] sm:$0xff] %v3634_v5  ;;  %1426 = vrot.lane.b32.xlu1 %v3220_v16, %s5575_s29 }
 0x560   : > { %1424 = vrot.lane.b32.xlu0 %v3206_v12, %s5575_s29 }
 0x561   : > { %v3644_v23 = vpop.permute.xlu1 %1019 }
 0x562   : > { %v3642_v2 = vpop.permute.xlu0 %1000  ;;  %5734 = vst [vmem:[#allocation80_spill] sm:$0xff] %v3644_v23 }
 0x563   : > { %5733 = vst [vmem:[#allocation79_spill] sm:$0xff] %v3642_v2  ;;  %1442 = vrot.lane.b32.xlu1 %v3206_v12, %s5545_s30 }
 0x564   : > { %1428 = vrot.lane.b32.xlu0 %v3217_v15, %s5575_s29  ;;  %s3963_s29 = sld [smem:[#allocation2 + $0x4]] }
 0x565   : > { %v3652_v17 = vpop.permute.xlu1 %1023 }
 0x566   : > { %v3650_v26 = vpop.permute.xlu0 %1004  ;;  %5736 = vst [vmem:[#allocation82_spill] sm:$0xff] %v3652_v17 }
 0x567   : > { %5735 = vst [vmem:[#allocation81_spill] sm:$0xff] %v3650_v26  ;;  %1446 = vrot.lane.b32.xlu1 %v3217_v15, %s5545_s30  ;;  %v1616_v26 = vstv %s2644_s7  ;;  %s2595_s7 = sld [smem:[#allocation2 + $0x3]] }
 0x568   : > { %1444 = vrot.lane.b32.xlu0 %v3220_v16, %s5545_s30  ;;  %v1617_v2 = vmul.f32 %v1616_v26, %v3080_v62  ;;  %s2912_s30 = smov 125   ;;  %v1619_v8 = vmul.f32 %v1616_v26, %v3087_v63  ;;  %v1618_v27 = vmul.f32 %v1616_v26, %v3077_v61 }
 0x569   : > { %v3660_v18 = vpop.permute.xlu1 %1040 }
 0x56a   : > { %v3658_v13 = vpop.permute.xlu0 %1021  ;;  %5738 = vst [vmem:[#allocation84_spill] sm:$0xff] %v3660_v18 }
 0x56b   : > { %5737 = vst [vmem:[#allocation83_spill] sm:$0xff] %v3658_v13  ;;  %1463 = vrot.lane.b32.xlu1 %v3220_v16, %s5540_s5 }
 0x56c   : > { %1461 = vrot.lane.b32.xlu0 %v3206_v12, %s5540_s5 }
 0x56d   : > { %v3668_v17 = vpop.permute.xlu1 %1057 }
 0x56e   : > { %v3666_v23 = vpop.permute.xlu0 %1038  ;;  %5740 = vst [vmem:[#allocation86_spill] sm:$0xff] %v3668_v17 }
 0x56f   : > { %5739 = vst [vmem:[#allocation85_spill] sm:$0xff] %v3666_v23  ;;  %1503 = vrot.lane.b32.xlu1 %v3220_v16, %s5543_s6 }
 0x570   : > { %1465 = vrot.lane.b32.xlu0 %v3217_v15, %s5540_s5  ;;  %s5555_s5 = smov 26  }
 0x571   : > { %v3676_v18 = vpop.permute.xlu1 %1061 }
 0x572   : > { %v3674_v13 = vpop.permute.xlu0 %1042  ;;  %5742 = vst [vmem:[#allocation88_spill] sm:$0xff] %v3676_v18 }
 0x573   : > { %5741 = vst [vmem:[#allocation87_spill] sm:$0xff] %v3674_v13  ;;  %1520 = vrot.lane.b32.xlu1 %v3206_v12, %s5551_s8 }
 0x574   : > { %1501 = vrot.lane.b32.xlu0 %v3206_v12, %s5543_s6 }
 0x575   : > { %v3684_v23 = vpop.permute.xlu1 %1097 }
 0x576   : > { %v3682_v17 = vpop.permute.xlu0 %1059  ;;  %5744 = vst [vmem:[#allocation90_spill] sm:$0xff] %v3684_v23 }
 0x577   : > { %5743 = vst [vmem:[#allocation89_spill] sm:$0xff] %v3682_v17  ;;  %1524 = vrot.lane.b32.xlu1 %v3217_v15, %s5551_s8 }
 0x578   : > { %1505 = vrot.lane.b32.xlu0 %v3217_v15, %s5543_s6  ;;  %s2658_s6 = sld [smem:[#allocation2 + $0x42]] }
 0x579   : > { %v3692_v18 = vpop.permute.xlu1 %1101 }
 0x57a   : > { %v3690_v13 = vpop.permute.xlu0 %1099  ;;  %5746 = vst [vmem:[#allocation92_spill] sm:$0xff] %v3692_v18 }
 0x57b   : > { %5745 = vst [vmem:[#allocation91_spill] sm:$0xff] %v3690_v13  ;;  %1541 = vrot.lane.b32.xlu1 %v3220_v16, %s5555_s5 }
 0x57c   : > { %1522 = vrot.lane.b32.xlu0 %v3220_v16, %s5551_s8  ;;  %s2913_s8 = smov 109  }
 0x57d   : > { %v3700_v17 = vpop.permute.xlu1 %1118 }
 0x57e   : > { %v3698_v23 = vpop.permute.xlu0 %1116  ;;  %5748 = vst [vmem:[#allocation94_spill] sm:$0xff] %v3700_v17  ;;  %v1872_v5 = vstv %s2658_s6  ;;  %s2665_s6 = sld [smem:[#allocation2 + $0x49]] }
 0x57f   : > { %5747 = vst [vmem:[#allocation93_spill] sm:$0xff] %v3698_v23  ;;  %1623 = vrot.lane.b32.xlu1 %v1617_v2, %s2912_s30  ;;  %v1746_v2 = vmul.f32 %v1744_v9, %v3077_v61 }
 0x580   : > { %1539 = vrot.lane.b32.xlu0 %v3206_v12, %s5555_s5 }
 0x581   : > { %v3708_v13 = vpop.permute.xlu1 %1135 }
 0x582   : > { %v3706_v18 = vpop.permute.xlu0 %1120  ;;  %5750 = vst [vmem:[#allocation96_spill] sm:$0xff] %v3708_v13 }
 0x583   : > { %5749 = vst [vmem:[#allocation95_spill] sm:$0xff] %v3706_v18  ;;  %1627 = vrot.lane.b32.xlu1 %v1619_v8, %s2912_s30  ;;  %v1745_v8 = vmul.f32 %v1744_v9, %v3080_v62 }
 0x584   : > { %1543 = vrot.lane.b32.xlu0 %v3217_v15, %s5555_s5  ;;  %v2000_v28 = vstv %s2665_s6  ;;  %s2915_s5 = smov 77   ;;  %s3927_s6 = sld [smem:[#allocation2 + $0x5e]] }
 0x585   : > { %v3716_v17 = vpop.permute.xlu1 %1139 }
 0x586   : > { %v3714_v23 = vpop.permute.xlu0 %1137  ;;  %5752 = vst [vmem:[#allocation98_spill] sm:$0xff] %v3716_v17 }
 0x587   : > { %5751 = vst [vmem:[#allocation97_spill] sm:$0xff] %v3714_v23  ;;  %1753 = vrot.lane.b32.xlu1 %v1746_v2, %s2913_s8  ;;  %v1873_v23 = vmul.f32 %v1872_v5, %v3080_v62  ;;  %v1875_v2 = vmul.f32 %v1872_v5, %v3087_v63 }
 0x588   : > { %1625 = vrot.lane.b32.xlu0 %v1618_v27, %s2912_s30  ;;  %v1747_v27 = vmul.f32 %v1744_v9, %v3087_v63 }
 0x589   : > { %v3724_v18 = vpop.permute.xlu1 %1156 }
 0x58a   : > { %v3722_v13 = vpop.permute.xlu0 %1154  ;;  %5754 = vst [vmem:[#allocation100_spill] sm:$0xff] %v3724_v18 }
 0x58b   : > { %5753 = vst [vmem:[#allocation99_spill] sm:$0xff] %v3722_v13  ;;  %1879 = vrot.lane.b32.xlu1 %v1873_v23, %s2914_s23  ;;  %v671_v13 = vstv %s2595_s7  ;;  %v1874_v23 = vmul.f32 %v1872_v5, %v3077_v61  ;;  %s2602_s7 = sld [smem:[#allocation2 + $0xa]] }
 0x58c   : > { %1751 = vrot.lane.b32.xlu0 %v1745_v8, %s2913_s8 }
 0x58d   : > { %v3732_v17 = vpop.permute.xlu1 %1173 }
 0x58e   : > { %v3730_v26 = vpop.permute.xlu0 %1158  ;;  %5756 = vst [vmem:[#allocation102_spill] sm:$0xff] %v3732_v17 }
 0x58f   : > { %5755 = vst [vmem:[#allocation101_spill] sm:$0xff] %v3730_v26  ;;  %1883 = vrot.lane.b32.xlu1 %v1875_v2, %s2914_s23  ;;  %v672_v26 = vmul.f32 %v671_v13, %v3206_v12  ;;  %v674_v2 = vmul.f32 %v671_v13, %v3217_v15 }
 0x590   : > { %1755 = vrot.lane.b32.xlu0 %v1747_v27, %s2913_s8  ;;  %v673_v27 = vmul.f32 %v671_v13, %v3220_v16 }
 0x591   : > { %v3740_v8 = vpop.permute.xlu1 %1177 }
 0x592   : > { %v3738_v18 = vpop.permute.xlu0 %1175  ;;  %5758 = vst [vmem:[#allocation104_spill] sm:$0xff] %v3740_v8 }
 0x593   : > { %5757 = vst [vmem:[#allocation103_spill] sm:$0xff] %v3738_v18  ;;  %678 = vrot.lane.b32.xlu1 %v672_v26, %s2912_s30  ;;  %v2001_v26 = vmul.f32 %v2000_v28, %v3080_v62 }
 0x594   : > { %1881 = vrot.lane.b32.xlu0 %v1874_v23, %s2914_s23 }
 0x595   : > { %v3748_v17 = vpop.permute.xlu1 %1194 }
 0x596   : > { %v3746_v9 = vpop.permute.xlu0 %1192  ;;  %5760 = vst [vmem:[#allocation106_spill] sm:$0xff] %v3748_v17 }
 0x597   : > { %5759 = vst [vmem:[#allocation105_spill] sm:$0xff] %v3746_v9  ;;  %682 = vrot.lane.b32.xlu1 %v674_v2, %s2912_s30  ;;  %v2002_v2 = vmul.f32 %v2000_v28, %v3077_v61  ;;  %v806_v9 = vstv %s2602_s7  ;;  %s3929_s7 = sld [smem:[#allocation2 + $0x32]] }
 0x598   : > { %680 = vrot.lane.b32.xlu0 %v673_v27, %s2912_s30  ;;  %v2003_v27 = vmul.f32 %v2000_v28, %v3087_v63  ;;  %s2623_s30 = sld [smem:[#allocation2 + $0x1f]] }
 0x599   : > { %v3756_v8 = vpop.permute.xlu1 %1234 }
 0x59a   : > { %v3754_v5 = vpop.permute.xlu0 %1196  ;;  %5762 = vst [vmem:[#allocation108_spill] sm:$0xff] %v3756_v8 }
 0x59b   : > { %5761 = vst [vmem:[#allocation107_spill] sm:$0xff] %v3754_v5  ;;  %1986 = vrot.lane.b32.xlu1 %v3087_v63, %s2890_s9  ;;  %s2609_s9 = sld [smem:[#allocation2 + $0x11]] }
 0x59c   : > { %2007 = vrot.lane.b32.xlu0 %v2001_v26, %s2915_s5  ;;  %v807_v26 = vmul.f32 %v806_v9, %v3206_v12 }
 0x59d   : > { %v3764_v13 = vpop.permute.xlu1 %1251 }
 0x59e   : > { %v3762_v23 = vpop.permute.xlu0 %1232  ;;  %5764 = vst [vmem:[#allocation110_spill] sm:$0xff] %v3764_v13 }
 0x59f   : > { %5763 = vst [vmem:[#allocation109_spill] sm:$0xff] %v3762_v23  ;;  %2009 = vrot.lane.b32.xlu1 %v2002_v2, %s2915_s5  ;;  %v808_v2 = vmul.f32 %v806_v9, %v3220_v16  ;;  %v5571_v23 = vlaneseq }
 0x5a0   : > { %2011 = vrot.lane.b32.xlu0 %v2003_v27, %s2915_s5  ;;  %v809_v27 = vmul.f32 %v806_v9, %v3217_v15 }
 0x5a1   : > { %v3772_v5 = vpop.permute.xlu1 %1255 }
 0x5a2   : > { %v3770_v8 = vpop.permute.xlu0 %1236  ;;  %5766 = vst [vmem:[#allocation112_spill] sm:$0xff] %v3772_v5 }
 0x5a3   : > { %5765 = vst [vmem:[#allocation111_spill] sm:$0xff] %v3770_v8  ;;  %2020 = vrot.lane.b32.xlu1 %v3080_v62, %s2891_s10 }
 0x5a4   : > { %813 = vrot.lane.b32.xlu0 %v807_v26, %s2913_s8  ;;  %v941_v26 = vstv %s2609_s9  ;;  %s3936_s9 = sld [smem:[#allocation2 + $0x31]] }
 0x5a5   : > { %v3780_v28 = vpop.permute.xlu1 %1272  ;;  %v942_v9 = vmul.f32 %v941_v26, %v3206_v12 }
 0x5a6   : > { %v3778_v13 = vpop.permute.xlu0 %1253  ;;  %5768 = vst [vmem:[#allocation114_spill] sm:$0xff] %v3780_v28 }
 0x5a7   : > { %5767 = vst [vmem:[#allocation113_spill] sm:$0xff] %v3778_v13  ;;  %815 = vrot.lane.b32.xlu1 %v808_v2, %s2913_s8 }
 0x5a8   : > { %817 = vrot.lane.b32.xlu0 %v809_v27, %s2913_s8  ;;  %s5573_s8 = smov 29  }
 0x5a9   : > { %v3788_v8 = vpop.permute.xlu1 %1289 }
 0x5aa   : > { %v3786_v5 = vpop.permute.xlu0 %1270  ;;  %5770 = vst [vmem:[#allocation116_spill] sm:$0xff] %v3788_v8  ;;  %v943_v8 = vmul.f32 %v941_v26, %v3220_v16 }
 0x5ab   : > { %5769 = vst [vmem:[#allocation115_spill] sm:$0xff] %v3786_v5  ;;  %2024 = vrot.lane.b32.xlu1 %v3087_v63, %s2891_s10  ;;  %v944_v5 = vmul.f32 %v941_v26, %v3217_v15 }
 0x5ac   : > { %2022 = vrot.lane.b32.xlu0 %v3077_v61, %s2891_s10  ;;  %s2616_s10 = sld [smem:[#allocation2 + $0x18]] }
 0x5ad   : > { %v3796_v13 = vpop.permute.xlu1 %1293 }
 0x5ae   : > { %v3794_v28 = vpop.permute.xlu0 %1274  ;;  %5772 = vst [vmem:[#allocation118_spill] sm:$0xff] %v3796_v13 }
 0x5af   : > { %5771 = vst [vmem:[#allocation117_spill] sm:$0xff] %v3794_v28  ;;  %948 = vrot.lane.b32.xlu1 %v942_v9, %s2914_s23 }
 0x5b0   : > { %2038 = vrot.lane.b32.xlu0 %v3080_v62, %s2892_s11 }
 0x5b1   : > { %v3804_v2 = vpop.permute.xlu1 %1310 }
 0x5b2   : > { %v3802_v27 = vpop.permute.xlu0 %1291  ;;  %5774 = vst [vmem:[#allocation120_spill] sm:$0xff] %v3804_v2  ;;  %v1076_v26 = vstv %s2616_s10  ;;  %s3938_s10 = sld [smem:[#allocation2 + $0x33]] }
 0x5b3   : > { %5773 = vst [vmem:[#allocation119_spill] sm:$0xff] %v3802_v27  ;;  %952 = vrot.lane.b32.xlu1 %v944_v5, %s2914_s23  ;;  %v1078_v27 = vmul.f32 %v1076_v26, %v3220_v16 }
 0x5b4   : > { %950 = vrot.lane.b32.xlu0 %v943_v8, %s2914_s23  ;;  %s3925_s23 = sld [smem:[#allocation2 + $0x57]] }
 0x5b5   : > { %v3812_v28 = vpop.permute.xlu1 %1327 }
 0x5b6   : > { %v3810_v13 = vpop.permute.xlu0 %1308  ;;  %5776 = vst [vmem:[#allocation122_spill] sm:$0xff] %v3812_v28  ;;  %v1077_v28 = vmul.f32 %v1076_v26, %v3206_v12 }
 0x5b7   : > { %5775 = vst [vmem:[#allocation121_spill] sm:$0xff] %v3810_v13  ;;  %2040 = vrot.lane.b32.xlu1 %v3077_v61, %s2892_s11  ;;  %v1079_v13 = vmul.f32 %v1076_v26, %v3217_v15 }
 0x5b8   : > { %2042 = vrot.lane.b32.xlu0 %v3087_v63, %s2892_s11  ;;  %s2916_s11 = smov 61  }
 0x5b9   : > { %v3820_v2 = vpop.permute.xlu1 %1331 }
 0x5ba   : > { %v3818_v9 = vpop.permute.xlu0 %1312  ;;  %5778 = vst [vmem:[#allocation124_spill] sm:$0xff] %v3820_v2 }
 0x5bb   : > { %5777 = vst [vmem:[#allocation123_spill] sm:$0xff] %v3818_v9  ;;  %2056 = vrot.lane.b32.xlu1 %v3080_v62, %s2893_s12 }
 0x5bc   : > { %2058 = vrot.lane.b32.xlu0 %v3077_v61, %s2893_s12 }
 0x5bd   : > { %v3828_v5 = vpop.permute.xlu1 %1367 }
 0x5be   : > { %v3826_v8 = vpop.permute.xlu0 %1329  ;;  %5780 = vst [vmem:[#allocation126_spill] sm:$0xff] %v3828_v5 }
 0x5bf   : > { %5779 = vst [vmem:[#allocation125_spill] sm:$0xff] %v3826_v8  ;;  %2060 = vrot.lane.b32.xlu1 %v3087_v63, %s2893_s12  ;;  %s2630_s12 = sld [smem:[#allocation2 + $0x26]] }
 0x5c0   : > { %1083 = vrot.lane.b32.xlu0 %v1077_v28, %s2915_s5  ;;  %v1211_v28 = vstv %s2623_s30  ;;  %s3940_s30 = sld [smem:[#allocation2 + $0x35]] }
 0x5c1   : > { %v3836_v9 = vpop.permute.xlu1 %1371  ;;  %v1212_v26 = vmul.f32 %v1211_v28, %v3206_v12 }
 0x5c2   : > { %v3834_v2 = vpop.permute.xlu0 %1369  ;;  %5782 = vst [vmem:[#allocation128_spill] sm:$0xff] %v3836_v9 }
 0x5c3   : > { %5781 = vst [vmem:[#allocation127_spill] sm:$0xff] %v3834_v2  ;;  %1085 = vrot.lane.b32.xlu1 %v1078_v27, %s2915_s5 }
 0x5c4   : > { %1087 = vrot.lane.b32.xlu0 %v1079_v13, %s2915_s5  ;;  %s5581_s5 = smov 45  }
 0x5c5   : > { %v3844_v8 = vpop.permute.xlu1 %1388 }
 0x5c6   : > { %v3842_v5 = vpop.permute.xlu0 %1386  ;;  %5784 = vst [vmem:[#allocation130_spill] sm:$0xff] %v3844_v8  ;;  %v1214_v8 = vmul.f32 %v1211_v28, %v3217_v15 }
 0x5c7   : > { %5783 = vst [vmem:[#allocation129_spill] sm:$0xff] %v3842_v5  ;;  %2076 = vrot.lane.b32.xlu1 %v3077_v61, %s2894_s13  ;;  %v1213_v5 = vmul.f32 %v1211_v28, %v3220_v16  ;;  %v1346_v28 = vstv %s2630_s12  ;;  %s3946_s12 = sld [smem:[#allocation2 + $0x36]] }
 0x5c8   : > { %2074 = vrot.lane.b32.xlu0 %v3080_v62, %s2894_s13 }
 0x5c9   : > { %v3852_v2 = vpop.permute.xlu1 %1405 }
 0x5ca   : > { %v3850_v9 = vpop.permute.xlu0 %1390  ;;  %5786 = vst [vmem:[#allocation132_spill] sm:$0xff] %v3852_v2 }
 0x5cb   : > { %5785 = vst [vmem:[#allocation131_spill] sm:$0xff] %v3850_v9  ;;  %1218 = vrot.lane.b32.xlu1 %v1212_v26, %s2916_s11 }
 0x5cc   : > { %2078 = vrot.lane.b32.xlu0 %v3087_v63, %s2894_s13  ;;  %s2637_s13 = sld [smem:[#allocation2 + $0x2d]] }
 0x5cd   : > { %v3860_v27 = vpop.permute.xlu1 %1409 }
 0x5ce   : > { %v3858_v13 = vpop.permute.xlu0 %1407  ;;  %5788 = vst [vmem:[#allocation134_spill] sm:$0xff] %v3860_v27 }
 0x5cf   : > { %5787 = vst [vmem:[#allocation133_spill] sm:$0xff] %v3858_v13  ;;  %1222 = vrot.lane.b32.xlu1 %v1214_v8, %s2916_s11  ;;  %v1348_v13 = vmul.f32 %v1346_v28, %v3220_v16 }
 0x5d0   : > { %1220 = vrot.lane.b32.xlu0 %v1213_v5, %s2916_s11 }
 0x5d1   : > { %v3868_v9 = vpop.permute.xlu1 %1426 }
 0x5d2   : > { %v3866_v2 = vpop.permute.xlu0 %1424  ;;  %5790 = vst [vmem:[#allocation136_spill] sm:$0xff] %v3868_v9  ;;  %v1349_v9 = vmul.f32 %v1346_v28, %v3217_v15 }
 0x5d3   : > { %5789 = vst [vmem:[#allocation135_spill] sm:$0xff] %v3866_v2  ;;  %2092 = vrot.lane.b32.xlu1 %v3080_v62, %s2895_s14  ;;  %v1347_v2 = vmul.f32 %v1346_v28, %v3206_v12 }
 0x5d4   : > { %2094 = vrot.lane.b32.xlu0 %v3077_v61, %s2895_s14 }
 0x5d5   : > { %v3876_v27 = vpop.permute.xlu1 %1442 }
 0x5d6   : > { %v3874_v26 = vpop.permute.xlu0 %1428  ;;  %5792 = vst [vmem:[#allocation138_spill] sm:$0xff] %v3876_v27 }
 0x5d7   : > { %5791 = vst [vmem:[#allocation137_spill] sm:$0xff] %v3874_v26  ;;  %2096 = vrot.lane.b32.xlu1 %v3087_v63, %s2895_s14  ;;  %s2672_s14 = sld [smem:[#allocation2 + $0x50]] }
 0x5d8   : > { %2110 = vrot.lane.b32.xlu0 %v3080_v62, %s2896_s17 }
 0x5d9   : > { %v3884_v5 = vpop.permute.xlu1 %1446 }
 0x5da   : > { %v3882_v8 = vpop.permute.xlu0 %1444  ;;  %5794 = vst [vmem:[#allocation140_spill] sm:$0xff] %v3884_v5 }
 0x5db   : > { %5793 = vst [vmem:[#allocation139_spill] sm:$0xff] %v3882_v8  ;;  %2112 = vrot.lane.b32.xlu1 %v3077_v61, %s2896_s17 }
 0x5dc   : > { %1353 = vrot.lane.b32.xlu0 %v1347_v2, %s5581_s5  ;;  %v1480_v2 = vstv %s2637_s13  ;;  %s3948_s13 = sld [smem:[#allocation2 + $0x37]] }
 0x5dd   : > { %v3892_v26 = vpop.permute.xlu1 %1463  ;;  %v2128_v17 = vstv %s2672_s14  ;;  %s3953_s14 = sld [smem:[#allocation2 + $0x1]] }
 0x5de   : > { %v3890_v27 = vpop.permute.xlu0 %1461  ;;  %5796 = vst [vmem:[#allocation142_spill] sm:$0xff] %v3892_v26  ;;  %v1482_v26 = vmul.f32 %v1480_v2, %v3220_v16 }
 0x5df   : > { %5795 = vst [vmem:[#allocation141_spill] sm:$0xff] %v3890_v27  ;;  %1355 = vrot.lane.b32.xlu1 %v1348_v13, %s5581_s5  ;;  %v547_v13 = vand.u32 127, %v5571_v23 }
 0x5e0   : > { %1357 = vrot.lane.b32.xlu0 %v1349_v9, %s5581_s5  ;;  %v1481_v9 = vmul.f32 %v1480_v2, %v3206_v12  ;;  %s3980_s5 = sld [smem:[#allocation2 + $0x8]] }
 0x5e1   : > { %v3900_v8 = vpop.permute.xlu1 %1503 }
 0x5e2   : > { %v3898_v5 = vpop.permute.xlu0 %1465  ;;  %5798 = vst [vmem:[#allocation144_spill] sm:$0xff] %v3900_v8  ;;  %5805 = sst [smem:[#allocation151_spill]] %s3948_s13  ;;  %s5822_s13 = smov 47  }
 0x5e3   : > { %5797 = vst [vmem:[#allocation143_spill] sm:$0xff] %v3898_v5  ;;  %2148 = vrot.lane.b32.xlu1 %v3080_v62, %s2897_s18 }
 0x5e4   : > { %2114 = vrot.lane.b32.xlu0 %v3087_v63, %s2896_s17  ;;  %s3921_s17 = sld [smem:[#allocation2]] }
 0x5e5   : > { %v3908_v28 = vpop.permute.xlu1 %1520 }
 0x5e6   : > { %v3906_v27 = vpop.permute.xlu0 %1501  ;;  %5800 = vst [vmem:[#allocation146_spill] sm:$0xff] %v3908_v28  ;;  %v548_v28 = vadd.s32 128, %v547_v13 }
 0x5e7   : > { %5799 = vst [vmem:[#allocation145_spill] sm:$0xff] %v3906_v27  ;;  %1487 = vrot.lane.b32.xlu1 %v1481_v9, %s5573_s8  ;;  %v1483_v27 = vmul.f32 %v1480_v2, %v3217_v15  ;;  %v2129_v15 = vmul.f32 %v2128_v17, %v3080_v62 }
 0x5e8   : > { %2150 = vrot.lane.b32.xlu0 %v3077_v61, %s2897_s18 }
 0x5e9   : > { %v3917_v5 = vpop.permute.xlu1 %1524 }
 0x5ea   : > { %v3915_v8 = vpop.permute.xlu0 %1505  ;;  %5802 = vst [vmem:[#allocation148_spill] sm:$0xff] %v3917_v5  ;;  %v640_v5 = vsel %vm639_vm9, %v3444_v24, %v3450_v0  ;;  %v1586_v24 = vsel %vm639_vm9, %v3203_v7, %v3201_v6  ;;  %v659_v7 = vsel %vm5600_vm13, %v3458_v21, %v3460_v22 }
 0x5eb   : > { %5801 = vst [vmem:[#allocation147_spill] sm:$0xff] %v3915_v8  ;;  %1491 = vrot.lane.b32.xlu1 %v1483_v27, %s5573_s8  ;;  %v3944_v27 = vand.u32 15, %v548_v28  ;;  %v2131_v28 = vmul.f32 %v2128_v17, %v3087_v63 }
 0x5ec   : > { %1489 = vrot.lane.b32.xlu0 %v1482_v26, %s5573_s8  ;;  %v3942_v26 = vand.u32 15, %v547_v13  ;;  %v2130_v13 = vmul.f32 %v2128_v17, %v3077_v61  ;;  %s3961_s8 = sld [smem:[#allocation2 + $0x2]] }
 0x5ed   : > { %v3933_v23 = vpop.permute.xlu1 %1541  ;;  %vm574_vm7 = vcmp.ge.s32.totalorder %v3944_v27, 3  ;;  %vm5602_vm10 = vcmp.ge.s32.totalorder %v3944_v27, 2  ;;  %vm5603_vm12 = vcmp.ge.s32.totalorder %v3944_v27, 1  ;;  %vm5611_vm0 = vcmp.lt.s32.totalorder %v3944_v27, 15 }
 0x5ee   : > { %v3931_v9 = vpop.permute.xlu0 %1522  ;;  %5804 = vst [vmem:[#allocation150_spill] sm:$0xff] %v3933_v23  ;;  %vm573_vm6 = vcmp.ge.s32.totalorder %v3942_v26, 3  ;;  %vm5617_vm8 = vcmp.ge.s32.totalorder %v3942_v26, 2  ;;  %v624_v17 = vsel %vm574_vm7, %v3220_v16, 0.0  ;;  %vm5636_vm11 = vcmp.ge.s32.totalorder %v3942_v26, 1 }
 0x5ef   : > { %5803 = vst [vmem:[#allocation149_spill] sm:$0xff] %v3931_v9  ;;  %2152 = vrot.lane.b32.xlu1 %v3087_v63, %s2897_s18  ;;  %s3967_s18 = sld [smem:[#allocation2 + $0x5]]  ;;  %v623_v16 = vsel %vm573_vm6, %v3206_v12, 0.0  ;;  %v4053_v9 = vsel %vm573_vm6, %v3080_v62, 0.0  ;;  %vm593_vm15 = vcmp.lt.s32.totalorder %v3942_v26, 15  ;;  %vm599_vm4 = vcmp.lt.s32.totalorder %v3942_v26, 14 }
 0x5f0   : > { %2135 = vrot.lane.b32.xlu0 %v2129_v15, %s2916_s11  ;;  %v625_v15 = vstv %s3921_s17  ;;  %s4002_s17 = sld [smem:[#allocation2 + $0xd]]  ;;  %5816 = vst [vmem:[#allocation162_spill] sm:$0xff] %v4053_v9  ;;  %v1587_v9 = vsel %vm639_vm9, %v3201_v6, %v3214_v14  ;;  %vm606_vm2 = vcmp.lt.s32.totalorder %v3944_v27, 13 }
 0x5f1   : > { %v3957_v23 = vpop.permute.xlu1 %1623  ;;  %v4008_v29 = vmul.f32 %v625_v15, %v624_v17  ;;  %v4022_v12 = vmul.f32 %v625_v15, %v623_v16 }
 0x5f2   : > { %v3955_v2 = vpop.permute.xlu0 %1539  ;;  %5807 = vst [vmem:[#allocation153_spill] sm:$0xff] %v3957_v23  ;;  %v2256_v23 = vstv %s3925_s23  ;;  %s4010_s23 = sld [smem:[#allocation2 + $0xe]] }
 0x5f3   : > { %5806 = vst [vmem:[#allocation152_spill] sm:$0xff] %v3955_v2  ;;  %2137 = vrot.lane.b32.xlu1 %v2130_v13, %s2916_s11  ;;  %v2384_v2 = vstv %s3927_s6  ;;  %s4012_s6 = sld [smem:[#allocation2 + $0xf]]  ;;  %v4025_v17 = vmul.f32 %v2256_v23, %v3077_v61 }
 0x5f4   : > { %2139 = vrot.lane.b32.xlu0 %v2131_v28, %s2916_s11  ;;  %s4000_s11 = sld [smem:[#allocation2 + $0xc]]  ;;  %v4042_v16 = vmul.f32 %v2384_v2, %v3080_v62  ;;  %v4045_v8 = vmul.f32 %v2384_v2, %v3087_v63 }
 0x5f5   : > { %v3989_v13 = vpop.permute.xlu1 %1627 }
 0x5f6   : > { %v3987_v28 = vpop.permute.xlu0 %1543  ;;  %5809 = vst [vmem:[#allocation155_spill] sm:$0xff] %v3989_v13  ;;  %v4031_v13 = vmul.f32 %v2256_v23, %v3087_v63  ;;  %5813 = vst [vmem:[#allocation159_spill] sm:$0xff] %v4042_v16 }
 0x5f7   : > { %5808 = vst [vmem:[#allocation154_spill] sm:$0xff] %v3987_v28  ;;  %2166 = vrot.lane.b32.xlu1 %v3080_v62, %s5595_s19  ;;  %v4028_v28 = vmul.f32 %v2256_v23, %v3080_v62  ;;  %5814 = vst [vmem:[#allocation160_spill] sm:$0xff] %v4045_v8  ;;  %v4048_v23 = vmul.f32 %v2384_v2, %v3077_v61  ;;  %v4069_v2 = vsel %vm574_vm7, %v3077_v61, 0.0 }
 0x5f8   : > { %2168 = vrot.lane.b32.xlu0 %v3077_v61, %s5595_s19  ;;  %5810 = vst [vmem:[#allocation156_spill] sm:$0xff] %v4031_v13  ;;  %s4035_s19 = sld [smem:[#allocation2 + $0x14]]  ;;  %5817 = vst [vmem:[#allocation163_spill] sm:$0xff] %v4069_v2  ;;  %v644_v2 = vsel %vm5617_vm8, %v640_v5, 0.0  ;;  %v4113_v5 = vsel %vm5617_vm8, %v1586_v24, 0.0  ;;  %v663_v24 = vsel %vm5636_vm11, %v659_v7, 0.0 }
 0x5f9   : > { %v4039_v15 = vpop.permute.xlu1 %1753  ;;  %5815 = vst [vmem:[#allocation161_spill] sm:$0xff] %v4048_v23 }
 0x5fa   : > { %v4037_v18 = vpop.permute.xlu0 %1625  ;;  %5812 = vst [vmem:[#allocation158_spill] sm:$0xff] %v4039_v15  ;;  %v646_v15 = vstv %s3953_s14  ;;  %s4079_s14 = sld [smem:[#allocation2 + $0x17]] }
 0x5fb   : > { %5811 = vst [vmem:[#allocation157_spill] sm:$0xff] %v4037_v18  ;;  %v641_v18 = vsel %vm639_vm9, %v3450_v0, %v3452_v19  ;;  %v665_v19 = vstv %s3961_s8  ;;  %2170 = vrot.lane.b32.xlu1 %v3087_v63, %s5819_s3  ;;  %s4091_s8 = sld [smem:[#allocation2 + $0x19]]  ;;  %v660_v0 = vsel %vm5600_vm13, %v3460_v22, %v3466_v1  ;;  %s4122_s3 = sld [smem:[#allocation2 + $0x1b]]  ;;  %vm600_vm9 = vcmp.lt.s32.totalorder %v3944_v27, 14 }
 0x5fc   : > { %2184 = vrot.lane.b32.xlu0 %v3080_v62, %s5818_s2  ;;  %v645_v23 = vsel %vm5602_vm10, %v641_v18, 0.0  ;;  %v4117_v18 = vsel %vm5602_vm10, %v1587_v9, 0.0  ;;  %vm605_vm13 = vcmp.lt.s32.totalorder %v3942_v26, 13  ;;  %v647_v1 = vmul.f32 %v646_v15, %v644_v2 }
 0x5fd   : > { %v1880_v6 = vpop.permute.xlu1 %1879  ;;  %v648_v9 = vmul.f32 %v646_v15, %v645_v23  ;;  %v664_v22 = vsel %vm5603_vm12, %v660_v0, 0.0  ;;  %vm5614_vm10 = vcmask 908288   ;;  %v699_v15 = vsel %vm5607_vm14, %v3474_v25, %v3468_v20 }
 0x5fe   : > { %v4105_v14 = vpop.permute.xlu0 %1751  ;;  %v700_v23 = vsel %vm5607_vm14, %v3468_v20, %v3482_v4  ;;  %v1032_v2 = vstv %s4062_s0  ;;  %v1051_v0 = vstv %s4064_s1  ;;  %v666_v7 = vmul.f32 %v665_v19, %v663_v24  ;;  %s4545_s0 = sld [smem:[#allocation2 + $0x29]]  ;;  %s5900_s1 = smov 31  }
 0x5ff   : > { %5820 = vst [vmem:[#allocation164_spill] sm:$0xff] %v4105_v14  ;;  %2186 = vrot.lane.b32.xlu1 %v3077_v61, %s5818_s2  ;;  %v667_v21 = vmul.f32 %v665_v19, %v664_v22  ;;  %vm5613_vm12 = vcmask 760832   ;;  %v650_v16 = vadd.f32 %v648_v9, %v4008_v29  ;;  %v649_v20 = vadd.f32 %v647_v1, %v4022_v12 }
 0x600   : > { %2188 = vrot.lane.b32.xlu0 %v3087_v63, %s5818_s2  ;;  %v1070_v30 = vstv %s4079_s14  ;;  %s5821_s2 = smov 48   ;;  %v703_v4 = vsel %vm593_vm15, %v699_v15, 0.0  ;;  %v704_v19 = vsel %vm5611_vm0, %v700_v23, 0.0  ;;  %v718_v29 = vsel %vm5608_vm1, %v3476_v3, %v3490_v58  ;;  %s5963_s14 = smov 26  }
 0x601   : > { %v1884_v14 = vpop.permute.xlu1 %1883  ;;  %v1110_v13 = vstv %s4091_s8  ;;  %v719_v22 = vsel %vm5608_vm1, %v3490_v58, %v3484_v60  ;;  %vm5619_vm14 = vcmask 900096   ;;  %v737_v12 = vsel %vm5612_vm3, %v3498_v57, %v3492_v59  ;;  %s4776_s8 = sld [smem:[#allocation2 + $0x2c]] }
 0x602   : > { %v4141_v8 = vpop.permute.xlu0 %1755  ;;  %v738_v1 = vsel %vm5612_vm3, %v3492_v59, %v3506_v56  ;;  %vm5618_vm1 = vcmask 883712   ;;  %v668_v57 = vadd.f32 %v666_v7, %v649_v20  ;;  %v669_v23 = vadd.f32 %v667_v21, %v650_v16 }
 0x603   : > { %2202 = vrot.lane.b32.xlu1 %v3080_v62, %s5821_s2  ;;  %vm5622_vm0 = vcmask 875520   ;;  %v5823_v25 = vstv %s3963_s29  ;;  %v723_v60 = vsel %vm600_vm9, %v719_v22, 0.0  ;;  %v741_v58 = vsel %vm605_vm13, %v737_v12, 0.0  ;;  %s4234_s29 = sld [smem:[#allocation2 + $0x20]] }
 0x604   : > { %2204 = vrot.lane.b32.xlu0 %v3077_v61, %s5821_s2  ;;  %v706_v56 = vmul.f32 %v5823_v25, %v703_v4  ;;  %v5824_v59 = vmov %v5823_v25  ;;  %v742_v16 = vsel %vm606_vm2, %v738_v1, 0.0  ;;  %vm5615_vm3 = vcmask 1022976  }
 0x605   : > { %v679_v24 = vpop.permute.xlu1 %678  ;;  %v775_v25 = vsel %vm5614_vm10, %v3522_v52, %v3516_v54  ;;  %v5825_v52 = vstv %s3967_s18  ;;  %v1186_v1 = vstv %s4159_s26  ;;  %s5831_s18 = smov 46   ;;  %s5954_s26 = smov 27  }
 0x606   : > { %v1882_v9 = vpop.permute.xlu0 %1881 }
 0x607   : > { %v4181_v15 = vsel %vm5613_vm12, %v1880_v6, %v1882_v9  ;;  %v4184_v3 = vsel %vm5613_vm12, %v1882_v9, %v1884_v14  ;;  %2206 = vrot.lane.b32.xlu1 %v3087_v63, %s5821_s2  ;;  %v707_v6 = vmul.f32 %v5824_v59, %v704_v19  ;;  %v722_v14 = vsel %vm599_vm4, %v718_v29, 0.0  ;;  %s4822_s2 = sld [smem:[#allocation2 + $0x2f]] }
 0x608   : > { %2220 = vrot.lane.b32.xlu0 %v3080_v62, %s5822_s13  ;;  %v756_v9 = vsel %vm5616_vm5, %v3500_v55, %v3514_v51  ;;  %v757_v55 = vsel %vm5616_vm5, %v3514_v51, %v3508_v53  ;;  %vm5621_vm12 = vcmask 867328   ;;  %v776_v29 = vsel %vm5614_vm10, %v3516_v54, %v3530_v49 }
 0x609   : > { %v683_v7 = vpop.permute.xlu1 %682  ;;  %v760_v19 = vsel %vm573_vm6, %v756_v9, 0.0  ;;  %v725_v53 = vmul.f32 %v5825_v52, %v722_v14  ;;  %v1205_v59 = vstv %s4161_s16  ;;  %v761_v49 = vsel %vm574_vm7, %v757_v55, 0.0  ;;  %s5933_s16 = smov 29  }
 0x60a   : > { %v681_v21 = vpop.permute.xlu0 %680  ;;  %v779_v54 = vsel %vm5617_vm8, %v775_v25, 0.0  ;;  %v5827_v14 = vstv %s3969_s28  ;;  %vm5830_vm10 = vcmp.ge.s32.totalorder %v3944_v27, 2  ;;  %vm5623_vm5 = vcmask 777216   ;;  %s5836_s28 = smov 44  }
 0x60b   : > { %v685_v20 = vsel %vm5615_vm3, %v679_v24, %v681_v21  ;;  %v686_v4 = vsel %vm5615_vm3, %v681_v21, %v683_v7  ;;  %2222 = vrot.lane.b32.xlu1 %v3077_v61, %s5822_s13  ;;  %v5826_v24 = vmov %v5825_v52  ;;  %v744_v7 = vmul.f32 %v5827_v14, %v741_v58 }
 0x60c   : > { %v689_v22 = vadd.f32 %v685_v20, %v668_v57  ;;  %v690_v51 = vadd.f32 %v686_v4, %v669_v23  ;;  %2224 = vrot.lane.b32.xlu0 %v3087_v63, %s5822_s13  ;;  %v726_v12 = vmul.f32 %v5826_v24, %v723_v60  ;;  %v5828_v60 = vmov %v5827_v14  ;;  %s4246_s13 = sld [smem:[#allocation2 + $0x21]] }
 0x60d   : > { %v4236_v21 = vpop.permute.xlu1 %1986  ;;  %v745_v20 = vmul.f32 %v5828_v60, %v742_v16  ;;  %v5829_v4 = vstv %s3978_s27  ;;  %v780_v55 = vsel %vm5830_vm10, %v776_v29, 0.0  ;;  %vm5628_vm3 = vcmask 785408   ;;  %s4285_s27 = sld [smem:[#allocation2 + $0x22]] }
 0x60e   : > { %v708_v57 = vadd.f32 %v706_v56, %v689_v22  ;;  %v709_v23 = vadd.f32 %v707_v6, %v690_v51  ;;  %v2008_v9 = vpop.permute.xlu0 %2007  ;;  %v763_v52 = vmul.f32 %v5829_v4, %v760_v19  ;;  %v794_v56 = vsel %vm5619_vm14, %v3524_v50, %v3538_v45 }
 0x60f   : > { %2238 = vrot.lane.b32.xlu1 %v3080_v62, %s5831_s18  ;;  %vm5620_vm8 = vcmask 629760   ;;  %v5832_v58 = vmov %v5829_v4  ;;  %v5833_v19 = vstv %s3980_s5  ;;  %v795_v22 = vsel %vm5619_vm14, %v3538_v45, %v3532_v47  ;;  %s4320_s5 = sld [smem:[#allocation2 + $0x23]] }
 0x610   : > { %v727_v6 = vadd.f32 %v725_v53, %v708_v57  ;;  %v728_v25 = vadd.f32 %v726_v12, %v709_v23  ;;  %2240 = vrot.lane.b32.xlu0 %v3077_v61, %s5831_s18  ;;  %v764_v16 = vmul.f32 %v5832_v58, %v761_v49  ;;  %v782_v29 = vmul.f32 %v5833_v19, %v779_v54 }
 0x611   : > { %v834_v50 = vsel %vm5618_vm1, %v3540_v48, %v3546_v46  ;;  %v835_v51 = vsel %vm5618_vm1, %v3546_v46, %v3548_v44  ;;  %v853_v53 = vsel %vm5622_vm0, %v3554_v43, %v3556_v41  ;;  %v2010_v54 = vpop.permute.xlu1 %2009  ;;  %v5834_v57 = vmov %v5833_v19 }
 0x612   : > { %v746_v24 = vadd.f32 %v744_v7, %v727_v6  ;;  %v747_v12 = vadd.f32 %v745_v20, %v728_v25  ;;  %v2012_v49 = vpop.permute.xlu0 %2011  ;;  %v783_v23 = vmul.f32 %v5834_v57, %v780_v55  ;;  %v798_v45 = vsel %vm5636_vm11, %v794_v56, 0.0 }
 0x613   : > { %v4276_v47 = vsel %vm5620_vm8, %v2008_v9, %v2010_v54  ;;  %v4279_v48 = vsel %vm5620_vm8, %v2010_v54, %v2012_v49  ;;  %vm5835_vm10 = vcmp.ge.s32.totalorder %v3944_v27, 1  ;;  %v838_v43 = vsel %vm593_vm15, %v834_v50, 0.0  ;;  %2242 = vrot.lane.b32.xlu1 %v3087_v63, %s5831_s18  ;;  %s4881_s18 = sld [smem:[#allocation2 + $0x39]] }
 0x614   : > { %v799_v44 = vsel %vm5835_vm10, %v795_v22, 0.0  ;;  %2276 = vrot.lane.b32.xlu0 %v3080_v62, %s5836_s28  ;;  %v765_v46 = vadd.f32 %v763_v52, %v746_v24  ;;  %v766_v9 = vadd.f32 %v764_v16, %v747_v12  ;;  %vm5626_vm1 = vcmask 769024  }
 0x615   : > { %vm5837_vm14 = vcmp.lt.s32.totalorder %v3944_v27, 15  ;;  %v857_v7 = vsel %vm599_vm4, %v853_v53, 0.0  ;;  %v854_v60 = vsel %vm5622_vm0, %v3556_v41, %v3562_v39  ;;  %v872_v20 = vsel %vm5621_vm12, %v3564_v42, %v3570_v40  ;;  %v2021_v56 = vpop.permute.xlu1 %2020 }
 0x616   : > { %v839_v14 = vsel %vm5837_vm14, %v835_v51, 0.0  ;;  %vm5625_vm10 = vcmask 752640   ;;  %v873_v4 = vsel %vm5621_vm12, %v3570_v40, %v3572_v38  ;;  %vm1103_vm14 = vcmask 621568   ;;  %v814_v55 = vpop.permute.xlu0 %813 }
 0x617   : > { %v1245_v52 = vstv %s4234_s29  ;;  %v784_v6 = vadd.f32 %v782_v29, %v765_v46  ;;  %v785_v25 = vadd.f32 %v783_v23, %v766_v9  ;;  %vm5627_vm8 = vcmask 744448   ;;  %2278 = vrot.lane.b32.xlu1 %v3077_v61, %s5836_s28  ;;  %s4844_s29 = sld [smem:[#allocation2 + $0x30]] }
 0x618   : > { %v5838_v58 = vstv %s3983_s25  ;;  %v5840_v19 = vstv %s3985_s24  ;;  %v1264_v42 = vstv %s4246_s13  ;;  %v858_v53 = vsel %vm600_vm9, %v854_v60, 0.0  ;;  %2280 = vrot.lane.b32.xlu0 %v3087_v63, %s5836_s28  ;;  %s4349_s24 = sld [smem:[#allocation2 + $0x24]]  ;;  %s5846_s25 = smov 45  }
 0x619   : > { %v801_v16 = vmul.f32 %v5838_v58, %v798_v45  ;;  %v5839_v39 = vmov %v5838_v58  ;;  %v841_v22 = vmul.f32 %v5840_v19, %v838_v43  ;;  %v5841_v50 = vmov %v5840_v19  ;;  %v816_v43 = vpop.permute.xlu1 %815  ;;  %v5850_v19 = vld [vmem:[#allocation73_spill] sm:$0xff]  ;;  %s4879_s13 = sld [smem:[#allocation2 + $0x38]]  ;;  %s4965_s28 = sld [smem:[#allocation2 + $0x3e]] }
 0x61a   : > { %v802_v41 = vmul.f32 %v5839_v39, %v799_v44  ;;  %v842_v51 = vmul.f32 %v5841_v50, %v839_v14  ;;  %v5842_v38 = vstv %s4000_s11  ;;  %v876_v29 = vsel %vm605_vm13, %v872_v20, 0.0  ;;  %v818_v23 = vpop.permute.xlu0 %817  ;;  %s4363_s11 = sld [smem:[#allocation2 + $0x25]] }
 0x61b   : > { %v860_v40 = vmul.f32 %v5842_v38, %v857_v7  ;;  %v877_v24 = vsel %vm606_vm2, %v873_v4, 0.0  ;;  %v891_v12 = vsel %vm5628_vm3, %v3578_v37, %v3580_v36  ;;  %v892_v49 = vsel %vm5628_vm3, %v3580_v36, %v3586_v34  ;;  %2263 = vrot.lane.b32.xlu1 %v4028_v28, %s5846_s25 }
 0x61c   : > { %v910_v54 = vsel %vm5623_vm5, %v3588_v35, %v3594_v33  ;;  %v911_v57 = vsel %vm5623_vm5, %v3594_v33, %v3596_v31  ;;  %vm5624_vm12 = vcmask 891904   ;;  %v803_v45 = vadd.f32 %v801_v16, %v784_v6  ;;  %2265 = vrot.lane.b32.xlu0 %v4025_v17, %s5846_s25 }
 0x61d   : > { %v804_v44 = vadd.f32 %v802_v41, %v785_v25  ;;  %vm5629_vm0 = vcmask 736256   ;;  %v5843_v46 = vmov %v5842_v38  ;;  %v5844_v9 = vstv %s4002_s17  ;;  %v2025_v39 = vpop.permute.xlu1 %2024  ;;  %v5849_v41 = vld [vmem:[#allocation72_spill] sm:$0xff]  ;;  %s5854_s17 = smov 43  }
 0x61e   : > { %v861_v37 = vmul.f32 %v5843_v46, %v858_v53  ;;  %v879_v14 = vmul.f32 %v5844_v9, %v876_v29  ;;  %v820_v34 = vsel %vm5624_vm12, %v814_v55, %v816_v43  ;;  %v821_v36 = vsel %vm5624_vm12, %v816_v43, %v818_v23  ;;  %v2023_v16 = vpop.permute.xlu0 %2022  ;;  %v5851_v53 = vld [vmem:[#allocation75_spill] sm:$0xff]  ;;  %v5859_v43 = vld [vmem:[#allocation76_spill] sm:$0xff] }
 0x61f   : > { %v5845_v7 = vmov %v5844_v9  ;;  %v1283_v60 = vstv %s4285_s27  ;;  %v824_v31 = vadd.f32 %v820_v34, %v803_v45  ;;  %v825_v33 = vadd.f32 %v821_v36, %v804_v44  ;;  %s4921_s27 = sld [smem:[#allocation2 + $0x3a]] }
 0x620   : > { %v880_v35 = vmul.f32 %v5845_v7, %v877_v24  ;;  %v895_v20 = vsel %vm573_vm6, %v891_v12, 0.0  ;;  %v896_v4 = vsel %vm574_vm7, %v892_v49, 0.0  ;;  %vm5847_vm5 = vcmp.ge.s32.totalorder %v3942_v26, 2  ;;  %2294 = vrot.lane.b32.xlu0 %v3080_v62, %s5854_s17  ;;  %v5855_v49 = vld [vmem:[#allocation156_spill] sm:$0xff] }
 0x621   : > { %v914_v55 = vsel %vm5847_vm5, %v910_v54, 0.0  ;;  %vm5848_vm12 = vcmp.ge.s32.totalorder %v3944_v27, 2  ;;  %v929_v17 = vsel %vm5626_vm1, %v3602_v32, %v3604_v11  ;;  %v930_v28 = vsel %vm5626_vm1, %v3604_v11, %v3610_v10  ;;  %v5852_v11 = vld [vmem:[#allocation77_spill] sm:$0xff]  ;;  %2267 = vrot.lane.b32.xlu1 %v5855_v49, %s5846_s25  ;;  %s5097_s25 = sld [smem:[#allocation2 + $0x44]] }
 0x622   : > { %v915_v6 = vsel %vm5848_vm12, %v911_v57, 0.0  ;;  %v843_v25 = vadd.f32 %v841_v22, %v824_v31  ;;  %v844_v58 = vadd.f32 %v842_v51, %v825_v33  ;;  %vm5630_vm5 = vcmask 654336   ;;  %v5853_v22 = vld [vmem:[#allocation74_spill] sm:$0xff]  ;;  %v2039_v7 = vpop.permute.xlu0 %2038  ;;  %v949_v31 = vpop.permute.xlu1 %948 }
 0x623   : > { %v969_v50 = vsel %vm5625_vm10, %v5850_v19, %v5849_v41  ;;  %v970_v32 = vsel %vm5625_vm10, %v5849_v41, %v5851_v53  ;;  %v4378_v38 = vsel %vm1103_vm14, %v2021_v56, %v2023_v16  ;;  %v4381_v10 = vsel %vm1103_vm14, %v2023_v16, %v2025_v39  ;;  %v5866_v39 = vld [vmem:[#allocation81_spill] sm:$0xff] }
 0x624   : > { %vm5631_vm12 = vcmask 646144   ;;  %v988_v51 = vsel %vm5627_vm8, %v5853_v22, %v5852_v11  ;;  %v1302_v29 = vstv %s4320_s5  ;;  %v862_v24 = vadd.f32 %v860_v40, %v843_v25  ;;  %2298 = vrot.lane.b32.xlu0 %v3087_v63, %s5854_s17  ;;  %s5001_s5 = sld [smem:[#allocation2 + $0x40]] }
 0x625   : > { %v863_v12 = vadd.f32 %v861_v37, %v844_v58  ;;  %v5856_v54 = vstv %s4010_s23  ;;  %v5858_v45 = vstv %s4012_s6  ;;  %v989_v46 = vsel %vm5627_vm8, %v5852_v11, %v5859_v43  ;;  %2296 = vrot.lane.b32.xlu1 %v3077_v61, %s5854_s17  ;;  %s5910_s23 = smov 30   ;;  %s4588_s6 = sld [smem:[#allocation2 + $0x2a]] }
 0x626   : > { %v898_v56 = vmul.f32 %v5856_v54, %v895_v20  ;;  %v5857_v57 = vmov %v5856_v54  ;;  %v917_v44 = vmul.f32 %v5858_v45, %v914_v55  ;;  %v5860_v9 = vmov %v5858_v45  ;;  %v953_v49 = vpop.permute.xlu1 %952  ;;  %s5120_s17 = sld [smem:[#allocation2 + $0x46]] }
 0x627   : > { %v899_v23 = vmul.f32 %v5857_v57, %v896_v4  ;;  %v918_v34 = vmul.f32 %v5860_v9, %v915_v6  ;;  %v933_v40 = vsel %vm5636_vm11, %v929_v17, 0.0  ;;  %vm1122_vm10 = vcmask 613376   ;;  %v5864_v6 = vld [vmem:[#allocation79_spill] sm:$0xff] }
 0x628   : > { %v881_v37 = vadd.f32 %v879_v14, %v862_v24  ;;  %v882_v36 = vadd.f32 %v880_v35, %v863_v12  ;;  %vm5861_vm1 = vcmp.ge.s32.totalorder %v3944_v27, 1  ;;  %v973_v20 = vsel %vm593_vm15, %v969_v50, 0.0  ;;  %v5863_v35 = vld [vmem:[#allocation78_spill] sm:$0xff] }
 0x629   : > { %v934_v33 = vsel %vm5861_vm1, %v930_v28, 0.0  ;;  %vm5862_vm8 = vcmp.lt.s32.totalorder %v3944_v27, 15  ;;  %v992_v55 = vsel %vm599_vm4, %v988_v51, 0.0  ;;  %vm5632_vm3 = vcmask 637952   ;;  %v951_v51 = vpop.permute.xlu0 %950 }
 0x62a   : > { %v974_v4 = vsel %vm5862_vm8, %v970_v32, 0.0  ;;  %v993_v14 = vsel %vm600_vm9, %v989_v46, 0.0  ;;  %v1007_v17 = vsel %vm5629_vm0, %v5864_v6, %v5863_v35  ;;  %v900_v28 = vadd.f32 %v898_v56, %v881_v37  ;;  %v5873_v37 = vld [vmem:[#allocation80_spill] sm:$0xff] }
 0x62b   : > { %v901_v25 = vadd.f32 %v899_v23, %v882_v36  ;;  %v5865_v58 = vstv %s4018_s22  ;;  %v1008_v41 = vsel %vm5629_vm0, %v5863_v35, %v5866_v39  ;;  %v1321_v19 = vstv %s4349_s24  ;;  %s5874_s22 = smov 42   ;;  %s5095_s24 = sld [smem:[#allocation2 + $0x43]] }
 0x62c   : > { %v936_v16 = vmul.f32 %v5865_v58, %v933_v40  ;;  %v1340_v50 = vstv %s4363_s11  ;;  %v5867_v53 = vmov %v5865_v58  ;;  %v5868_v11 = vstv %s4020_s21  ;;  %v5872_v40 = vld [vmem:[#allocation83_spill] sm:$0xff]  ;;  %2314 = vrot.lane.b32.xlu0 %v3077_v61, %s5874_s22  ;;  %2312 = vrot.lane.b32.xlu1 %v3080_v62, %s5874_s22  ;;  %s4512_s21 = sld [smem:[#allocation2 + $0x28]]  ;;  %s5118_s11 = sld [smem:[#allocation2 + $0x45]] }
 0x62d   : > { %v937_v32 = vmul.f32 %v5867_v53, %v934_v33  ;;  %v976_v22 = vmul.f32 %v5868_v11, %v973_v20  ;;  %vm1141_vm8 = vcmask 605184   ;;  %v919_v24 = vadd.f32 %v917_v44, %v900_v28  ;;  %v5875_v33 = vld [vmem:[#allocation82_spill] sm:$0xff]  ;;  %v2041_v53 = vpop.permute.xlu1 %2040 }
 0x62e   : > { %v920_v12 = vadd.f32 %v918_v34, %v901_v25  ;;  %v5869_v54 = vmov %v5868_v11  ;;  %v5870_v57 = vstv %s4033_s20  ;;  %v1011_v46 = vsel %vm605_vm13, %v1007_v17, 0.0  ;;  %v5881_v25 = vld [vmem:[#allocation87_spill] sm:$0xff]  ;;  %s5884_s20 = smov 32  }
 0x62f   : > { %v977_v56 = vmul.f32 %v5869_v54, %v974_v4  ;;  %v995_v23 = vmul.f32 %v5870_v57, %v992_v55  ;;  %v5871_v45 = vmov %v5870_v57  ;;  %v1012_v9 = vsel %vm606_vm2, %v1008_v41, 0.0  ;;  %v5876_v4 = vld [vmem:[#allocation84_spill] sm:$0xff]  ;;  %v5877_v55 = vld [vmem:[#allocation85_spill] sm:$0xff]  ;;  %v2043_v41 = vpop.permute.xlu0 %2042 }
 0x630   : > { %v996_v43 = vmul.f32 %v5871_v45, %v993_v14  ;;  %v1026_v44 = vsel %vm5630_vm5, %v5873_v37, %v5872_v40  ;;  %v938_v34 = vadd.f32 %v936_v16, %v919_v24  ;;  %v939_v36 = vadd.f32 %v937_v32, %v920_v12  ;;  %2330 = vrot.lane.b32.xlu0 %v3080_v62, %s5884_s20  ;;  %v5886_v45 = vld [vmem:[#allocation89_spill] sm:$0xff] }
 0x631   : > { %v1027_v20 = vsel %vm5630_vm5, %v5872_v40, %v5875_v33  ;;  %v1045_v14 = vsel %vm5631_vm12, %v5877_v55, %v5876_v4  ;;  %vm5878_vm1 = vcmask 760832   ;;  %v5880_v17 = vstv %s4035_s19  ;;  %s4476_s19 = sld [smem:[#allocation2 + $0x27]]  ;;  %2316 = vrot.lane.b32.xlu1 %v3087_v63, %s5874_s22  ;;  %v5888_v40 = vld [vmem:[#allocation88_spill] sm:$0xff]  ;;  %v5892_v33 = vld [vmem:[#allocation94_spill] sm:$0xff] }
 0x632   : > { %v955_v35 = vsel %vm5878_vm1, %v949_v31, %v951_v51  ;;  %vm5879_vm0 = vmmov %vm5878_vm1  ;;  %v1014_v28 = vmul.f32 %v5880_v17, %v1011_v46  ;;  %v1046_v58 = vsel %vm5631_vm12, %v5876_v4, %v5881_v25  ;;  %v5882_v32 = vmov %v5880_v17  ;;  %v5887_v46 = vld [vmem:[#allocation86_spill] sm:$0xff]  ;;  %s5144_s22 = sld [smem:[#allocation2 + $0x47]] }
 0x633   : > { %v956_v6 = vsel %vm5879_vm0, %v951_v51, %v953_v49  ;;  %v959_v16 = vadd.f32 %v955_v35, %v938_v34  ;;  %v1015_v11 = vmul.f32 %v5882_v32, %v1012_v9  ;;  %v1030_v24 = vsel %vm573_vm6, %v1026_v44, 0.0  ;;  %v5890_v44 = vld [vmem:[#allocation90_spill] sm:$0xff]  ;;  %v5891_v34 = vld [vmem:[#allocation92_spill] sm:$0xff]  ;;  %v2059_v35 = vpop.permute.xlu0 %2058 }
 0x634   : > { %v960_v39 = vadd.f32 %v956_v6, %v939_v36  ;;  %vm1160_vm5 = vcmask 523264   ;;  %v4467_v31 = vsel %vm1122_vm10, %v2039_v7, %v2041_v53  ;;  %v4470_v51 = vsel %vm1122_vm10, %v2041_v53, %v2043_v41  ;;  %v2057_v6 = vpop.permute.xlu1 %2056  ;;  %2334 = vrot.lane.b32.xlu0 %v3087_v63, %s5884_s20 }
 0x635   : > { %v1031_v12 = vsel %vm574_vm7, %v1027_v20, 0.0  ;;  %vm5883_vm0 = vcmp.ge.s32.totalorder %v3942_v26, 2  ;;  %vm5633_vm1 = vcmask 515072   ;;  %v978_v54 = vadd.f32 %v976_v22, %v959_v16  ;;  %v5889_v22 = vld [vmem:[#allocation91_spill] sm:$0xff]  ;;  %v5893_v20 = vld [vmem:[#allocation93_spill] sm:$0xff]  ;;  %2332 = vrot.lane.b32.xlu1 %v3077_v61, %s5884_s20  ;;  %s5184_s20 = sld [smem:[#allocation2 + $0x4a]] }
 0x636   : > { %v1049_v49 = vsel %vm5883_vm0, %v1045_v14, 0.0  ;;  %v979_v57 = vadd.f32 %v977_v56, %v960_v39  ;;  %vm5885_vm12 = vcmp.ge.s32.totalorder %v3944_v27, 2  ;;  %v1064_v9 = vsel %vm5632_vm3, %v5887_v46, %v5886_v45 }
 0x637   : > { %v1050_v7 = vsel %vm5885_vm12, %v1046_v58, 0.0  ;;  %v1065_v37 = vsel %vm5632_vm3, %v5886_v45, %v5888_v40  ;;  %v1104_v56 = vsel %vm1103_vm14, %v5890_v44, %v5889_v22  ;;  %v1105_v36 = vsel %vm1103_vm14, %v5889_v22, %v5891_v34  ;;  %v5899_v40 = vld [vmem:[#allocation98_spill] sm:$0xff] }
 0x638   : > { %v1123_v4 = vsel %vm1122_vm10, %v5893_v20, %v5892_v33  ;;  %v997_v55 = vadd.f32 %v995_v23, %v978_v54  ;;  %v998_v14 = vadd.f32 %v996_v43, %v979_v57  ;;  %v1033_v17 = vmul.f32 %v1032_v2, %v1030_v24  ;;  %v2061_v57 = vpop.permute.xlu1 %2060  ;;  %2350 = vrot.lane.b32.xlu0 %v3077_v61, %s5900_s1 }
 0x639   : > { %v1034_v25 = vmul.f32 %v1032_v2, %v1031_v12  ;;  %v1052_v58 = vmul.f32 %v1051_v0, %v1049_v49  ;;  %v4506_v16 = vsel %vm1141_vm8, %v2057_v6, %v2059_v35  ;;  %v1068_v39 = vsel %vm5636_vm11, %v1064_v9, 0.0  ;;  %v5897_v12 = vld [vmem:[#allocation97_spill] sm:$0xff]  ;;  %v5898_v49 = vld [vmem:[#allocation96_spill] sm:$0xff]  ;;  %2348 = vrot.lane.b32.xlu1 %v3080_v62, %s5900_s1  ;;  %v5903_v6 = vld [vmem:[#allocation99_spill] sm:$0xff] }
 0x63a   : > { %vm5894_vm14 = vcmp.ge.s32.totalorder %v3944_v27, 1  ;;  %vm5634_vm12 = vcmask 506880   ;;  %v1016_v23 = vadd.f32 %v1014_v28, %v997_v55  ;;  %v1017_v43 = vadd.f32 %v1015_v11, %v998_v14  ;;  %v5896_v11 = vld [vmem:[#allocation95_spill] sm:$0xff] }
 0x63b   : > { %v1069_v41 = vsel %vm5894_vm14, %v1065_v37, 0.0  ;;  %v1053_v2 = vmul.f32 %v1051_v0, %v1050_v7  ;;  %v1108_v53 = vsel %vm593_vm15, %v1104_v56, 0.0  ;;  %vm5895_vm0 = vcmp.lt.s32.totalorder %v3944_v27, 15  ;;  %v1084_v0 = vpop.permute.xlu0 %1083 }
 0x63c   : > { %v1109_v32 = vsel %vm5895_vm0, %v1105_v36, 0.0  ;;  %v1127_v28 = vsel %vm599_vm4, %v1123_v4, 0.0  ;;  %vm5635_vm14 = vcmask 490496   ;;  %v1124_v24 = vsel %vm1122_vm10, %v5892_v33, %v5896_v11  ;;  %v5909_v11 = vld [vmem:[#allocation104_spill] sm:$0xff]  ;;  %2366 = vrot.lane.b32.xlu0 %v3080_v62, %s5910_s23 }
 0x63d   : > { %v1142_v54 = vsel %vm1141_vm8, %v5898_v49, %v5897_v12  ;;  %v1035_v7 = vadd.f32 %v1033_v17, %v1016_v23  ;;  %v1036_v45 = vadd.f32 %v1034_v25, %v1017_v43  ;;  %v1071_v46 = vmul.f32 %v1070_v30, %v1068_v39  ;;  %v1086_v39 = vpop.permute.xlu1 %1085  ;;  %v5905_v43 = vld [vmem:[#allocation103_spill] sm:$0xff]  ;;  %2352 = vrot.lane.b32.xlu1 %v3087_v63, %s5900_s1  ;;  %s5220_s1 = sld [smem:[#allocation2 + $0x4d]] }
 0x63e   : > { %v1072_v9 = vmul.f32 %v1070_v30, %v1069_v41  ;;  %v1143_v37 = vsel %vm1141_vm8, %v5897_v12, %v5899_v40  ;;  %v4540_v22 = vsel %vm1141_vm8, %v2059_v35, %v2061_v57  ;;  %v1111_v44 = vmul.f32 %v1110_v13, %v1108_v53  ;;  %v5902_v35 = vld [vmem:[#allocation100_spill] sm:$0xff]  ;;  %v5904_v41 = vld [vmem:[#allocation101_spill] sm:$0xff] }
 0x63f   : > { %vm1257_vm10 = vcmask 482304   ;;  %v1380_v56 = vstv %s4476_s19  ;;  %v1054_v30 = vadd.f32 %v1052_v58, %v1035_v7  ;;  %v1055_v34 = vadd.f32 %v1053_v2, %v1036_v45  ;;  %v5906_v2 = vld [vmem:[#allocation102_spill] sm:$0xff]  ;;  %s5146_s19 = sld [smem:[#allocation2 + $0x48]] }
 0x640   : > { %v1112_v36 = vmul.f32 %v1110_v13, %v1109_v32  ;;  %v1128_v33 = vsel %vm600_vm9, %v1124_v24, 0.0  ;;  %v5901_v20 = vstv %s4093_s15  ;;  %v1146_v55 = vsel %vm605_vm13, %v1142_v54, 0.0  ;;  %v1088_v13 = vpop.permute.xlu0 %1087  ;;  %2370 = vrot.lane.b32.xlu0 %v3087_v63, %s5910_s23  ;;  %s4664_s15 = sld [smem:[#allocation2 + $0x2b]] }
 0x641   : > { %v1130_v4 = vmul.f32 %v5901_v20, %v1127_v28  ;;  %v1147_v14 = vsel %vm606_vm2, %v1143_v37, 0.0  ;;  %v1161_v17 = vsel %vm1160_vm5, %v5903_v6, %v5902_v35  ;;  %vm5639_vm8 = vcmask 474112   ;;  %v5917_v6 = vld [vmem:[#allocation105_spill] sm:$0xff]  ;;  %2368 = vrot.lane.b32.xlu1 %v3077_v61, %s5910_s23  ;;  %s5223_s23 = sld [smem:[#allocation2 + $0x4e]] }
 0x642   : > { %v1073_v25 = vadd.f32 %v1071_v46, %v1054_v30  ;;  %v1074_v58 = vadd.f32 %v1072_v9, %v1055_v34  ;;  %v1162_v23 = vsel %vm1160_vm5, %v5902_v35, %v5904_v41  ;;  %v1180_v53 = vsel %vm5633_vm1, %v5906_v2, %v5905_v43  ;;  %v5916_v35 = vld [vmem:[#allocation106_spill] sm:$0xff] }
 0x643   : > { %vm5907_vm0 = vcmask 629760   ;;  %v1181_v24 = vsel %vm5633_vm1, %v5905_v43, %v5909_v11  ;;  %v1399_v12 = vstv %s4512_s21  ;;  %v5911_v57 = vmov %v5901_v20  ;;  %s5204_s21 = sld [smem:[#allocation2 + $0x4b]] }
 0x644   : > { %v1090_v32 = vsel %vm5907_vm0, %v1084_v0, %v1086_v39  ;;  %vm5908_vm3 = vmmov %vm5907_vm0  ;;  %v1131_v7 = vmul.f32 %v5911_v57, %v1128_v33  ;;  %v5912_v45 = vstv %s4122_s3  ;;  %v1165_v40 = vsel %vm573_vm6, %v1161_v17, 0.0  ;;  %v2075_v20 = vpop.permute.xlu0 %2074  ;;  %s4820_s3 = sld [smem:[#allocation2 + $0x2e]] }
 0x645   : > { %v1091_v28 = vsel %vm5908_vm3, %v1086_v39, %v1088_v13  ;;  %v1094_v49 = vadd.f32 %v1090_v32, %v1073_v25  ;;  %v1149_v46 = vmul.f32 %v5912_v45, %v1146_v55  ;;  %v5913_v0 = vmov %v5912_v45  ;;  %v2077_v55 = vpop.permute.xlu1 %2076  ;;  %v5918_v13 = vld [vmem:[#allocation107_spill] sm:$0xff] }
 0x646   : > { %v1095_v54 = vadd.f32 %v1091_v28, %v1074_v58  ;;  %v1150_v9 = vmul.f32 %v5913_v0, %v1147_v14  ;;  %v1166_v37 = vsel %vm574_vm7, %v1162_v23, 0.0  ;;  %vm5914_vm3 = vcmp.ge.s32.totalorder %v3942_v26, 2  ;;  %v5920_v58 = vld [vmem:[#allocation109_spill] sm:$0xff] }
 0x647   : > { %v1184_v30 = vsel %vm5914_vm3, %v1180_v53, 0.0  ;;  %vm5637_vm0 = vcmask 392192   ;;  %v1113_v34 = vadd.f32 %v1111_v44, %v1094_v49  ;;  %vm5915_vm1 = vcmp.ge.s32.totalorder %v3944_v27, 2 }
 0x648   : > { %v1114_v33 = vadd.f32 %v1112_v36, %v1095_v54  ;;  %v1185_v14 = vsel %vm5915_vm1, %v1181_v24, 0.0  ;;  %v1199_v17 = vsel %vm5634_vm12, %v5917_v6, %v5916_v35  ;;  %v1200_v25 = vsel %vm5634_vm12, %v5916_v35, %v5918_v13  ;;  %v5919_v36 = vld [vmem:[#allocation108_spill] sm:$0xff]  ;;  %v5923_v24 = vld [vmem:[#allocation111_spill] sm:$0xff]  ;;  %v2079_v45 = vpop.permute.xlu0 %2078  ;;  %v5930_v6 = vld [vmem:[#allocation114_spill] sm:$0xff] }
 0x649   : > { %vm5638_vm3 = vcmask 384000   ;;  %v4603_v44 = vsel %vm1160_vm5, %v2075_v20, %v2077_v55  ;;  %v1239_v39 = vsel %vm5635_vm14, %v5920_v58, %v5919_v36  ;;  %v1418_v41 = vstv %s4545_s0  ;;  %v1219_v0 = vpop.permute.xlu1 %1218  ;;  %s5210_s0 = sld [smem:[#allocation2 + $0x4c]] }
 0x64a   : > { %v1132_v23 = vadd.f32 %v1130_v4, %v1113_v34  ;;  %v1133_v43 = vadd.f32 %v1131_v7, %v1114_v33  ;;  %v5921_v2 = vstv %s4124_s4  ;;  %v1187_v11 = vmul.f32 %v1186_v1, %v1184_v30  ;;  %v5925_v30 = vld [vmem:[#allocation113_spill] sm:$0xff]  ;;  %v5926_v34 = vld [vmem:[#allocation110_spill] sm:$0xff]  ;;  %s5929_s4 = smov 28  }
 0x64b   : > { %v1168_v53 = vmul.f32 %v5921_v2, %v1165_v40  ;;  %v5922_v32 = vmov %v5921_v2  ;;  %v1240_v49 = vsel %vm5635_vm14, %v5919_v36, %v5923_v24  ;;  %v1188_v54 = vmul.f32 %v1186_v1, %v1185_v14  ;;  %2406 = vrot.lane.b32.xlu0 %v3077_v61, %s5929_s4  ;;  %2404 = vrot.lane.b32.xlu1 %v3080_v62, %s5929_s4 }
 0x64c   : > { %v1169_v28 = vmul.f32 %v5922_v32, %v1166_v37  ;;  %v1203_v4 = vsel %vm5636_vm11, %v1199_v17, 0.0  ;;  %vm5640_vm1 = vcmask 375808   ;;  %v1151_v57 = vadd.f32 %v1149_v46, %v1132_v23  ;;  %v5931_v17 = vld [vmem:[#allocation115_spill] sm:$0xff]  ;;  %v1221_v23 = vpop.permute.xlu0 %1220 }
 0x64d   : > { %v1152_v7 = vadd.f32 %v1150_v9, %v1133_v43  ;;  %vm5924_vm12 = vcmp.ge.s32.totalorder %v3944_v27, 1  ;;  %v1243_v37 = vsel %vm593_vm15, %v1239_v39, 0.0  ;;  %v1258_v1 = vsel %vm1257_vm10, %v5926_v34, %v5925_v30  ;;  %v5928_v9 = vld [vmem:[#allocation112_spill] sm:$0xff]  ;;  %v1223_v32 = vpop.permute.xlu1 %1222 }
 0x64e   : > { %v1204_v40 = vsel %vm5924_vm12, %v1200_v25, 0.0  ;;  %vm1373_vm14 = vcmask 359424   ;;  %v4634_v33 = vsel %vm1160_vm5, %v2077_v55, %v2079_v45  ;;  %vm5927_vm11 = vcmp.lt.s32.totalorder %v3944_v27, 15  ;;  %v5932_v25 = vld [vmem:[#allocation117_spill] sm:$0xff] }
 0x64f   : > { %v1244_v46 = vsel %vm5927_vm11, %v1240_v49, 0.0  ;;  %v1259_v20 = vsel %vm1257_vm10, %v5925_v30, %v5928_v9  ;;  %v1170_v14 = vadd.f32 %v1168_v53, %v1151_v57  ;;  %v1171_v35 = vadd.f32 %v1169_v28, %v1152_v7  ;;  %2408 = vrot.lane.b32.xlu1 %v3087_v63, %s5929_s4  ;;  %v5935_v57 = vld [vmem:[#allocation119_spill] sm:$0xff]  ;;  %v5936_v7 = vld [vmem:[#allocation116_spill] sm:$0xff]  ;;  %s5245_s4 = sld [smem:[#allocation2 + $0x51]] }
 0x650   : > { %v1206_v55 = vmul.f32 %v1205_v59, %v1203_v4  ;;  %v1277_v13 = vsel %vm5639_vm8, %v5931_v17, %v5930_v6  ;;  %v1278_v36 = vsel %vm5639_vm8, %v5930_v6, %v5932_v25  ;;  %v1436_v58 = vstv %s4588_s6  ;;  %v5934_v4 = vld [vmem:[#allocation159_spill] sm:$0xff]  ;;  %v2095_v6 = vpop.permute.xlu0 %2094  ;;  %s5235_s6 = sld [smem:[#allocation2 + $0x4f]] }
 0x651   : > { %v1207_v39 = vmul.f32 %v1205_v59, %v1204_v40  ;;  %vm1224_vm11 = vcmask 498688   ;;  %v1189_v43 = vadd.f32 %v1187_v11, %v1170_v14  ;;  %v1190_v2 = vadd.f32 %v1188_v54, %v1171_v35  ;;  %2391 = vrot.lane.b32.xlu0 %v5934_v4, %s5933_s16  ;;  %v5937_v40 = vld [vmem:[#allocation118_spill] sm:$0xff]  ;;  %v2093_v17 = vpop.permute.xlu1 %2092 }
 0x652   : > { %v1246_v53 = vmul.f32 %v1245_v52, %v1243_v37  ;;  %v1247_v28 = vmul.f32 %v1245_v52, %v1244_v46  ;;  %v1262_v24 = vsel %vm599_vm4, %v1258_v1, 0.0  ;;  %v1263_v49 = vsel %vm600_vm9, %v1259_v20, 0.0  ;;  %v5938_v1 = vld [vmem:[#allocation120_spill] sm:$0xff]  ;;  %v5939_v46 = vld [vmem:[#allocation121_spill] sm:$0xff]  ;;  %v5940_v20 = vld [vmem:[#allocation123_spill] sm:$0xff] }
 0x653   : > { %vm1392_vm5 = vcmask 351232   ;;  %v1281_v59 = vsel %vm605_vm13, %v1277_v13, 0.0  ;;  %v1282_v11 = vsel %vm606_vm2, %v1278_v36, 0.0  ;;  %vm5641_vm12 = vcmask 343040   ;;  %v5950_v4 = vld [vmem:[#allocation126_spill] sm:$0xff] }
 0x654   : > { %v1208_v54 = vadd.f32 %v1206_v55, %v1189_v43  ;;  %v1209_v52 = vadd.f32 %v1207_v39, %v1190_v2  ;;  %v1296_v45 = vsel %vm5637_vm0, %v5936_v7, %v5935_v57  ;;  %v1297_v37 = vsel %vm5637_vm0, %v5935_v57, %v5937_v40  ;;  %v2111_v40 = vpop.permute.xlu0 %2110 }
 0x655   : > { %v1225_v30 = vsel %vm1224_vm11, %v1219_v0, %v1221_v23  ;;  %v1226_v34 = vsel %vm1224_vm11, %v1221_v23, %v1223_v32  ;;  %v1315_v9 = vsel %vm5638_vm3, %v5939_v46, %v5938_v1  ;;  %v1316_v14 = vsel %vm5638_vm3, %v5938_v1, %v5940_v20  ;;  %v5942_v32 = vld [vmem:[#allocation160_spill] sm:$0xff] }
 0x656   : > { %v1229_v35 = vadd.f32 %v1225_v30, %v1208_v54  ;;  %v1230_v55 = vadd.f32 %v1226_v34, %v1209_v52  ;;  %v1265_v13 = vmul.f32 %v1264_v42, %v1262_v24  ;;  %v1266_v25 = vmul.f32 %v1264_v42, %v1263_v49  ;;  %2395 = vrot.lane.b32.xlu0 %v5942_v32, %s5933_s16  ;;  %v5943_v24 = vld [vmem:[#allocation161_spill] sm:$0xff]  ;;  %v5949_v52 = vld [vmem:[#allocation127_spill] sm:$0xff] }
 0x657   : > { %v1284_v0 = vmul.f32 %v1283_v60, %v1281_v59  ;;  %vm5941_vm0 = vcmask 515072   ;;  %v1285_v39 = vmul.f32 %v1283_v60, %v1282_v11  ;;  %v1300_v23 = vsel %vm573_vm6, %v1296_v45, 0.0  ;;  %2393 = vrot.lane.b32.xlu1 %v5943_v24, %s5933_s16  ;;  %v5946_v59 = vld [vmem:[#allocation125_spill] sm:$0xff]  ;;  %v5948_v11 = vld [vmem:[#allocation124_spill] sm:$0xff]  ;;  %s5265_s16 = sld [smem:[#allocation2 + $0x53]] }
 0x658   : > { %v4695_v36 = vsel %vm5941_vm0, %v2093_v17, %v2095_v6  ;;  %v1248_v43 = vadd.f32 %v1246_v53, %v1229_v35  ;;  %v1249_v2 = vadd.f32 %v1247_v28, %v1230_v55  ;;  %v1301_v42 = vsel %vm574_vm7, %v1297_v37, 0.0  ;;  %v5947_v53 = vld [vmem:[#allocation122_spill] sm:$0xff]  ;;  %v2097_v37 = vpop.permute.xlu1 %2096  ;;  %v5951_v34 = vld [vmem:[#allocation128_spill] sm:$0xff] }
 0x659   : > { %vm5944_vm0 = vcmp.ge.s32.totalorder %v3942_v26, 2  ;;  %vm5945_vm3 = vcmp.ge.s32.totalorder %v3944_v27, 2  ;;  %v1334_v28 = vsel %vm5640_vm1, %v5947_v53, %v5946_v59  ;;  %v1335_v54 = vsel %vm5640_vm1, %v5946_v59, %v5948_v11  ;;  %v5961_v59 = vld [vmem:[#allocation132_spill] sm:$0xff] }
 0x65a   : > { %v1319_v60 = vsel %vm5944_vm0, %v1315_v9, 0.0  ;;  %v1320_v49 = vsel %vm5945_vm3, %v1316_v14, 0.0  ;;  %v1374_v57 = vsel %vm1373_vm14, %v5950_v4, %v5949_v52  ;;  %vm5642_vm8 = vcmask 252928   ;;  %2424 = vrot.lane.b32.xlu0 %v3077_v61, %s5954_s26 }
 0x65b   : > { %v1267_v7 = vadd.f32 %v1265_v13, %v1248_v43  ;;  %v1268_v45 = vadd.f32 %v1266_v25, %v1249_v2  ;;  %v1303_v30 = vmul.f32 %v1302_v29, %v1300_v23  ;;  %v1375_v1 = vsel %vm1373_vm14, %v5949_v52, %v5951_v34  ;;  %2422 = vrot.lane.b32.xlu1 %v3080_v62, %s5954_s26  ;;  %v1354_v43 = vpop.permute.xlu0 %1353 }
 0x65c   : > { %v1455_v46 = vstv %s4664_s15  ;;  %vm5952_vm3 = vcmask 515072   ;;  %v1304_v20 = vmul.f32 %v1302_v29, %v1301_v42  ;;  %vm5953_vm0 = vcmp.ge.s32.totalorder %v3942_v26, 1  ;;  %v2113_v2 = vpop.permute.xlu1 %2112  ;;  %v5959_v42 = vld [vmem:[#allocation131_spill] sm:$0xff]  ;;  %s5247_s15 = sld [smem:[#allocation2 + $0x52]] }
 0x65d   : > { %v4727_v9 = vsel %vm5952_vm3, %v2095_v6, %v2097_v37  ;;  %v1338_v14 = vsel %vm5953_vm0, %v1334_v28, 0.0  ;;  %vm5643_vm1 = vcmask 244736   ;;  %v1286_v35 = vadd.f32 %v1284_v0, %v1267_v7  ;;  %v5957_v0 = vld [vmem:[#allocation130_spill] sm:$0xff] }
 0x65e   : > { %v1287_v55 = vadd.f32 %v1285_v39, %v1268_v45  ;;  %v1322_v17 = vmul.f32 %v1321_v19, %v1319_v60  ;;  %v1323_v6 = vmul.f32 %v1321_v19, %v1320_v49  ;;  %vm5955_vm3 = vcmp.ge.s32.totalorder %v3944_v27, 1  ;;  %v5958_v39 = vld [vmem:[#allocation129_spill] sm:$0xff]  ;;  %2440 = vrot.lane.b32.xlu0 %v3080_v62, %s5963_s14  ;;  %v5964_v45 = vld [vmem:[#allocation134_spill] sm:$0xff] }
 0x65f   : > { %v1339_v29 = vsel %vm5955_vm3, %v1335_v54, 0.0  ;;  %v1378_v13 = vsel %vm593_vm15, %v1374_v57, 0.0  ;;  %vm5956_vm0 = vcmp.lt.s32.totalorder %v3944_v27, 15  ;;  %v1393_v23 = vsel %vm1392_vm5, %v5958_v39, %v5957_v0  ;;  %v5960_v49 = vld [vmem:[#allocation133_spill] sm:$0xff]  ;;  %2426 = vrot.lane.b32.xlu1 %v3087_v63, %s5954_s26  ;;  %v1358_v37 = vpop.permute.xlu0 %1357  ;;  %s5271_s26 = sld [smem:[#allocation2 + $0x54]] }
 0x660   : > { %v1379_v25 = vsel %vm5956_vm0, %v1375_v1, 0.0  ;;  %v1305_v32 = vadd.f32 %v1303_v30, %v1286_v35  ;;  %v1306_v24 = vadd.f32 %v1304_v20, %v1287_v55  ;;  %v1341_v19 = vmul.f32 %v1340_v50, %v1338_v14  ;;  %v1356_v34 = vpop.permute.xlu1 %1355  ;;  %v5965_v1 = vld [vmem:[#allocation136_spill] sm:$0xff]  ;;  %v5966_v20 = vld [vmem:[#allocation135_spill] sm:$0xff]  ;;  %v5968_v35 = vld [vmem:[#allocation137_spill] sm:$0xff] }
 0x661   : > { %v1394_v60 = vsel %vm1392_vm5, %v5957_v0, %v5959_v42  ;;  %v1412_v53 = vsel %vm5641_vm12, %v5961_v59, %v5960_v49  ;;  %vm5962_vm3 = vcmask 506880   ;;  %v1342_v11 = vmul.f32 %v1340_v50, %v1339_v29 }
 0x662   : > { %v4759_v28 = vsel %vm5962_vm3, %v2111_v40, %v2113_v2  ;;  %v1324_v54 = vadd.f32 %v1322_v17, %v1305_v32  ;;  %v1325_v52 = vadd.f32 %v1323_v6, %v1306_v24  ;;  %vm5644_vm0 = vcmask 367616   ;;  %2444 = vrot.lane.b32.xlu0 %v3087_v63, %s5963_s14  ;;  %v5971_v32 = vld [vmem:[#allocation138_spill] sm:$0xff] }
 0x663   : > { %v1381_v4 = vmul.f32 %v1380_v56, %v1378_v13  ;;  %v1382_v57 = vmul.f32 %v1380_v56, %v1379_v25  ;;  %v1397_v7 = vsel %vm599_vm4, %v1393_v23, 0.0  ;;  %v1413_v50 = vsel %vm5641_vm12, %v5960_v49, %v5964_v45  ;;  %2442 = vrot.lane.b32.xlu1 %v3077_v61, %s5963_s14  ;;  %v2115_v49 = vpop.permute.xlu0 %2114  ;;  %s5273_s14 = sld [smem:[#allocation2 + $0x55]] }
 0x664   : > { %v1398_v62 = vsel %vm600_vm9, %v1394_v60, 0.0  ;;  %v1416_v40 = vsel %vm605_vm13, %v1412_v53, 0.0  ;;  %v1343_v30 = vadd.f32 %v1341_v19, %v1324_v54  ;;  %v1344_v56 = vadd.f32 %v1342_v11, %v1325_v52  ;;  %v5972_v19 = vld [vmem:[#allocation140_spill] sm:$0xff]  ;;  %v2149_v59 = vpop.permute.xlu1 %2148  ;;  %v5973_v11 = vld [vmem:[#allocation142_spill] sm:$0xff]  ;;  %v5974_v54 = vld [vmem:[#allocation141_spill] sm:$0xff] }
 0x665   : > { %vm5967_vm3 = vcmask 261120   ;;  %v1360_v17 = vsel %vm5644_vm0, %v1354_v43, %v1356_v34  ;;  %v1361_v6 = vsel %vm5644_vm0, %v1356_v34, %v1358_v37  ;;  %v1400_v29 = vmul.f32 %v1399_v12, %v1397_v7  ;;  %v5970_v43 = vld [vmem:[#allocation139_spill] sm:$0xff] }
 0x666   : > { %v1430_v14 = vsel %vm5967_vm3, %v5966_v20, %v5965_v1  ;;  %vm5969_vm12 = vmmov %vm5967_vm3  ;;  %v1417_v13 = vsel %vm606_vm2, %v1413_v50, 0.0  ;;  %v1364_v25 = vadd.f32 %v1360_v17, %v1343_v30  ;;  %v1365_v0 = vadd.f32 %v1361_v6, %v1344_v56  ;;  %v5975_v7 = vld [vmem:[#allocation143_spill] sm:$0xff]  ;;  %v5982_v17 = vld [vmem:[#allocation144_spill] sm:$0xff] }
 0x667   : > { %v1431_v55 = vsel %vm5969_vm12, %v5965_v1, %v5968_v35  ;;  %v1401_v39 = vmul.f32 %v1399_v12, %v1398_v62  ;;  %v1419_v23 = vmul.f32 %v1418_v41, %v1416_v40  ;;  %v1449_v24 = vsel %vm5642_vm8, %v5971_v32, %v5970_v43  ;;  %v2151_v20 = vpop.permute.xlu0 %2150  ;;  %v5983_v6 = vld [vmem:[#allocation145_spill] sm:$0xff]  ;;  %v5986_v32 = vld [vmem:[#allocation146_spill] sm:$0xff] }
 0x668   : > { %v1450_v42 = vsel %vm5642_vm8, %v5970_v43, %v5972_v19  ;;  %v1434_v60 = vsel %vm573_vm6, %v1430_v14, 0.0  ;;  %v1435_v63 = vsel %vm574_vm7, %v1431_v55, 0.0  ;;  %v1383_v61 = vadd.f32 %v1381_v4, %v1364_v25  ;;  %v1488_v14 = vpop.permute.xlu1 %1487  ;;  %v5985_v43 = vld [vmem:[#allocation149_spill] sm:$0xff]  ;;  %v5987_v19 = vld [vmem:[#allocation148_spill] sm:$0xff] }
 0x669   : > { %v1384_v12 = vadd.f32 %v1382_v57, %v1365_v0  ;;  %v1420_v53 = vmul.f32 %v1418_v41, %v1417_v13  ;;  %v1468_v52 = vsel %vm5643_vm1, %v5974_v54, %v5973_v11  ;;  %v1469_v45 = vsel %vm5643_vm1, %v5973_v11, %v5975_v7  ;;  %v5984_v13 = vld [vmem:[#allocation147_spill] sm:$0xff]  ;;  %v5989_v54 = vld [vmem:[#allocation150_spill] sm:$0xff] }
 0x66a   : > { %vm5976_vm12 = vcmask 506880   ;;  %vm5977_vm3 = vcmp.ge.s32.totalorder %v3942_v26, 2  ;;  %vm5978_vm8 = vcmp.ge.s32.totalorder %v3944_v27, 2  ;;  %v1402_v50 = vadd.f32 %v1400_v29, %v1383_v61 }
 0x66b   : > { %v4825_v4 = vsel %vm5976_vm12, %v2113_v2, %v2115_v49  ;;  %v1453_v41 = vsel %vm5977_vm3, %v1449_v24, 0.0  ;;  %v1454_v57 = vsel %vm5978_vm8, %v1450_v42, 0.0  ;;  %v1403_v62 = vadd.f32 %v1401_v39, %v1384_v12 }
 0x66c   : > { %v1437_v40 = vmul.f32 %v1436_v58, %v1434_v60  ;;  %v1438_v37 = vmul.f32 %v1436_v58, %v1435_v63  ;;  %v1474_v30 = vstv %s4776_s8  ;;  %vm5648_vm1 = vcmask 228352   ;;  %v1490_v60 = vpop.permute.xlu0 %1489  ;;  %v1492_v12 = vpop.permute.xlu1 %1491  ;;  %s5294_s8 = sld [smem:[#allocation2 + $0x56]] }
 0x66d   : > { %vm5979_vm0 = vcmp.ge.s32.totalorder %v3942_v26, 1  ;;  %vm5980_vm12 = vcmp.ge.s32.totalorder %v3944_v27, 1  ;;  %v1421_v34 = vadd.f32 %v1419_v23, %v1402_v50  ;;  %v1422_v1 = vadd.f32 %v1420_v53, %v1403_v62 }
 0x66e   : > { %v1472_v56 = vsel %vm5979_vm0, %v1468_v52, 0.0  ;;  %v1473_v2 = vsel %vm5980_vm12, %v1469_v45, 0.0  ;;  %v1456_v35 = vmul.f32 %v1455_v46, %v1453_v41  ;;  %v1457_v55 = vmul.f32 %v1455_v46, %v1454_v57  ;;  %v5990_v52 = vld [vmem:[#allocation152_spill] sm:$0xff]  ;;  %v5991_v45 = vld [vmem:[#allocation154_spill] sm:$0xff] }
 0x66f   : > { %vm5647_vm8 = vcmask 220160   ;;  %vm5981_vm3 = vcmask 490496   ;;  %v1508_v29 = vsel %vm5648_vm1, %v5983_v6, %v5982_v17  ;;  %v1509_v25 = vsel %vm5648_vm1, %v5982_v17, %v5984_v13 }
 0x670   : > { %v4847_v58 = vsel %vm5981_vm3, %v2149_v59, %v2151_v20  ;;  %v1439_v0 = vadd.f32 %v1437_v40, %v1421_v34  ;;  %v1440_v39 = vadd.f32 %v1438_v37, %v1422_v1  ;;  %v1475_v23 = vmul.f32 %v1474_v30, %v1472_v56 }
 0x671   : > { %v1476_v46 = vmul.f32 %v1474_v30, %v1473_v2  ;;  %vm5645_vm0 = vcmask 211968   ;;  %vm5646_vm12 = vcmask 236544   ;;  %v1527_v24 = vsel %vm5647_vm8, %v5986_v32, %v5985_v43  ;;  %v5996_v32 = vld [vmem:[#allocation17_spill] sm:$0xff] }
 0x672   : > { %v1528_v42 = vsel %vm5647_vm8, %v5985_v43, %v5987_v19  ;;  %v1458_v63 = vadd.f32 %v1456_v35, %v1439_v0  ;;  %v1459_v61 = vadd.f32 %v1457_v55, %v1440_v39  ;;  %v1514_v49 = vstv %s4820_s3  ;;  %v2136_v35 = vpop.permute.xlu0 %2135  ;;  %v2153_v55 = vpop.permute.xlu1 %2152  ;;  %v5998_v19 = vld [vmem:[#allocation20_spill] sm:$0xff]  ;;  %s5321_s3 = sld [smem:[#allocation2 + $0x58]] }
 0x673   : > { %v1512_v59 = vsel %vm593_vm15, %v1508_v29, 0.0  ;;  %vm5988_vm3 = vcmp.lt.s32.totalorder %v3944_v27, 15  ;;  %v1533_v11 = vstv %s4822_s2  ;;  %v1546_v7 = vsel %vm5645_vm0, %v5990_v52, %v5989_v54  ;;  %s5323_s2 = sld [smem:[#allocation2 + $0x59]] }
 0x674   : > { %v1513_v53 = vsel %vm5988_vm3, %v1509_v25, 0.0  ;;  %v1547_v41 = vsel %vm5645_vm0, %v5989_v54, %v5991_v45  ;;  %v1477_v57 = vadd.f32 %v1475_v23, %v1458_v63  ;;  %v1478_v50 = vadd.f32 %v1476_v46, %v1459_v61  ;;  %v5993_v23 = vld [vmem:[#allocation18_spill] sm:$0xff]  ;;  %v5994_v46 = vld [vmem:[#allocation16_spill] sm:$0xff]  ;;  %v6003_v54 = vld [vmem:[#allocation162_spill] sm:$0xff] }
 0x675   : > { %v1531_v62 = vsel %vm599_vm4, %v1527_v24, 0.0  ;;  %v1532_v40 = vsel %vm600_vm9, %v1528_v42, 0.0  ;;  %v1494_v37 = vsel %vm5646_vm12, %v1488_v14, %v1490_v60  ;;  %v1495_v30 = vsel %vm5646_vm12, %v1490_v60, %v1492_v12  ;;  %v5999_v42 = vld [vmem:[#allocation19_spill] sm:$0xff]  ;;  %v6001_v60 = vld [vmem:[#allocation21_spill] sm:$0xff]  ;;  %v6005_v45 = vld [vmem:[#allocation163_spill] sm:$0xff] }
 0x676   : > { %v1515_v56 = vmul.f32 %v1514_v49, %v1512_v59  ;;  %v1516_v2 = vmul.f32 %v1514_v49, %v1513_v53  ;;  %v1498_v34 = vadd.f32 %v1494_v37, %v1477_v57  ;;  %v1499_v1 = vadd.f32 %v1495_v30, %v1478_v50  ;;  %v2140_v53 = vpop.permute.xlu0 %2139 }
 0x677   : > { %v1552_v17 = vstv %s4844_s29  ;;  %v1550_v6 = vsel %vm605_vm13, %v1546_v7, 0.0  ;;  %v1551_v29 = vsel %vm606_vm2, %v1547_v41, 0.0  ;;  %vm5992_vm3 = vcmask 490496   ;;  %s5352_s29 = sld [smem:[#allocation2 + $0x5a]] }
 0x678   : > { %v4889_v14 = vsel %vm5992_vm3, %v2151_v20, %v2153_v55  ;;  %v1534_v13 = vmul.f32 %v1533_v11, %v1531_v62  ;;  %v1535_v25 = vmul.f32 %v1533_v11, %v1532_v40  ;;  %v1517_v0 = vadd.f32 %v1515_v56, %v1498_v34  ;;  %v2138_v11 = vpop.permute.xlu1 %2137  ;;  %v6012_v55 = vld [vmem:[#allocation23_spill] sm:$0xff] }
 0x679   : > { %v1518_v39 = vadd.f32 %v1516_v2, %v1499_v1  ;;  %vm5995_vm0 = vcmask 1031168   ;;  %vm6000_vm8 = vcmask 1014784   ;;  %v1553_v61 = vmul.f32 %v1552_v17, %v1550_v6 }
 0x67a   : > { %v1604_v43 = vsel %vm5995_vm0, %v5994_v46, %v5993_v23  ;;  %vm5997_vm12 = vmmov %vm5995_vm0  ;;  %v1642_v20 = vsel %vm6000_vm8, %v5999_v42, %v5998_v19  ;;  %v1554_v12 = vmul.f32 %v1552_v17, %v1551_v29  ;;  %v1536_v49 = vadd.f32 %v1534_v13, %v1517_v0  ;;  %v6013_v17 = vld [vmem:[#allocation22_spill] sm:$0xff]  ;;  %v6015_v29 = vld [vmem:[#allocation24_spill] sm:$0xff] }
 0x67b   : > { %v1605_v24 = vsel %vm5997_vm12, %v5993_v23, %v5996_v32  ;;  %vm6002_vm3 = vmmov %vm6000_vm8  ;;  %v1537_v59 = vadd.f32 %v1535_v25, %v1518_v39  ;;  %v6004_v52 = vstv %s3936_s9  ;;  %v4910_v50 = vsel %vm1224_vm11, %v2136_v35, %v2138_v11  ;;  %v4939_v39 = vpop.permute.xlu0 %2168  ;;  %v6017_v46 = vld [vmem:[#allocation26_spill] sm:$0xff]  ;;  %s4963_s9 = sld [smem:[#allocation2 + $0x3d]] }
 0x67c   : > { %v1643_v63 = vsel %vm6002_vm3, %v5998_v19, %v6001_v60  ;;  %v1573_v7 = vmul.f32 %v6004_v52, %v6003_v54  ;;  %v6006_v41 = vmov %v6004_v52  ;;  %v4913_v62 = vsel %vm1224_vm11, %v2138_v11, %v2140_v53  ;;  %v4941_v23 = vpop.permute.xlu1 %2166 }
 0x67d   : > { %v1574_v57 = vmul.f32 %v6006_v41, %v6005_v45  ;;  %v6007_v40 = vstv %s3929_s7  ;;  %v1555_v2 = vadd.f32 %v1553_v61, %v1536_v49  ;;  %v1556_v34 = vadd.f32 %v1554_v12, %v1537_v59  ;;  %s4931_s7 = sld [smem:[#allocation2 + $0x3c]] }
 0x67e   : > { %v1593_v37 = vmul.f32 %v6007_v40, %v4113_v5  ;;  %v6008_v30 = vmov %v6007_v40  ;;  %vm6009_vm8 = vcmp.ge.s32.totalorder %v3942_v26, 1  ;;  %vm6010_vm0 = vcmp.ge.s32.totalorder %v3944_v27, 1 }
 0x67f   : > { %v1594_v56 = vmul.f32 %v6008_v30, %v4117_v18  ;;  %v1608_v1 = vsel %vm6009_vm8, %v1604_v43, 0.0  ;;  %v1609_v35 = vsel %vm6010_vm0, %v1605_v24, 0.0  ;;  %v1646_v5 = vsel %vm593_vm15, %v1642_v20, 0.0  ;;  %v6018_v43 = vld [vmem:[#allocation25_spill] sm:$0xff]  ;;  %v6020_v24 = vld [vmem:[#allocation27_spill] sm:$0xff]  ;;  %v4971_v30 = vpop.permute.xlu0 %2184 }
 0x680   : > { %vm6011_vm11 = vcmp.lt.s32.totalorder %v3944_v27, 15  ;;  %vm6014_vm12 = vcmask 1006592   ;;  %v1575_v25 = vadd.f32 %v1573_v7, %v1555_v2  ;;  %v1576_v0 = vadd.f32 %v1574_v57, %v1556_v34  ;;  %v6027_v2 = vld [vmem:[#allocation29_spill] sm:$0xff]  ;;  %v6028_v34 = vld [vmem:[#allocation28_spill] sm:$0xff] }
 0x681   : > { %v1647_v18 = vsel %vm6011_vm11, %v1643_v63, 0.0  ;;  %v1660_v6 = vsel %vm6014_vm12, %v6013_v17, %v6012_v55  ;;  %vm6016_vm3 = vmmov %vm6014_vm12  ;;  %vm6019_vm8 = vcmask 998400   ;;  %v1702_v42 = vstv %s4879_s13  ;;  %s5354_s13 = sld [smem:[#allocation2 + $0x5b]] }
 0x682   : > { %v1661_v13 = vsel %vm6016_vm3, %v6012_v55, %v6015_v29  ;;  %v1678_v32 = vsel %vm6019_vm8, %v6018_v43, %v6017_v46  ;;  %vm6021_vm0 = vmmov %vm6019_vm8  ;;  %v1720_v20 = vstv %s4881_s18  ;;  %v6022_v60 = vstv %s3938_s10  ;;  %s6026_s10 = sld [smem:[#allocation151_spill]]  ;;  %v6033_v55 = vld [vmem:[#allocation153_spill] sm:$0xff]  ;;  %s5396_s18 = sld [smem:[#allocation2 + $0x5c]] }
 0x683   : > { %v1679_v19 = vsel %vm6021_vm0, %v6017_v46, %v6020_v24  ;;  %v1611_v63 = vmul.f32 %v6022_v60, %v1608_v1  ;;  %v6023_v61 = vmov %v6022_v60  ;;  %v1595_v49 = vadd.f32 %v1593_v37, %v1575_v25  ;;  %v6038_v25 = vld [vmem:[#allocation31_spill] sm:$0xff]  ;;  %v6040_v46 = vld [vmem:[#allocation33_spill] sm:$0xff] }
 0x684   : > { %v1612_v12 = vmul.f32 %v6023_v61, %v1609_v35  ;;  %v1596_v59 = vadd.f32 %v1594_v56, %v1576_v0  ;;  %v6024_v53 = vstv %s3940_s30  ;;  %v1664_v7 = vsel %vm599_vm4, %v1660_v6, 0.0  ;;  %v4973_v56 = vpop.permute.xlu1 %2170  ;;  %v6030_v35 = vld [vmem:[#allocation30_spill] sm:$0xff]  ;;  %s4999_s30 = sld [smem:[#allocation2 + $0x3f]] }
 0x685   : > { %v1649_v11 = vmul.f32 %v6024_v53, %v1646_v5  ;;  %v6025_v54 = vmov %v6024_v53  ;;  %v1665_v45 = vsel %vm600_vm9, %v1661_v13, 0.0  ;;  %v1682_v41 = vsel %vm605_vm13, %v1678_v32, 0.0  ;;  %v6035_v6 = vld [vmem:[#allocation155_spill] sm:$0xff]  ;;  %v6037_v13 = vld [vmem:[#allocation32_spill] sm:$0xff] }
 0x686   : > { %v1650_v52 = vmul.f32 %v6025_v54, %v1647_v18  ;;  %v1683_v57 = vsel %vm606_vm2, %v1679_v19, 0.0  ;;  %v1613_v40 = vadd.f32 %v1611_v63, %v1595_v49  ;;  %v1614_v37 = vadd.f32 %v1612_v12, %v1596_v59  ;;  %v6032_v18 = vld [vmem:[#allocation157_spill] sm:$0xff] }
 0x687   : > { %vm6029_vm11 = vcmask 916480   ;;  %vm6034_vm3 = vcmask 1022976   ;;  %vm6039_vm0 = vcmask 908288   ;;  %v6042_v19 = vstv %s3946_s12  ;;  %s5063_s12 = sld [smem:[#allocation2 + $0x41]] }
 0x688   : > { %v1696_v1 = vsel %vm6029_vm11, %v6028_v34, %v6027_v2  ;;  %vm6031_vm12 = vmmov %vm6029_vm11  ;;  %v1629_v17 = vsel %vm6034_vm3, %v6033_v55, %v6032_v18  ;;  %v1714_v0 = vsel %vm6039_vm0, %v6038_v25, %v6037_v13  ;;  %v1667_v60 = vmul.f32 %v6042_v19, %v1664_v7  ;;  %v6049_v55 = vld [vmem:[#allocation34_spill] sm:$0xff]  ;;  %v6056_v25 = vld [vmem:[#allocation40_spill] sm:$0xff] }
 0x689   : > { %v1697_v5 = vsel %vm6031_vm12, %v6027_v2, %v6030_v35  ;;  %vm6036_vm8 = vmmov %vm6034_vm3  ;;  %v1633_v32 = vadd.f32 %v1629_v17, %v1613_v40  ;;  %v6043_v63 = vmov %v6042_v19  ;;  %v1738_v12 = vstv %s4921_s27  ;;  %v5007_v40 = vpop.permute.xlu0 %2188  ;;  %s5408_s27 = sld [smem:[#allocation2 + $0x5d]] }
 0x68a   : > { %v1630_v29 = vsel %vm6036_vm8, %v6032_v18, %v6035_v6  ;;  %vm6041_vm1 = vmmov %vm6039_vm0  ;;  %v1668_v61 = vmul.f32 %v6043_v63, %v1665_v45  ;;  %v1776_v49 = vstv %s4931_s7  ;;  %v6044_v59 = vstv %s6026_s10  ;;  %s5433_s7 = sld [smem:[#allocation2 + $0x5f]]  ;;  %s2690_s10 = sld [smem:[#allocation2 + $0x62]] }
 0x68b   : > { %v1715_v43 = vsel %vm6041_vm1, %v6037_v13, %v6040_v46  ;;  %v1634_v24 = vadd.f32 %v1630_v29, %v1614_v37  ;;  %v1685_v53 = vmul.f32 %v6044_v59, %v1682_v41  ;;  %v6045_v54 = vmov %v6044_v59  ;;  %v5009_v37 = vpop.permute.xlu1 %2186  ;;  %v6054_v13 = vld [vmem:[#allocation38_spill] sm:$0xff] }
 0x68c   : > { %v1686_v2 = vmul.f32 %v6045_v54, %v1683_v57  ;;  %v1651_v34 = vadd.f32 %v1649_v11, %v1633_v32  ;;  %v1700_v7 = vsel %vm573_vm6, %v1696_v1, 0.0  ;;  %v1701_v45 = vsel %vm574_vm7, %v1697_v5, 0.0  ;;  %v6048_v57 = vld [vmem:[#allocation35_spill] sm:$0xff]  ;;  %v6053_v1 = vld [vmem:[#allocation37_spill] sm:$0xff] }
 0x68d   : > { %v1652_v35 = vadd.f32 %v1650_v52, %v1634_v24  ;;  %vm6046_vm1 = vcmp.ge.s32.totalorder %v3942_v26, 2  ;;  %vm6047_vm11 = vcmp.ge.s32.totalorder %v3944_v27, 2  ;;  %vm6050_vm12 = vcmask 900096   ;;  %v6051_v52 = vld [vmem:[#allocation36_spill] sm:$0xff]  ;;  %v5033_v59 = vpop.permute.xlu0 %2204 }
 0x68e   : > { %v1718_v18 = vsel %vm6046_vm1, %v1714_v0, 0.0  ;;  %v1719_v41 = vsel %vm6047_vm11, %v1715_v43, 0.0  ;;  %v1732_v11 = vsel %vm6050_vm12, %v6049_v55, %v6048_v57  ;;  %vm6052_vm3 = vmmov %vm6050_vm12  ;;  %v1669_v6 = vadd.f32 %v1667_v60, %v1651_v34 }
 0x68f   : > { %v1733_v17 = vsel %vm6052_vm3, %v6048_v57, %v6051_v52  ;;  %v1670_v29 = vadd.f32 %v1668_v61, %v1652_v35  ;;  %vm6055_vm8 = vcmask 883712   ;;  %v1794_v46 = vstv %s4963_s9  ;;  %v5035_v60 = vpop.permute.xlu1 %2202  ;;  %v6062_v57 = vld [vmem:[#allocation39_spill] sm:$0xff]  ;;  %s5446_s9 = sld [smem:[#allocation2 + $0x60]] }
 0x690   : > { %v1770_v5 = vsel %vm6055_vm8, %v6054_v13, %v6053_v1  ;;  %vm6057_vm0 = vmmov %vm6055_vm8  ;;  %v1812_v43 = vstv %s4965_s28  ;;  %v1703_v32 = vmul.f32 %v1702_v42, %v1700_v7  ;;  %v1704_v24 = vmul.f32 %v1702_v42, %v1701_v45  ;;  %v6061_v45 = vld [vmem:[#allocation42_spill] sm:$0xff]  ;;  %s5457_s28 = sld [smem:[#allocation2 + $0x61]] }
 0x691   : > { %v1771_v0 = vsel %vm6057_vm0, %v6053_v1, %v6056_v25  ;;  %v1687_v19 = vadd.f32 %v1685_v53, %v1669_v6  ;;  %v1688_v63 = vadd.f32 %v1686_v2, %v1670_v29  ;;  %v1721_v61 = vmul.f32 %v1720_v20, %v1718_v18  ;;  %v6064_v18 = vld [vmem:[#allocation41_spill] sm:$0xff]  ;;  %v5053_v1 = vpop.permute.xlu0 %2220 }
 0x692   : > { %v1722_v54 = vmul.f32 %v1720_v20, %v1719_v41  ;;  %vm6058_vm1 = vcmp.ge.s32.totalorder %v3942_v26, 1  ;;  %vm6059_vm11 = vcmp.ge.s32.totalorder %v3944_v27, 1  ;;  %v1774_v7 = vsel %vm593_vm15, %v1770_v5, 0.0 }
 0x693   : > { %v1736_v34 = vsel %vm6058_vm1, %v1732_v11, 0.0  ;;  %v1737_v35 = vsel %vm6059_vm11, %v1733_v17, 0.0  ;;  %vm6060_vm12 = vcmp.lt.s32.totalorder %v3944_v27, 15  ;;  %v1705_v53 = vadd.f32 %v1703_v32, %v1687_v19  ;;  %v5055_v13 = vpop.permute.xlu1 %2206  ;;  %v6067_v32 = vld [vmem:[#allocation44_spill] sm:$0xff]  ;;  %v6069_v19 = vld [vmem:[#allocation46_spill] sm:$0xff] }
 0x694   : > { %v1775_v42 = vsel %vm6060_vm12, %v1771_v0, 0.0  ;;  %v1706_v2 = vadd.f32 %v1704_v24, %v1688_v63  ;;  %vm6063_vm3 = vcmask 875520   ;;  %v1830_v41 = vstv %s4999_s30  ;;  %v6066_v0 = vld [vmem:[#allocation43_spill] sm:$0xff]  ;;  %s6176_s30 = sld [smem:[#allocation6_spill]] }
 0x695   : > { %v1788_v55 = vsel %vm6063_vm3, %v6062_v57, %v6061_v45  ;;  %vm6065_vm8 = vmmov %vm6063_vm3  ;;  %v1848_v11 = vstv %s5001_s5  ;;  %v1739_v52 = vmul.f32 %v1738_v12, %v1736_v34  ;;  %v1740_v17 = vmul.f32 %v1738_v12, %v1737_v35  ;;  %v6071_v35 = vld [vmem:[#allocation48_spill] sm:$0xff]  ;;  %s6178_s5 = sld [smem:[#allocation7_spill]] }
 0x696   : > { %v1789_v20 = vsel %vm6065_vm8, %v6061_v45, %v6064_v18  ;;  %v1723_v6 = vadd.f32 %v1721_v61, %v1705_v53  ;;  %v1724_v29 = vadd.f32 %v1722_v54, %v1706_v2  ;;  %v1777_v5 = vmul.f32 %v1776_v49, %v1774_v7  ;;  %v6076_v2 = vld [vmem:[#allocation158_spill] sm:$0xff]  ;;  %v6077_v45 = vld [vmem:[#allocation164_spill] sm:$0xff] }
 0x697   : > { %v1778_v25 = vmul.f32 %v1776_v49, %v1775_v42  ;;  %vm6068_vm0 = vcmask 867328   ;;  %v1792_v12 = vsel %vm599_vm4, %v1788_v55, 0.0  ;;  %v1793_v61 = vsel %vm600_vm9, %v1789_v20, 0.0  ;;  %v6072_v49 = vld [vmem:[#allocation45_spill] sm:$0xff]  ;;  %v6074_v42 = vld [vmem:[#allocation47_spill] sm:$0xff] }
 0x698   : > { %v1806_v24 = vsel %vm6068_vm0, %v6067_v32, %v6066_v0  ;;  %vm6070_vm1 = vmmov %vm6068_vm0  ;;  %v1741_v54 = vadd.f32 %v1739_v52, %v1723_v6  ;;  %v1742_v34 = vadd.f32 %v1740_v17, %v1724_v29  ;;  %vm6073_vm11 = vcmask 785408   ;;  %v5085_v6 = vpop.permute.xlu0 %2224  ;;  %v5087_v29 = vpop.permute.xlu1 %2222 }
 0x699   : > { %v1807_v63 = vsel %vm6070_vm1, %v6066_v0, %v6069_v19  ;;  %v1824_v7 = vsel %vm6073_vm11, %v6072_v49, %v6071_v35  ;;  %vm6075_vm12 = vmmov %vm6073_vm11  ;;  %vm6078_vm3 = vcmask 891904   ;;  %v1810_v18 = vsel %vm605_vm13, %v1806_v24, 0.0  ;;  %v6080_v19 = vld [vmem:[#allocation49_spill] sm:$0xff] }
 0x69a   : > { %v1825_v53 = vsel %vm6075_vm12, %v6071_v35, %v6074_v42  ;;  %v1757_v57 = vsel %vm6078_vm3, %v6077_v45, %v6076_v2  ;;  %vm6079_vm8 = vmmov %vm6078_vm3  ;;  %v1811_v20 = vsel %vm606_vm2, %v1807_v63, 0.0  ;;  %v1795_v0 = vmul.f32 %v1794_v46, %v1792_v12  ;;  %v6081_v35 = vld [vmem:[#allocation50_spill] sm:$0xff]  ;;  %v6083_v42 = vld [vmem:[#allocation52_spill] sm:$0xff] }
 0x69b   : > { %v1758_v55 = vsel %vm6079_vm8, %v6076_v2, %v4141_v8  ;;  %v1761_v52 = vadd.f32 %v1757_v57, %v1741_v54  ;;  %v1796_v32 = vmul.f32 %v1794_v46, %v1793_v61  ;;  %vm6082_vm0 = vcmask 777216   ;;  %v6086_v2 = vld [vmem:[#allocation51_spill] sm:$0xff]  ;;  %v6088_v57 = vld [vmem:[#allocation53_spill] sm:$0xff] }
 0x69c   : > { %v1762_v17 = vadd.f32 %v1758_v55, %v1742_v34  ;;  %v1842_v49 = vsel %vm6082_vm0, %v6081_v35, %v6080_v19  ;;  %vm6084_vm1 = vmmov %vm6082_vm0  ;;  %v1828_v24 = vsel %vm573_vm6, %v1824_v7, 0.0  ;;  %v1829_v63 = vsel %vm574_vm7, %v1825_v53, 0.0  ;;  %v6085_v34 = vld [vmem:[#allocation54_spill] sm:$0xff] }
 0x69d   : > { %v1843_v8 = vsel %vm6084_vm1, %v6080_v19, %v6083_v42  ;;  %v1779_v46 = vadd.f32 %v1777_v5, %v1761_v52  ;;  %v1813_v61 = vmul.f32 %v1812_v43, %v1810_v18  ;;  %v1814_v54 = vmul.f32 %v1812_v43, %v1811_v20  ;;  %v5113_v5 = vpop.permute.xlu0 %2240 }
 0x69e   : > { %v1780_v12 = vadd.f32 %v1778_v25, %v1762_v17  ;;  %vm6087_vm11 = vcmask 769024   ;;  %vm6090_vm3 = vcmp.ge.s32.totalorder %v3942_v26, 2  ;;  %vm6091_vm8 = vcmp.ge.s32.totalorder %v3944_v27, 2  ;;  %v5115_v25 = vpop.permute.xlu1 %2238 }
 0x69f   : > { %v1860_v45 = vsel %vm6087_vm11, %v6086_v2, %v6085_v34  ;;  %vm6089_vm12 = vmmov %vm6087_vm11  ;;  %v1846_v19 = vsel %vm6090_vm3, %v1842_v49, 0.0  ;;  %v1847_v7 = vsel %vm6091_vm8, %v1843_v8, 0.0  ;;  %v1797_v35 = vadd.f32 %v1795_v0, %v1779_v46  ;;  %6092 = vst [vmem:[#allocation72_spill] sm:$0xff] %v5115_v25  ;;  %v6095_v8 = vld [vmem:[#allocation56_spill] sm:$0xff] }
 0x6a0   : > { %v1861_v55 = vsel %vm6089_vm12, %v6085_v34, %v6088_v57  ;;  %v1798_v53 = vadd.f32 %v1796_v32, %v1780_v12  ;;  %v1831_v43 = vmul.f32 %v1830_v41, %v1828_v24  ;;  %v1832_v18 = vmul.f32 %v1830_v41, %v1829_v63  ;;  %v6096_v24 = vld [vmem:[#allocation55_spill] sm:$0xff]  ;;  %v6098_v63 = vld [vmem:[#allocation57_spill] sm:$0xff]  ;;  %v6101_v34 = vld [vmem:[#allocation58_spill] sm:$0xff] }
 0x6a1   : > { %v1866_v20 = vstv %s5063_s12  ;;  %vm6093_vm0 = vcmp.ge.s32.totalorder %v3942_v26, 1  ;;  %vm6094_vm1 = vcmp.ge.s32.totalorder %v3944_v27, 1  ;;  %v1815_v0 = vadd.f32 %v1813_v61, %v1797_v35  ;;  %v6100_v12 = vld [vmem:[#allocation59_spill] sm:$0xff]  ;;  %s6183_s12 = sshll.u32 %s6176_s30, 6 }
 0x6a2   : > { %v1864_v52 = vsel %vm6093_vm0, %v1860_v45, 0.0  ;;  %v1865_v17 = vsel %vm6094_vm1, %v1861_v55, 0.0  ;;  %v1816_v32 = vadd.f32 %v1814_v54, %v1798_v53  ;;  %v1849_v49 = vmul.f32 %v1848_v11, %v1846_v19  ;;  %v6103_v45 = vld [vmem:[#allocation60_spill] sm:$0xff]  ;;  %v5138_v55 = vpop.permute.xlu0 %2276 }
 0x6a3   : > { %v1850_v42 = vmul.f32 %v1848_v11, %v1847_v7  ;;  %vm6097_vm11 = vcmask 752640   ;;  %vm6102_vm3 = vcmask 744448   ;;  %v1833_v61 = vadd.f32 %v1831_v43, %v1815_v0  ;;  %6105 = vst [vmem:[#allocation73_spill] sm:$0xff] %v5138_v55  ;;  %v5140_v11 = vpop.permute.xlu1 %2242 }
 0x6a4   : > { %v1898_v41 = vsel %vm6097_vm11, %v6096_v24, %v6095_v8  ;;  %vm6099_vm12 = vmmov %vm6097_vm11  ;;  %v1916_v2 = vsel %vm6102_vm3, %v6101_v34, %v6100_v12  ;;  %v1834_v54 = vadd.f32 %v1832_v18, %v1816_v32  ;;  %6106 = vst [vmem:[#allocation75_spill] sm:$0xff] %v5140_v11  ;;  %v1867_v19 = vmul.f32 %v1866_v20, %v1864_v52  ;;  %v6109_v32 = vld [vmem:[#allocation61_spill] sm:$0xff]  ;;  %v6114_v34 = vld [vmem:[#allocation64_spill] sm:$0xff] }
 0x6a5   : > { %v1899_v46 = vsel %vm6099_vm12, %v6095_v8, %v6098_v63  ;;  %vm6104_vm8 = vmmov %vm6102_vm3  ;;  %v1868_v7 = vmul.f32 %v1866_v20, %v1865_v17  ;;  %v1904_v35 = vstv %s5095_s24  ;;  %v1922_v53 = vstv %s5097_s25  ;;  %v6108_v17 = vld [vmem:[#allocation62_spill] sm:$0xff]  ;;  %v6111_v63 = vld [vmem:[#allocation63_spill] sm:$0xff] }
 0x6a6   : > { %v1917_v57 = vsel %vm6104_vm8, %v6100_v12, %v6103_v45  ;;  %v1902_v8 = vsel %vm593_vm15, %v1898_v41, 0.0  ;;  %vm6107_vm0 = vcmp.lt.s32.totalorder %v3944_v27, 15  ;;  %v1851_v18 = vadd.f32 %v1849_v49, %v1833_v61  ;;  %v6113_v12 = vld [vmem:[#allocation65_spill] sm:$0xff]  ;;  %v6116_v49 = vld [vmem:[#allocation66_spill] sm:$0xff]  ;;  %v5168_v61 = vpop.permute.xlu0 %2280 }
 0x6a7   : > { %v1903_v43 = vsel %vm6107_vm0, %v1899_v46, 0.0  ;;  %v1852_v0 = vadd.f32 %v1850_v42, %v1834_v54  ;;  %v1920_v52 = vsel %vm599_vm4, %v1916_v2, 0.0  ;;  %v1921_v20 = vsel %vm600_vm9, %v1917_v57, 0.0  ;;  %v5170_v57 = vpop.permute.xlu1 %2278 }
 0x6a8   : > { %vm6110_vm1 = vcmask 736256   ;;  %vm6115_vm12 = vcmask 654336   ;;  %v1869_v2 = vadd.f32 %v1867_v19, %v1851_v18  ;;  %v1905_v54 = vmul.f32 %v1904_v35, %v1902_v8  ;;  %v6121_v18 = vld [vmem:[#allocation69_spill] sm:$0xff] }
 0x6a9   : > { %v1934_v24 = vsel %vm6110_vm1, %v6109_v32, %v6108_v17  ;;  %vm6112_vm11 = vmmov %vm6110_vm1  ;;  %v1952_v46 = vsel %vm6115_vm12, %v6114_v34, %v6113_v12  ;;  %v1870_v45 = vadd.f32 %v1868_v7, %v1852_v0  ;;  %v1906_v32 = vmul.f32 %v1904_v35, %v1903_v43  ;;  %v6119_v43 = vld [vmem:[#allocation67_spill] sm:$0xff] }
 0x6aa   : > { %v1935_v41 = vsel %vm6112_vm11, %v6108_v17, %v6111_v63  ;;  %vm6117_vm3 = vmmov %vm6115_vm12  ;;  %v1940_v55 = vstv %s5118_s11  ;;  %v1958_v11 = vstv %s5120_s17  ;;  %v1923_v17 = vmul.f32 %v1922_v53, %v1920_v52  ;;  %s6184_s11 = sld [smem:[#allocation169_spill]] }
 0x6ab   : > { %v1953_v42 = vsel %vm6117_vm3, %v6113_v12, %v6116_v49  ;;  %v1924_v63 = vmul.f32 %v1922_v53, %v1921_v20  ;;  %v1889_v34 = vadd.f32 %v4181_v15, %v1869_v2  ;;  %v1890_v25 = vadd.f32 %v4184_v3, %v1870_v45  ;;  %v6118_v53 = vld [vmem:[#allocation68_spill] sm:$0xff]  ;;  %v5192_v20 = vpop.permute.xlu0 %2265  ;;  %v6123_v12 = vld [vmem:[#allocation71_spill] sm:$0xff] }
 0x6ac   : > { %v1938_v19 = vsel %vm605_vm13, %v1934_v24, 0.0  ;;  %v1939_v7 = vsel %vm606_vm2, %v1935_v41, 0.0  ;;  %v1956_v8 = vsel %vm573_vm6, %v1952_v46, 0.0  ;;  %v1957_v35 = vsel %vm574_vm7, %v1953_v42, 0.0  ;;  %v5194_v24 = vpop.permute.xlu1 %2263  ;;  %v6124_v46 = vld [vmem:[#allocation70_spill] sm:$0xff] }
 0x6ad   : > { %vm6120_vm8 = vcmask 646144   ;;  %v1907_v0 = vadd.f32 %v1905_v54, %v1889_v34  ;;  %v1908_v52 = vadd.f32 %v1906_v32, %v1890_v25  ;;  %v1976_v41 = vstv %s5144_s22 }
 0x6ae   : > { %v1970_v15 = vsel %vm6120_vm8, %v6119_v43, %v6118_v53  ;;  %vm6122_vm0 = vmmov %vm6120_vm8  ;;  %vm6125_vm1 = vcmask 637952   ;;  %v1994_v42 = vstv %s5146_s19  ;;  %v1941_v45 = vmul.f32 %v1940_v55, %v1938_v19 }
 0x6af   : > { %v1971_v3 = vsel %vm6122_vm0, %v6118_v53, %v6121_v18  ;;  %v1988_v49 = vsel %vm6125_vm1, %v6124_v46, %v6123_v12  ;;  %vm6126_vm11 = vmmov %vm6125_vm1  ;;  %v1942_v43 = vmul.f32 %v1940_v55, %v1939_v7  ;;  %v1925_v54 = vadd.f32 %v1923_v17, %v1907_v0 }
 0x6b0   : > { %v1989_v2 = vsel %vm6126_vm11, %v6123_v12, %v4236_v21  ;;  %v1926_v25 = vadd.f32 %v1924_v63, %v1908_v52  ;;  %v1959_v32 = vmul.f32 %v1958_v11, %v1956_v8  ;;  %v1960_v34 = vmul.f32 %v1958_v11, %v1957_v35  ;;  %v5216_v63 = vpop.permute.xlu0 %2294  ;;  %v5218_v11 = vpop.permute.xlu1 %2267  ;;  %s211_s17 = scalar_lea.vmem %s6184_s11, %s6183_s12 }
 0x6b1   : > { %vm6127_vm12 = vcmp.ge.s32.totalorder %v3942_v26, 2  ;;  %vm6128_vm3 = vcmp.ge.s32.totalorder %v3944_v27, 2  ;;  %vm6129_vm8 = vcmp.ge.s32.totalorder %v3942_v26, 1  ;;  %vm6130_vm0 = vcmp.ge.s32.totalorder %v3944_v27, 1 }
 0x6b2   : > { %v1974_v53 = vsel %vm6127_vm12, %v1970_v15, 0.0  ;;  %v1975_v18 = vsel %vm6128_vm3, %v1971_v3, 0.0  ;;  %v1992_v21 = vsel %vm6129_vm8, %v1988_v49, 0.0  ;;  %v1993_v55 = vsel %vm6130_vm0, %v1989_v2, 0.0  ;;  %vm6132_vm11 = vmmov %vm6127_vm12 }
 0x6b3   : > { %v1943_v19 = vadd.f32 %v1941_v45, %v1925_v54  ;;  %v1944_v17 = vadd.f32 %v1942_v43, %v1926_v25  ;;  %v1977_v7 = vmul.f32 %v1976_v41, %v1974_v53  ;;  %v1978_v8 = vmul.f32 %v1976_v41, %v1975_v18  ;;  %vm6133_vm12 = vmmov %vm6128_vm3 }
 0x6b4   : > { %v1995_v3 = vmul.f32 %v1994_v42, %v1992_v21  ;;  %v1996_v0 = vmul.f32 %v1994_v42, %v1993_v55  ;;  %v2032_v52 = vstv %s5184_s20  ;;  %v2030_v12 = vsel %vm593_vm15, %v4378_v38, 0.0  ;;  %v5231_v45 = vpop.permute.xlu0 %2298  ;;  %v5233_v41 = vpop.permute.xlu1 %2296  ;;  %vm6134_vm3 = vmmov %vm6129_vm8 }
 0x6b5   : > { %v1961_v35 = vadd.f32 %v1959_v32, %v1943_v19  ;;  %v1962_v15 = vadd.f32 %v1960_v34, %v1944_v17  ;;  %vm6131_vm1 = vcmp.lt.s32.totalorder %v3944_v27, 15  ;;  %v2050_v42 = vstv %s5204_s21  ;;  %vm6135_vm8 = vmmov %vm6130_vm0 }
 0x6b6   : > { %v2031_v46 = vsel %vm6131_vm1, %v4381_v10, 0.0  ;;  %v2048_v43 = vsel %vm599_vm4, %v4467_v31, 0.0  ;;  %v2033_v25 = vmul.f32 %v2032_v52, %v2030_v12  ;;  %v2049_v10 = vsel %vm600_vm9, %v4470_v51, 0.0  ;;  %vm6136_vm0 = vmmov %vm6131_vm1 }
 0x6b7   : > { %v1979_v49 = vadd.f32 %v1977_v7, %v1961_v35  ;;  %v1980_v2 = vadd.f32 %v1978_v8, %v1962_v15  ;;  %v2034_v32 = vmul.f32 %v2032_v52, %v2031_v46  ;;  %v2068_v34 = vstv %s5210_s0 }
 0x6b8   : > { %v2066_v53 = vsel %vm605_vm13, %v4506_v16, 0.0  ;;  %v2067_v31 = vsel %vm606_vm2, %v4540_v22, 0.0  ;;  %v5257_v55 = vpop.permute.xlu0 %2314  ;;  %v5259_v51 = vpop.permute.xlu1 %2312  ;;  %v2051_v19 = vmul.f32 %v2050_v42, %v2048_v43  ;;  %v2086_v17 = vstv %s5220_s1 }
 0x6b9   : > { %v1997_v54 = vadd.f32 %v1995_v3, %v1979_v49  ;;  %v1998_v38 = vadd.f32 %v1996_v0, %v1980_v2  ;;  %v2052_v7 = vmul.f32 %v2050_v42, %v2049_v10  ;;  %v2084_v16 = vsel %vm573_vm6, %v4603_v44, 0.0 }
 0x6ba   : > { %v2069_v22 = vmul.f32 %v2068_v34, %v2066_v53  ;;  %v2104_v15 = vstv %s5223_s23  ;;  %v2102_v44 = vsel %vm6132_vm11, %v4695_v36, 0.0  ;;  %v2103_v3 = vsel %vm6133_vm12, %v4727_v9, 0.0 }
 0x6bb   : > { %v2017_v18 = vadd.f32 %v4276_v47, %v1997_v54  ;;  %v2018_v21 = vadd.f32 %v4279_v48, %v1998_v38  ;;  %v2070_v47 = vmul.f32 %v2068_v34, %v2067_v31  ;;  %v2085_v48 = vsel %vm574_vm7, %v4634_v33, 0.0 }
 0x6bc   : > { %v5281_v12 = vpop.permute.xlu0 %2330  ;;  %v5283_v33 = vpop.permute.xlu1 %2316  ;;  %v2087_v46 = vmul.f32 %v2086_v17, %v2084_v16  ;;  %v2122_v49 = vstv %s5235_s6  ;;  %v2120_v2 = vsel %vm6134_vm3, %v4759_v28, 0.0  ;;  %v2088_v42 = vmul.f32 %v2086_v17, %v2085_v48 }
 0x6bd   : > { %v2035_v8 = vadd.f32 %v2033_v25, %v2017_v18  ;;  %v2036_v35 = vadd.f32 %v2034_v32, %v2018_v21  ;;  %v2121_v36 = vsel %vm6135_vm8, %v4825_v4, 0.0  ;;  %v2105_v9 = vmul.f32 %v2104_v15, %v2102_v44 }
 0x6be   : > { %v2106_v38 = vmul.f32 %v2104_v15, %v2103_v3  ;;  %v2160_v25 = vstv %s5245_s4  ;;  %v2178_v32 = vstv %s5247_s15  ;;  %v2123_v10 = vmul.f32 %v2122_v49, %v2120_v2 }
 0x6bf   : > { %v2053_v0 = vadd.f32 %v2051_v19, %v2035_v8  ;;  %v2054_v52 = vadd.f32 %v2052_v7, %v2036_v35  ;;  %v2158_v28 = vsel %vm593_vm15, %v4847_v58, 0.0  ;;  %v2124_v18 = vmul.f32 %v2122_v49, %v2121_v36 }
 0x6c0   : > { %v5299_v31 = vpop.permute.xlu0 %2334  ;;  %v5301_v4 = vpop.permute.xlu1 %2332  ;;  %v2159_v21 = vsel %vm6136_vm0, %v4889_v14, 0.0  ;;  %v2172_v19 = vsel %vm1257_vm10, %v4941_v23, %v4939_v39  ;;  %v2173_v58 = vsel %vm1257_vm10, %v4939_v39, %v4973_v56  ;;  %vm6137_vm1 = vcmask 474112  }
 0x6c1   : > { %v2071_v43 = vadd.f32 %v2069_v22, %v2053_v0  ;;  %v2072_v54 = vadd.f32 %v2070_v47, %v2054_v52  ;;  %v2190_v16 = vsel %vm6137_vm1, %v4971_v30, %v5009_v37  ;;  %vm6138_vm11 = vmmov %vm6137_vm1  ;;  %v2161_v35 = vmul.f32 %v2160_v25, %v2158_v28  ;;  %v6147_v28 = vld [vmem:[#allocation75_spill] sm:$0xff] }
 0x6c2   : > { %v2191_v8 = vsel %vm6138_vm11, %v5009_v37, %v5007_v40  ;;  %v2196_v14 = vstv %s5265_s16  ;;  %v2214_v22 = vstv %s5271_s26  ;;  %v2232_v47 = vstv %s5273_s14 }
 0x6c3   : > { %v2089_v34 = vadd.f32 %v2087_v46, %v2071_v43  ;;  %v2090_v53 = vadd.f32 %v2088_v42, %v2072_v54  ;;  %v2176_v56 = vsel %vm599_vm4, %v2172_v19, 0.0  ;;  %v2177_v30 = vsel %vm600_vm9, %v2173_v58, 0.0 }
 0x6c4   : > { %v5329_v48 = vpop.permute.xlu0 %2350  ;;  %v5331_v40 = vpop.permute.xlu1 %2348  ;;  %v2162_v37 = vmul.f32 %v2160_v25, %v2159_v21  ;;  %v2194_v15 = vsel %vm605_vm13, %v2190_v16, 0.0  ;;  %v2195_v44 = vsel %vm606_vm2, %v2191_v8, 0.0  ;;  %vm6139_vm10 = vcmask 392192   ;;  %v6149_v21 = vld [vmem:[#allocation73_spill] sm:$0xff] }
 0x6c5   : > { %v2107_v17 = vadd.f32 %v2105_v9, %v2089_v34  ;;  %v2108_v7 = vadd.f32 %v2106_v38, %v2090_v53  ;;  %v2208_v3 = vsel %vm6139_vm10, %v5035_v60, %v5033_v59  ;;  %vm6140_vm12 = vmmov %vm6139_vm10  ;;  %vm6141_vm3 = vcmask 384000   ;;  %v6144_v9 = vld [vmem:[#allocation72_spill] sm:$0xff] }
 0x6c6   : > { %v2209_v46 = vsel %vm6140_vm12, %v5033_v59, %v5055_v13  ;;  %v2226_v49 = vsel %vm6141_vm3, %v5053_v1, %v5087_v29  ;;  %v2179_v2 = vmul.f32 %v2178_v32, %v2176_v56  ;;  %v2180_v42 = vmul.f32 %v2178_v32, %v2177_v30  ;;  %vm6142_vm8 = vmmov %vm6141_vm3 }
 0x6c7   : > { %v2125_v23 = vadd.f32 %v2123_v10, %v2107_v17  ;;  %v2126_v39 = vadd.f32 %v2124_v18, %v2108_v7  ;;  %v2227_v36 = vsel %vm6142_vm8, %v5087_v29, %v5085_v6  ;;  %v2250_v43 = vstv %s5294_s8 }
 0x6c8   : > { %v2197_v59 = vmul.f32 %v2196_v14, %v2194_v15  ;;  %v2212_v60 = vsel %vm573_vm6, %v2208_v3, 0.0  ;;  %v5358_v1 = vpop.permute.xlu0 %2366  ;;  %v5360_v13 = vpop.permute.xlu1 %2352  ;;  %v2198_v54 = vmul.f32 %v2196_v14, %v2195_v44  ;;  %v2213_v6 = vsel %vm574_vm7, %v2209_v46, 0.0 }
 0x6c9   : > { %v2145_v0 = vadd.f32 %v4910_v50, %v2125_v23  ;;  %v2146_v52 = vadd.f32 %v4913_v62, %v2126_v39  ;;  %vm6143_vm0 = vcmp.ge.s32.totalorder %v3942_v26, 2  ;;  %vm6145_vm1 = vcmask 375808  }
 0x6ca   : > { %v2230_v29 = vsel %vm6143_vm0, %v2226_v49, 0.0  ;;  %v2244_v38 = vsel %vm6145_vm1, %v6144_v9, %v5113_v5  ;;  %vm6146_vm11 = vcmp.ge.s32.totalorder %v3944_v27, 2  ;;  %vm6148_vm10 = vmmov %vm6145_vm1  ;;  %v2215_v53 = vmul.f32 %v2214_v22, %v2212_v60 }
 0x6cb   : > { %v2163_v50 = vadd.f32 %v2161_v35, %v2145_v0  ;;  %v2164_v62 = vadd.f32 %v2162_v37, %v2146_v52  ;;  %v2231_v10 = vsel %vm6146_vm11, %v2227_v36, 0.0  ;;  %v2245_v34 = vsel %vm6148_vm10, %v5113_v5, %v6147_v28 }
 0x6cc   : > { %v2288_v18 = vstv %s5321_s3  ;;  %v2282_v19 = vsel %vm1373_vm14, %v6149_v21, %v5170_v57  ;;  %v2306_v58 = vstv %s5323_s2  ;;  %v2216_v16 = vmul.f32 %v2214_v22, %v2213_v6  ;;  %v2371_v35 = vpop.permute.xlu0 %2370  ;;  %v2369_v14 = vpop.permute.xlu1 %2368 }
 0x6cd   : > { %v2181_v25 = vadd.f32 %v2179_v2, %v2163_v50  ;;  %v2182_v32 = vadd.f32 %v2180_v42, %v2164_v62  ;;  %vm6150_vm12 = vcmp.ge.s32.totalorder %v3942_v26, 1  ;;  %v2233_v23 = vmul.f32 %v2232_v47, %v2230_v29 }
 0x6ce   : > { %v2248_v8 = vsel %vm6150_vm12, %v2244_v38, 0.0  ;;  %v2234_v39 = vmul.f32 %v2232_v47, %v2231_v10  ;;  %vm6151_vm3 = vcmp.ge.s32.totalorder %v3944_v27, 1  ;;  %v2283_v56 = vsel %vm1373_vm14, %v5170_v57, %v5168_v61 }
 0x6cf   : > { %v2199_v17 = vadd.f32 %v2197_v59, %v2181_v25  ;;  %v2200_v7 = vadd.f32 %v2198_v54, %v2182_v32  ;;  %v2249_v5 = vsel %vm6151_vm3, %v2245_v34, 0.0  ;;  %v2286_v15 = vsel %vm593_vm15, %v2282_v19, 0.0 }
 0x6d0   : > { %v2300_v22 = vsel %vm1392_vm5, %v5216_v63, %v5233_v41  ;;  %v2251_v44 = vmul.f32 %v2250_v43, %v2248_v8  ;;  %v2301_v47 = vsel %vm1392_vm5, %v5233_v41, %v5231_v45  ;;  %v2324_v3 = vstv %s5352_s29  ;;  %v2407_v49 = vpop.permute.xlu0 %2406  ;;  %v2405_v2 = vpop.permute.xlu1 %2404 }
 0x6d1   : > { %v2217_v30 = vadd.f32 %v2215_v53, %v2199_v17  ;;  %v2218_v37 = vadd.f32 %v2216_v16, %v2200_v7  ;;  %v2342_v0 = vstv %s5354_s13  ;;  %v2252_v57 = vmul.f32 %v2250_v43, %v2249_v5 }
 0x6d2   : > { %vm6152_vm14 = vcmp.lt.s32.totalorder %v3944_v27, 15  ;;  %v2289_v42 = vmul.f32 %v2288_v18, %v2286_v15  ;;  %v2304_v63 = vsel %vm599_vm4, %v2300_v22, 0.0  ;;  %vm6153_vm8 = vcmask 343040  }
 0x6d3   : > { %v2235_v52 = vadd.f32 %v2233_v23, %v2217_v30  ;;  %v2236_v61 = vadd.f32 %v2234_v39, %v2218_v37  ;;  %v2287_v46 = vsel %vm6152_vm14, %v2283_v56, 0.0  ;;  %v2318_v45 = vsel %vm6153_vm8, %v5259_v51, %v5257_v55  ;;  %vm6154_vm5 = vmmov %vm6153_vm8 }
 0x6d4   : > { %v2319_v41 = vsel %vm6154_vm5, %v5257_v55, %v5283_v33  ;;  %v2305_v50 = vsel %vm600_vm9, %v2301_v47, 0.0  ;;  %vm6155_vm0 = vcmask 261120   ;;  %v2290_v59 = vmul.f32 %v2288_v18, %v2287_v46  ;;  %v2392_v29 = vpop.permute.xlu0 %2391  ;;  %v2409_v9 = vpop.permute.xlu1 %2408 }
 0x6d5   : > { %v2253_v36 = vadd.f32 %v2251_v44, %v2235_v52  ;;  %v2254_v43 = vadd.f32 %v2252_v57, %v2236_v61  ;;  %v2336_v62 = vsel %vm6155_vm0, %v5281_v12, %v5301_v4  ;;  %vm6156_vm1 = vcmask 367616   ;;  %vm6158_vm10 = vmmov %vm6155_vm0 }
 0x6d6   : > { %v2269_v51 = vsel %vm6156_vm1, %v5194_v24, %v5192_v20  ;;  %vm6157_vm11 = vmmov %vm6156_vm1  ;;  %v2337_v33 = vsel %vm6158_vm10, %v5301_v4, %v5299_v31  ;;  %v2322_v6 = vsel %vm605_vm13, %v2318_v45, 0.0  ;;  %v2323_v12 = vsel %vm606_vm2, %v2319_v41, 0.0 }
 0x6d7   : > { %v2270_v55 = vsel %vm6157_vm11, %v5192_v20, %v5218_v11  ;;  %v2273_v60 = vadd.f32 %v2269_v51, %v2253_v36  ;;  %v2307_v24 = vmul.f32 %v2306_v58, %v2304_v63  ;;  %v2308_v38 = vmul.f32 %v2306_v58, %v2305_v50 }
 0x6d8   : > { %v2274_v54 = vadd.f32 %v2270_v55, %v2254_v43  ;;  %v2340_v20 = vsel %vm573_vm6, %v2336_v62, 0.0  ;;  %vm6159_vm12 = vcmask 252928   ;;  %v2341_v25 = vsel %vm574_vm7, %v2337_v33, 0.0  ;;  %v2396_v58 = vpop.permute.xlu0 %2395  ;;  %v2394_v17 = vpop.permute.xlu1 %2393 }
 0x6d9   : > { %v2354_v11 = vsel %vm6159_vm12, %v5331_v40, %v5329_v48  ;;  %v2291_v31 = vadd.f32 %v2289_v42, %v2273_v60  ;;  %vm6160_vm3 = vmmov %vm6159_vm12  ;;  %v2325_v10 = vmul.f32 %v2324_v3, %v2322_v6  ;;  %v2326_v28 = vmul.f32 %v2324_v3, %v2323_v12 }
 0x6da   : > { %v2292_v4 = vadd.f32 %v2290_v59, %v2274_v54  ;;  %v2355_v32 = vsel %vm6160_vm3, %v5329_v48, %v5360_v13  ;;  %v2360_v34 = vstv %s5396_s18  ;;  %vm6161_vm6 = vcmask 244736  }
 0x6db   : > { %v2372_v53 = vsel %vm6161_vm6, %v5358_v1, %v2369_v14  ;;  %v2309_v18 = vadd.f32 %v2307_v24, %v2291_v31  ;;  %vm6162_vm14 = vcmp.ge.s32.totalorder %v3942_v26, 2  ;;  %vm6163_vm8 = vmmov %vm6161_vm6  ;;  %v2343_v7 = vmul.f32 %v2342_v0, %v2340_v20 }
 0x6dc   : > { %v2310_v40 = vadd.f32 %v2308_v38, %v2292_v4  ;;  %v2358_v21 = vsel %vm6162_vm14, %v2354_v11, 0.0  ;;  %v2373_v19 = vsel %vm6163_vm8, %v2369_v14, %v2371_v35  ;;  %v2344_v16 = vmul.f32 %v2342_v0, %v2341_v25  ;;  %v2425_v15 = vpop.permute.xlu0 %2424  ;;  %v2423_v22 = vpop.permute.xlu1 %2422 }
 0x6dd   : > { %vm6164_vm7 = vcmp.ge.s32.totalorder %v3944_v27, 2  ;;  %v2378_v13 = vstv %s5408_s27  ;;  %v2327_v8 = vadd.f32 %v2325_v10, %v2309_v18  ;;  %vm6165_vm5 = vcmp.ge.s32.totalorder %v3942_v26, 1 }
 0x6de   : > { %v2359_v48 = vsel %vm6164_vm7, %v2355_v32, 0.0  ;;  %v2328_v1 = vadd.f32 %v2326_v28, %v2310_v40  ;;  %v2376_v23 = vsel %vm6165_vm5, %v2372_v53, 0.0  ;;  %vm6166_vm0 = vcmask 228352  }
 0x6df   : > { %v2410_v39 = vsel %vm6166_vm0, %v2405_v2, %v2407_v49  ;;  %v2361_v5 = vmul.f32 %v2360_v34, %v2358_v21  ;;  %vm6167_vm1 = vcmp.ge.s32.totalorder %v3944_v27, 1  ;;  %v2345_v14 = vadd.f32 %v2343_v7, %v2327_v8  ;;  %vm6168_vm11 = vmmov %vm6166_vm0 }
 0x6e0   : > { %v2377_v35 = vsel %vm6167_vm1, %v2373_v19, 0.0  ;;  %v2346_v56 = vadd.f32 %v2344_v16, %v2328_v1  ;;  %v2362_v30 = vmul.f32 %v2360_v34, %v2359_v48  ;;  %v2411_v37 = vsel %vm6168_vm11, %v2407_v49, %v2409_v9  ;;  %v2441_v45 = vpop.permute.xlu0 %2440  ;;  %v2427_v41 = vpop.permute.xlu1 %2426 }
 0x6e1   : > { %v2379_v44 = vmul.f32 %v2378_v13, %v2376_v23  ;;  %v2416_v47 = vstv %s5433_s7  ;;  %v2414_v3 = vsel %vm593_vm15, %v2410_v39, 0.0  ;;  %v2363_v0 = vadd.f32 %v2361_v5, %v2345_v14  ;;  %v6179_v39 = vld [vmem:[#allocation10_spill] sm:$0xff] }
 0x6e2   : > { %v2364_v52 = vadd.f32 %v2362_v30, %v2346_v56  ;;  %v2380_v61 = vmul.f32 %v2378_v13, %v2377_v35  ;;  %vm6169_vm10 = vcmask 220160   ;;  %vm6170_vm12 = vcmp.lt.s32.totalorder %v3944_v27, 15  ;;  %v6180_v35 = vld [vmem:[#allocation8_spill] sm:$0xff]  ;;  %v6181_v56 = vld [vmem:[#allocation14_spill] sm:$0xff] }
 0x6e3   : > { %v2428_v57 = vsel %vm6169_vm10, %v2423_v22, %v2425_v15  ;;  %v2415_v46 = vsel %vm6170_vm12, %v2411_v37, 0.0  ;;  %v2417_v2 = vmul.f32 %v2416_v47, %v2414_v3  ;;  %v2381_v42 = vadd.f32 %v2379_v44, %v2363_v0  ;;  %vm6173_vm15 = vmmov %vm6169_vm10  ;;  %v6182_v37 = vld [vmem:[#allocation12_spill] sm:$0xff]  ;;  %v6185_v22 = vld [vmem:[#allocation11_spill] sm:$0xff] }
 0x6e4   : > { %v2382_v49 = vadd.f32 %v2380_v61, %v2364_v52  ;;  %v2434_v63 = vstv %s5446_s9  ;;  %vm6171_vm3 = vcmask 236544   ;;  %v2432_v50 = vsel %vm599_vm4, %v2428_v57, 0.0  ;;  %v2445_v9 = vpop.permute.xlu0 %2444  ;;  %v6187_v0 = vld [vmem:[#allocation15_spill] sm:$0xff]  ;;  %v6188_v61 = vld [vmem:[#allocation13_spill] sm:$0xff] }
 0x6e5   : > { %v2397_v36 = vsel %vm6171_vm3, %v2392_v29, %v2394_v17  ;;  %vm6172_vm6 = vmmov %vm6171_vm3  ;;  %v2429_v62 = vsel %vm6173_vm15, %v2425_v15, %v2427_v41  ;;  %v2418_v59 = vmul.f32 %v2416_v47, %v2415_v46  ;;  %v2435_v12 = vmul.f32 %v2434_v63, %v2432_v50  ;;  %v2443_v29 = vpop.permute.xlu1 %2442  ;;  %v6186_v47 = vld [vmem:[#allocation9_spill] sm:$0xff]  ;;  %v2830_v46 = vld [vmem:[%s6178_s5] sm:$0xff] }
 0x6e6   : > { %v2398_v43 = vsel %vm6172_vm6, %v2394_v17, %v2396_v58  ;;  %v2401_v51 = vadd.f32 %v2397_v36, %v2381_v42  ;;  %v2433_v33 = vsel %vm600_vm9, %v2429_v62, 0.0  ;;  %v2452_v24 = vstv %s5457_s28  ;;  %v2831_v42 = vld [vmem:[%s6178_s5 + $0x10] sm:$0xff]  ;;  %v2835_v62 = vld [vmem:[%s6178_s5 + $0x18] sm:$0xff] }
 0x6e7   : > { %v2402_v55 = vadd.f32 %v2398_v43, %v2382_v49  ;;  %v2436_v60 = vmul.f32 %v2434_v63, %v2433_v33  ;;  %vm6174_vm14 = vcmask 211968   ;;  %v2458_v28 = vstv %s2690_s10  ;;  %v2832_v63 = vld [vmem:[%s6178_s5 + $0x20] sm:$0xff]  ;;  %v2833_v41 = vld [vmem:[%s6178_s5 + $0x30] sm:$0xff]  ;;  %v2834_v43 = vld [vmem:[%s6178_s5 + $0x8] sm:$0xff] }
 0x6e8   : > { %v2419_v54 = vadd.f32 %v2417_v2, %v2401_v51  ;;  %v2446_v38 = vsel %vm6174_vm14, %v2441_v45, %v2443_v29  ;;  %vm6175_vm8 = vmmov %vm6174_vm14  ;;  %v6177_v27 = vlaneseq  ;;  %v2836_v51 = vld [vmem:[%s6178_s5 + $0x28] sm:$0xff]  ;;  %v2837_v33 = vld [vmem:[%s6178_s5 + $0x38] sm:$0xff] }
 0x6e9   : > { %v2420_v6 = vadd.f32 %v2418_v59, %v2402_v55  ;;  %v2447_v20 = vsel %vm6175_vm8, %v2443_v29, %v2445_v9  ;;  %v2450_v4 = vsel %vm605_vm13, %v2446_v38, 0.0 }
 0x6ea   : > { %v2437_v11 = vadd.f32 %v2435_v12, %v2419_v54  ;;  %v2451_v25 = vsel %vm606_vm2, %v2447_v20, 0.0  ;;  %v2453_v32 = vmul.f32 %v2452_v24, %v2450_v4  ;;  %v2474_v16 = vshrl.u32 %v6177_v27, 7 }
 0x6eb   : > { %v2438_v31 = vadd.f32 %v2436_v60, %v2420_v6  ;;  %v2454_v10 = vmul.f32 %v2452_v24, %v2451_v25 }
 0x6ec   : > { %v2455_v34 = vadd.f32 %v2453_v32, %v2437_v11  ;;  %v2475_v48 = vsub.s32 0, %v2474_v16 }
 0x6ed   : > { %v2456_v53 = vadd.f32 %v2454_v10, %v2438_v31 }
 0x6ee   : > { %v2459_v18 = vadd.f32 %v2458_v28, %v2455_v34 }
 0x6ef   : > { %v2460_v40 = vadd.f32 %v2458_v28, %v2456_v53 }
 0x6f0   : > { %v2691_v21 = vmul.f32 -1.442695, %v2459_v18 }
 0x6f1   : > { %v2692_v19 = vmul.f32 -1.442695, %v2460_v40 }
 0x6f2   : > { %2822 = vpow2.f32 %v2691_v21 }
 0x6f3   : > { %2824 = vpow2.f32 %v2692_v19 }
 0x6fc   : > { %v2823_v58 = vpop.eup %2822 }
 0x6fd   : > { %v2825_v17 = vpop.eup %2824  ;;  %v2467_v7 = vadd.f32 1.0, %v2823_v58 }
 0x6fe   : > { %v2468_v26 = vadd.f32 1.0, %v2825_v17 }
 0x6ff   : > { %2826 = vrcp.f32 %v2467_v7 }
 0x700   : > { %2828 = vrcp.f32 %v2468_v26 }
 0x709   : > { %v2827_v13 = vpop.eup %2826 }
 0x70a   : > { %v2829_v8 = vpop.eup %2828  ;;  %v2476_v1 = vrot.slane %v2827_v13, %v2475_v48 }
 0x70b   : > { %v2480_v23 = vrot.slane %v2829_v8, %v2475_v48 }
 0x70c   : > { %v2481_v5 = vmul.f32 %v2476_v1, %v6179_v39  ;;  %v2483_v14 = vmul.f32 %v2476_v1, %v6180_v35  ;;  %v2485_v30 = vmul.f32 %v2476_v1, %v6181_v56  ;;  %v2487_v15 = vmul.f32 %v2476_v1, %v6182_v37 }
 0x70d   : > { %v2482_v44 = vmul.f32 %v2480_v23, %v6185_v22  ;;  %v2484_v3 = vmul.f32 %v2480_v23, %v6186_v47  ;;  %v2486_v52 = vmul.f32 %v2480_v23, %v6187_v0  ;;  %v2488_v57 = vmul.f32 %v2480_v23, %v6188_v61 }
 0x70e   : > { %v2489_v2 = vadd.f32 %v2830_v46, %v2481_v5  ;;  %v2491_v49 = vadd.f32 %v2831_v42, %v2483_v14  ;;  %v2493_v45 = vadd.f32 %v2832_v63, %v2485_v30  ;;  %v2495_v36 = vadd.f32 %v2833_v41, %v2487_v15 }
 0x70f   : > { %v2490_v50 = vadd.f32 %v2834_v43, %v2482_v44  ;;  %v2492_v59 = vadd.f32 %v2835_v62, %v2484_v3  ;;  %v2494_v55 = vadd.f32 %v2836_v51, %v2486_v52  ;;  %v2496_v60 = vadd.f32 %v2837_v33, %v2488_v57 }
 0x710   : > { %2497 = vst [vmem:[%s211_s17] sm:$0xff] %v2489_v2  ;;  %2499 = vst [vmem:[%s211_s17 + $0x10] sm:$0xff] %v2491_v49 }
 0x711   : > { %2501 = vst [vmem:[%s211_s17 + $0x20] sm:$0xff] %v2493_v45  ;;  %2503 = vst [vmem:[%s211_s17 + $0x30] sm:$0xff] %v2495_v36 }
 0x712   : > { %2498 = vst [vmem:[%s211_s17 + $0x8] sm:$0xff] %v2490_v50  ;;  %2500 = vst [vmem:[%s211_s17 + $0x18] sm:$0xff] %v2492_v59 }
 0x713   : > { %2502 = vst [vmem:[%s211_s17 + $0x28] sm:$0xff] %v2494_v55  ;;  %2504 = vst [vmem:[%s211_s17 + $0x38] sm:$0xff] %v2496_v60 }
 0x714 PF: > { %s6189_s22 = sld [smem:[#allocation5_spill]] }
 0x71a   : > { %s15_s15 = sadd.s32 1, %s6189_s22  }
 0x71b   : > { %p12_p1 = scmp.ge.s32.totalorder %s15_s15, 4  }
 0x71d   :  { %14 = sbr.rel (!%p12_p1) target bundleno = 7 (0x7), region = 71 }
 0x724   :  { %2526 = vsyncpa [#allocation3], 1 }
 0x725   :  { %2528 = vsyncpa [#allocation3 + $0x1], 1 }

</bundles_post_ra>
